<compile_context>
chip_gen: v7x
topology: tpu7x:2x2x1
jax: 0.10.0
libtpu: 0.0.40
codegen_flags: <defaults>
</compile_context>

<pallas_src>
import functools

import jax
import jax.numpy as jnp
from jax.experimental import pallas as pl
from jax.experimental.pallas import tpu as pltpu

BN_EPS = 1e-5
OUT_PAD = 128     # lane-dense padded width for the final (B, 1) output
IN_PAD = 16       # pad input features 6 -> 16 (bf16 second-minor tile)
BATCH_TILE = 16   # pad batch to a multiple of 16 (bf16 sublane packing)


def _fused_mlp_kernel(n_layers, layer_widths, x_ref, shifts_ref, *rest):
    """Entire MLP in one kernel with streamed weights.

    rest = (w_hbm_0..w_hbm_{n-1}, o_ref, wbuf_0..wbuf_{n-1}, dma_sem)

    Each layer computes relu?(h @ W' + shift') with bias/BN already folded into
    W'/shift'.  Activations never leave VMEM; MXU consumes bf16, accumulates f32.
    """
    w_hbm = rest[:n_layers]
    o_ref = rest[n_layers]
    wbufs = rest[n_layers + 1:2 * n_layers + 1]
    sem = rest[2 * n_layers + 1]

    # Kick off every layer's weight DMA up front (small layer-0 weight lands first);
    # layer i's copy is awaited immediately before its matmul so HBM traffic for the
    # remaining layers overlaps layer i's compute.
    copies = []
    for i in range(n_layers):
        cp = pltpu.make_async_copy(w_hbm[i], wbufs[i], sem.at[i])
        cp.start()
        copies.append(cp)

    h = x_ref[...]  # (B_pad, IN_PAD) f32
    off = 0
    for i in range(n_layers):
        copies[i].wait()
        w = wbufs[i][...]                       # (K_i, N_i) bf16
        n_out = layer_widths[i]
        s = shifts_ref[:, off:off + n_out]      # (1, N_i) f32, static 128-aligned slice
        z = jnp.dot(h.astype(w.dtype), w, preferred_element_type=jnp.float32)
        z = z + s
        if i < n_layers - 1:                    # final Linear(512, 1) has no BN / ReLU
            z = jnp.maximum(z, 0.0)
        h = z
        off += n_out
    o_ref[...] = h.astype(o_ref.dtype)


def footballer_wage_prediction_forward(x, fused_params):
    """x: (B, input_size) f32. Returns (B, 1) f32."""
    B, K = x.shape
    ws = fused_params["w"]          # list of bf16 (K_i, N_i); K0 / last-N pre-padded
    shifts = fused_params["shifts"]  # (1, sum_i N_i) f32
    n = len(ws)
    widths = tuple(int(w.shape[1]) for w in ws)
    k0 = int(ws[0].shape[0])

    # Pad batch to a multiple of 16 and input features to the padded K0 (zeros).
    b_pad = max(BATCH_TILE, -(-B // BATCH_TILE) * BATCH_TILE)
    x_p = jnp.zeros((b_pad, k0), x.dtype).at[:B, :K].set(x)

    vmem = pl.BlockSpec(memory_space=pltpu.MemorySpace.VMEM)
    hbm = pl.BlockSpec(memory_space=pl.ANY)

    kernel = functools.partial(_fused_mlp_kernel, n, widths)

    out_padded = pl.pallas_call(
        kernel,
        out_shape=jax.ShapeDtypeStruct((b_pad, OUT_PAD), jnp.float32),
        in_specs=[vmem, vmem] + [hbm] * n,
        out_specs=vmem,
        scratch_shapes=[pltpu.VMEM(w.shape, w.dtype) for w in ws]
                       + [pltpu.SemaphoreType.DMA((n,))],
        compiler_params=pltpu.CompilerParams(
            vmem_limit_bytes=24 * 1024 * 1024),
    )(x_p, shifts, *ws)
    return out_padded[:B, :1]


def init_raw_params(key, input_size=6, output_size=1):
    """Deterministic synthetic parameters matching the module's layer shapes (f32)."""
    dims = [input_size, 512, 1024, 1024, 1024, 512, output_size]
    n_layers = len(dims) - 1
    keys = jax.random.split(key, n_layers * 6)
    params = []
    for i in range(n_layers):
        fan_in, fan_out = dims[i], dims[i + 1]
        k_w, k_b, k_g, k_be, k_m, k_v = keys[6 * i: 6 * i + 6]
        bound = 1.0 / jnp.sqrt(jnp.float32(fan_in))
        # Stored as (in, out) so forward is x @ W (PyTorch keeps (out, in)).
        w = jax.random.uniform(k_w, (fan_in, fan_out), jnp.float32, -bound, bound)
        b = jax.random.uniform(k_b, (1, fan_out), jnp.float32, -bound, bound)
        has_bn = i < n_layers - 1  # last Linear(512, 1) has no BN/ReLU
        if has_bn:
            gamma = 1.0 + 0.1 * jax.random.normal(k_g, (1, fan_out), jnp.float32)
            beta = 0.1 * jax.random.normal(k_be, (1, fan_out), jnp.float32)
            mean = 0.1 * jax.random.normal(k_m, (1, fan_out), jnp.float32)
            var = 1.0 + 0.1 * jax.random.uniform(k_v, (1, fan_out), jnp.float32)
        else:
            gamma = beta = mean = var = None
        params.append(dict(w=w, b=b, gamma=gamma, beta=beta,
                           mean=mean, var=var, relu=has_bn))
    return params


def fold_params(raw_params, *, weight_dtype=jnp.bfloat16,
                in_pad=IN_PAD, out_pad=OUT_PAD):
    """Fold bias + eval-mode BN into (W', shift'); cast weights to bf16; pad layer 0's
    input dim and the last layer's output dim; pack all shifts into one f32 row."""
    ws, shift_list = [], []
    n = len(raw_params)
    for i, p in enumerate(raw_params):
        w, b = p["w"], p["b"]
        if p["relu"]:
            scale = p["gamma"] / jnp.sqrt(p["var"] + BN_EPS)       # (1, N)
            w_f = w * scale                                        # column-wise fold
            shift = p["beta"] + (b - p["mean"]) * scale
        else:
            w_f = w
            shift = b
        if i == 0 and w_f.shape[0] < in_pad:
            w_f = jnp.pad(w_f, ((0, in_pad - w_f.shape[0]), (0, 0)))
        if i == n - 1 and w_f.shape[1] < out_pad:
            pad = out_pad - w_f.shape[1]
            w_f = jnp.pad(w_f, ((0, 0), (0, pad)))
            shift = jnp.pad(shift, ((0, 0), (0, pad)))
        ws.append(w_f.astype(weight_dtype))
        shift_list.append(shift.astype(jnp.float32))
    return dict(w=ws, shifts=jnp.concatenate(shift_list, axis=1))


def reference_forward(x, raw_params):
    """Pure-JAX f32 reference with UNfused bias + BN (module semantics, eval mode)."""
    h = x
    for p in raw_params:
        z = h @ p["w"] + p["b"]
        if p["relu"]:
            scale = p["gamma"] / jnp.sqrt(p["var"] + BN_EPS)
            z = (z - p["mean"]) * scale + p["beta"]
            z = jnp.maximum(z, 0.0)
        h = z
    return h


if __name__ == "__main__":
    key = jax.random.PRNGKey(0)
    k_x, k_p = jax.random.split(key)

    batch = 8
    input_size = 6
    x = jax.random.normal(k_x, (batch, input_size), jnp.float32)

    raw_params = init_raw_params(k_p, input_size=input_size, output_size=1)
    fused_params = fold_params(raw_params)

    out = footballer_wage_prediction_forward(x, fused_params)
    out = jax.block_until_ready(out)

    ref = reference_forward(x, raw_params)
    assert out.shape == (batch, 1), out.shape
    # bf16 weights -> looser tolerance than f32 (error accumulates over 6 layers).
    rel_err = jnp.max(jnp.abs(out - ref)) / (jnp.max(jnp.abs(ref)) + 1e-6)
    assert rel_err < 5e-2, (rel_err, out, ref)

    print("KERNEL_OK")
</pallas_src>

<mosaic_0001>
module attributes {stable_mosaic.version = 11 : i64} {
  func.func @_fused_mlp_kernel(%arg0: memref<16x16xf32, #tpu.memory_space<vmem>>, %arg1: memref<1x4224xf32, #tpu.memory_space<vmem>>, %arg2: memref<16x512xbf16, #tpu.memory_space<any>>, %arg3: memref<512x1024xbf16, #tpu.memory_space<any>>, %arg4: memref<1024x1024xbf16, #tpu.memory_space<any>>, %arg5: memref<1024x1024xbf16, #tpu.memory_space<any>>, %arg6: memref<1024x512xbf16, #tpu.memory_space<any>>, %arg7: memref<512x128xbf16, #tpu.memory_space<any>>, %arg8: memref<16x128xf32, #tpu.memory_space<vmem>>, %arg9: memref<16x512xbf16, #tpu.memory_space<vmem>>, %arg10: memref<512x1024xbf16, #tpu.memory_space<vmem>>, %arg11: memref<1024x1024xbf16, #tpu.memory_space<vmem>>, %arg12: memref<1024x1024xbf16, #tpu.memory_space<vmem>>, %arg13: memref<1024x512xbf16, #tpu.memory_space<vmem>>, %arg14: memref<512x128xbf16, #tpu.memory_space<vmem>>, %arg15: memref<6x!tpu.dma_semaphore, #tpu.memory_space<semaphore_mem>>) attributes {dimension_semantics = [], scalar_prefetch = 0 : i64, scratch_operands = 7 : i64, tpu.core_type = #tpu.core_type<tc>} {
    %c0_i32 = arith.constant 0 : i32
    %0 = tpu.memref_slice %arg15[%c0_i32] : memref<6x!tpu.dma_semaphore, #tpu.memory_space<semaphore_mem>> -> memref<1x!tpu.dma_semaphore, #tpu.memory_space<semaphore_mem>>
    %1 = tpu.memref_squeeze %0 : memref<1x!tpu.dma_semaphore, #tpu.memory_space<semaphore_mem>> -> memref<!tpu.dma_semaphore, #tpu.memory_space<semaphore_mem>>
    tpu.enqueue_dma source(%arg2 : memref<16x512xbf16, #tpu.memory_space<any>>) target(%arg9 : memref<16x512xbf16, #tpu.memory_space<vmem>>) target_semaphore(%1 : memref<!tpu.dma_semaphore, #tpu.memory_space<semaphore_mem>>)
    %c1_i32 = arith.constant 1 : i32
    %2 = tpu.memref_slice %arg15[%c1_i32] : memref<6x!tpu.dma_semaphore, #tpu.memory_space<semaphore_mem>> -> memref<1x!tpu.dma_semaphore, #tpu.memory_space<semaphore_mem>>
    %3 = tpu.memref_squeeze %2 : memref<1x!tpu.dma_semaphore, #tpu.memory_space<semaphore_mem>> -> memref<!tpu.dma_semaphore, #tpu.memory_space<semaphore_mem>>
    tpu.enqueue_dma source(%arg3 : memref<512x1024xbf16, #tpu.memory_space<any>>) target(%arg10 : memref<512x1024xbf16, #tpu.memory_space<vmem>>) target_semaphore(%3 : memref<!tpu.dma_semaphore, #tpu.memory_space<semaphore_mem>>)
    %c2_i32 = arith.constant 2 : i32
    %4 = tpu.memref_slice %arg15[%c2_i32] : memref<6x!tpu.dma_semaphore, #tpu.memory_space<semaphore_mem>> -> memref<1x!tpu.dma_semaphore, #tpu.memory_space<semaphore_mem>>
    %5 = tpu.memref_squeeze %4 : memref<1x!tpu.dma_semaphore, #tpu.memory_space<semaphore_mem>> -> memref<!tpu.dma_semaphore, #tpu.memory_space<semaphore_mem>>
    tpu.enqueue_dma source(%arg4 : memref<1024x1024xbf16, #tpu.memory_space<any>>) target(%arg11 : memref<1024x1024xbf16, #tpu.memory_space<vmem>>) target_semaphore(%5 : memref<!tpu.dma_semaphore, #tpu.memory_space<semaphore_mem>>)
    %c3_i32 = arith.constant 3 : i32
    %6 = tpu.memref_slice %arg15[%c3_i32] : memref<6x!tpu.dma_semaphore, #tpu.memory_space<semaphore_mem>> -> memref<1x!tpu.dma_semaphore, #tpu.memory_space<semaphore_mem>>
    %7 = tpu.memref_squeeze %6 : memref<1x!tpu.dma_semaphore, #tpu.memory_space<semaphore_mem>> -> memref<!tpu.dma_semaphore, #tpu.memory_space<semaphore_mem>>
    tpu.enqueue_dma source(%arg5 : memref<1024x1024xbf16, #tpu.memory_space<any>>) target(%arg12 : memref<1024x1024xbf16, #tpu.memory_space<vmem>>) target_semaphore(%7 : memref<!tpu.dma_semaphore, #tpu.memory_space<semaphore_mem>>)
    %c4_i32 = arith.constant 4 : i32
    %8 = tpu.memref_slice %arg15[%c4_i32] : memref<6x!tpu.dma_semaphore, #tpu.memory_space<semaphore_mem>> -> memref<1x!tpu.dma_semaphore, #tpu.memory_space<semaphore_mem>>
    %9 = tpu.memref_squeeze %8 : memref<1x!tpu.dma_semaphore, #tpu.memory_space<semaphore_mem>> -> memref<!tpu.dma_semaphore, #tpu.memory_space<semaphore_mem>>
    tpu.enqueue_dma source(%arg6 : memref<1024x512xbf16, #tpu.memory_space<any>>) target(%arg13 : memref<1024x512xbf16, #tpu.memory_space<vmem>>) target_semaphore(%9 : memref<!tpu.dma_semaphore, #tpu.memory_space<semaphore_mem>>)
    %c5_i32 = arith.constant 5 : i32
    %10 = tpu.memref_slice %arg15[%c5_i32] : memref<6x!tpu.dma_semaphore, #tpu.memory_space<semaphore_mem>> -> memref<1x!tpu.dma_semaphore, #tpu.memory_space<semaphore_mem>>
    %11 = tpu.memref_squeeze %10 : memref<1x!tpu.dma_semaphore, #tpu.memory_space<semaphore_mem>> -> memref<!tpu.dma_semaphore, #tpu.memory_space<semaphore_mem>>
    tpu.enqueue_dma source(%arg7 : memref<512x128xbf16, #tpu.memory_space<any>>) target(%arg14 : memref<512x128xbf16, #tpu.memory_space<vmem>>) target_semaphore(%11 : memref<!tpu.dma_semaphore, #tpu.memory_space<semaphore_mem>>)
    %c0 = arith.constant 0 : index
    %c0_0 = arith.constant 0 : index
    %12 = vector.load %arg0[%c0, %c0_0] : memref<16x16xf32, #tpu.memory_space<vmem>>, vector<16x16xf32>
    %c0_i32_1 = arith.constant 0 : i32
    %13 = tpu.memref_slice %arg15[%c0_i32_1] : memref<6x!tpu.dma_semaphore, #tpu.memory_space<semaphore_mem>> -> memref<1x!tpu.dma_semaphore, #tpu.memory_space<semaphore_mem>>
    %14 = tpu.memref_squeeze %13 : memref<1x!tpu.dma_semaphore, #tpu.memory_space<semaphore_mem>> -> memref<!tpu.dma_semaphore, #tpu.memory_space<semaphore_mem>>
    tpu.wait_dma2 semaphore(%14 : memref<!tpu.dma_semaphore, #tpu.memory_space<semaphore_mem>>) src(%arg2 : memref<16x512xbf16, #tpu.memory_space<any>>) dst(%arg9 : memref<16x512xbf16, #tpu.memory_space<vmem>>)
    %c0_2 = arith.constant 0 : index
    %c0_3 = arith.constant 0 : index
    %15 = vector.load %arg9[%c0_2, %c0_3] : memref<16x512xbf16, #tpu.memory_space<vmem>>, vector<16x512xbf16>
    %c0_4 = arith.constant 0 : index
    %c0_5 = arith.constant 0 : index
    %16 = vector.load %arg1[%c0_4, %c0_5] : memref<1x4224xf32, #tpu.memory_space<vmem>>, vector<1x512xf32>
    %17 = arith.truncf %12 : vector<16x16xf32> to vector<16x16xbf16>
    %cst = arith.constant dense<0.000000e+00> : vector<16x512xf32>
    %18 = tpu.matmul %17, %15, %cst {dimension_numbers = #tpu.dot_dimension_numbers<[1], [0], [0], [1], [0, 0, 1, 1], [], []>} : vector<16x16xbf16>, vector<16x512xbf16>, vector<16x512xf32> -> vector<16x512xf32>
    %19 = vector.broadcast %16 : vector<1x512xf32> to vector<16x512xf32>
    %20 = arith.addf %18, %19 : vector<16x512xf32>
    %cst_6 = arith.constant 0.000000e+00 : f32
    %21 = vector.broadcast %cst_6 : f32 to vector<16x512xf32>
    %22 = arith.maximumf %20, %21 : vector<16x512xf32>
    %c1_i32_7 = arith.constant 1 : i32
    %23 = tpu.memref_slice %arg15[%c1_i32_7] : memref<6x!tpu.dma_semaphore, #tpu.memory_space<semaphore_mem>> -> memref<1x!tpu.dma_semaphore, #tpu.memory_space<semaphore_mem>>
    %24 = tpu.memref_squeeze %23 : memref<1x!tpu.dma_semaphore, #tpu.memory_space<semaphore_mem>> -> memref<!tpu.dma_semaphore, #tpu.memory_space<semaphore_mem>>
    tpu.wait_dma2 semaphore(%24 : memref<!tpu.dma_semaphore, #tpu.memory_space<semaphore_mem>>) src(%arg3 : memref<512x1024xbf16, #tpu.memory_space<any>>) dst(%arg10 : memref<512x1024xbf16, #tpu.memory_space<vmem>>)
    %c0_8 = arith.constant 0 : index
    %c0_9 = arith.constant 0 : index
    %25 = vector.load %arg10[%c0_8, %c0_9] : memref<512x1024xbf16, #tpu.memory_space<vmem>>, vector<512x1024xbf16>
    %c0_10 = arith.constant 0 : index
    %c512 = arith.constant 512 : index
    %26 = vector.load %arg1[%c0_10, %c512] : memref<1x4224xf32, #tpu.memory_space<vmem>>, vector<1x1024xf32>
    %27 = arith.truncf %22 : vector<16x512xf32> to vector<16x512xbf16>
    %cst_11 = arith.constant dense<0.000000e+00> : vector<16x1024xf32>
    %28 = tpu.matmul %27, %25, %cst_11 {dimension_numbers = #tpu.dot_dimension_numbers<[1], [0], [0], [1], [0, 0, 1, 1], [], []>} : vector<16x512xbf16>, vector<512x1024xbf16>, vector<16x1024xf32> -> vector<16x1024xf32>
    %29 = vector.broadcast %26 : vector<1x1024xf32> to vector<16x1024xf32>
    %30 = arith.addf %28, %29 : vector<16x1024xf32>
    %cst_12 = arith.constant 0.000000e+00 : f32
    %31 = vector.broadcast %cst_12 : f32 to vector<16x1024xf32>
    %32 = arith.maximumf %30, %31 : vector<16x1024xf32>
    %c2_i32_13 = arith.constant 2 : i32
    %33 = tpu.memref_slice %arg15[%c2_i32_13] : memref<6x!tpu.dma_semaphore, #tpu.memory_space<semaphore_mem>> -> memref<1x!tpu.dma_semaphore, #tpu.memory_space<semaphore_mem>>
    %34 = tpu.memref_squeeze %33 : memref<1x!tpu.dma_semaphore, #tpu.memory_space<semaphore_mem>> -> memref<!tpu.dma_semaphore, #tpu.memory_space<semaphore_mem>>
    tpu.wait_dma2 semaphore(%34 : memref<!tpu.dma_semaphore, #tpu.memory_space<semaphore_mem>>) src(%arg4 : memref<1024x1024xbf16, #tpu.memory_space<any>>) dst(%arg11 : memref<1024x1024xbf16, #tpu.memory_space<vmem>>)
    %c0_14 = arith.constant 0 : index
    %c0_15 = arith.constant 0 : index
    %35 = vector.load %arg11[%c0_14, %c0_15] : memref<1024x1024xbf16, #tpu.memory_space<vmem>>, vector<1024x1024xbf16>
    %c0_16 = arith.constant 0 : index
    %c1536 = arith.constant 1536 : index
    %36 = vector.load %arg1[%c0_16, %c1536] : memref<1x4224xf32, #tpu.memory_space<vmem>>, vector<1x1024xf32>
    %37 = arith.truncf %32 : vector<16x1024xf32> to vector<16x1024xbf16>
    %cst_17 = arith.constant dense<0.000000e+00> : vector<16x1024xf32>
    %38 = tpu.matmul %37, %35, %cst_17 {dimension_numbers = #tpu.dot_dimension_numbers<[1], [0], [0], [1], [0, 0, 1, 1], [], []>} : vector<16x1024xbf16>, vector<1024x1024xbf16>, vector<16x1024xf32> -> vector<16x1024xf32>
    %39 = vector.broadcast %36 : vector<1x1024xf32> to vector<16x1024xf32>
    %40 = arith.addf %38, %39 : vector<16x1024xf32>
    %cst_18 = arith.constant 0.000000e+00 : f32
    %41 = vector.broadcast %cst_18 : f32 to vector<16x1024xf32>
    %42 = arith.maximumf %40, %41 : vector<16x1024xf32>
    %c3_i32_19 = arith.constant 3 : i32
    %43 = tpu.memref_slice %arg15[%c3_i32_19] : memref<6x!tpu.dma_semaphore, #tpu.memory_space<semaphore_mem>> -> memref<1x!tpu.dma_semaphore, #tpu.memory_space<semaphore_mem>>
    %44 = tpu.memref_squeeze %43 : memref<1x!tpu.dma_semaphore, #tpu.memory_space<semaphore_mem>> -> memref<!tpu.dma_semaphore, #tpu.memory_space<semaphore_mem>>
    tpu.wait_dma2 semaphore(%44 : memref<!tpu.dma_semaphore, #tpu.memory_space<semaphore_mem>>) src(%arg5 : memref<1024x1024xbf16, #tpu.memory_space<any>>) dst(%arg12 : memref<1024x1024xbf16, #tpu.memory_space<vmem>>)
    %c0_20 = arith.constant 0 : index
    %c0_21 = arith.constant 0 : index
    %45 = vector.load %arg12[%c0_20, %c0_21] : memref<1024x1024xbf16, #tpu.memory_space<vmem>>, vector<1024x1024xbf16>
    %c0_22 = arith.constant 0 : index
    %c2560 = arith.constant 2560 : index
    %46 = vector.load %arg1[%c0_22, %c2560] : memref<1x4224xf32, #tpu.memory_space<vmem>>, vector<1x1024xf32>
    %47 = arith.truncf %42 : vector<16x1024xf32> to vector<16x1024xbf16>
    %cst_23 = arith.constant dense<0.000000e+00> : vector<16x1024xf32>
    %48 = tpu.matmul %47, %45, %cst_23 {dimension_numbers = #tpu.dot_dimension_numbers<[1], [0], [0], [1], [0, 0, 1, 1], [], []>} : vector<16x1024xbf16>, vector<1024x1024xbf16>, vector<16x1024xf32> -> vector<16x1024xf32>
    %49 = vector.broadcast %46 : vector<1x1024xf32> to vector<16x1024xf32>
    %50 = arith.addf %48, %49 : vector<16x1024xf32>
    %cst_24 = arith.constant 0.000000e+00 : f32
    %51 = vector.broadcast %cst_24 : f32 to vector<16x1024xf32>
    %52 = arith.maximumf %50, %51 : vector<16x1024xf32>
    %c4_i32_25 = arith.constant 4 : i32
    %53 = tpu.memref_slice %arg15[%c4_i32_25] : memref<6x!tpu.dma_semaphore, #tpu.memory_space<semaphore_mem>> -> memref<1x!tpu.dma_semaphore, #tpu.memory_space<semaphore_mem>>
    %54 = tpu.memref_squeeze %53 : memref<1x!tpu.dma_semaphore, #tpu.memory_space<semaphore_mem>> -> memref<!tpu.dma_semaphore, #tpu.memory_space<semaphore_mem>>
    tpu.wait_dma2 semaphore(%54 : memref<!tpu.dma_semaphore, #tpu.memory_space<semaphore_mem>>) src(%arg6 : memref<1024x512xbf16, #tpu.memory_space<any>>) dst(%arg13 : memref<1024x512xbf16, #tpu.memory_space<vmem>>)
    %c0_26 = arith.constant 0 : index
    %c0_27 = arith.constant 0 : index
    %55 = vector.load %arg13[%c0_26, %c0_27] : memref<1024x512xbf16, #tpu.memory_space<vmem>>, vector<1024x512xbf16>
    %c0_28 = arith.constant 0 : index
    %c3584 = arith.constant 3584 : index
    %56 = vector.load %arg1[%c0_28, %c3584] : memref<1x4224xf32, #tpu.memory_space<vmem>>, vector<1x512xf32>
    %57 = arith.truncf %52 : vector<16x1024xf32> to vector<16x1024xbf16>
    %cst_29 = arith.constant dense<0.000000e+00> : vector<16x512xf32>
    %58 = tpu.matmul %57, %55, %cst_29 {dimension_numbers = #tpu.dot_dimension_numbers<[1], [0], [0], [1], [0, 0, 1, 1], [], []>} : vector<16x1024xbf16>, vector<1024x512xbf16>, vector<16x512xf32> -> vector<16x512xf32>
    %59 = vector.broadcast %56 : vector<1x512xf32> to vector<16x512xf32>
    %60 = arith.addf %58, %59 : vector<16x512xf32>
    %cst_30 = arith.constant 0.000000e+00 : f32
    %61 = vector.broadcast %cst_30 : f32 to vector<16x512xf32>
    %62 = arith.maximumf %60, %61 : vector<16x512xf32>
    %c5_i32_31 = arith.constant 5 : i32
    %63 = tpu.memref_slice %arg15[%c5_i32_31] : memref<6x!tpu.dma_semaphore, #tpu.memory_space<semaphore_mem>> -> memref<1x!tpu.dma_semaphore, #tpu.memory_space<semaphore_mem>>
    %64 = tpu.memref_squeeze %63 : memref<1x!tpu.dma_semaphore, #tpu.memory_space<semaphore_mem>> -> memref<!tpu.dma_semaphore, #tpu.memory_space<semaphore_mem>>
    tpu.wait_dma2 semaphore(%64 : memref<!tpu.dma_semaphore, #tpu.memory_space<semaphore_mem>>) src(%arg7 : memref<512x128xbf16, #tpu.memory_space<any>>) dst(%arg14 : memref<512x128xbf16, #tpu.memory_space<vmem>>)
    %c0_32 = arith.constant 0 : index
    %c0_33 = arith.constant 0 : index
    %65 = vector.load %arg14[%c0_32, %c0_33] : memref<512x128xbf16, #tpu.memory_space<vmem>>, vector<512x128xbf16>
    %c0_34 = arith.constant 0 : index
    %c4096 = arith.constant 4096 : index
    %66 = vector.load %arg1[%c0_34, %c4096] : memref<1x4224xf32, #tpu.memory_space<vmem>>, vector<1x128xf32>
    %67 = arith.truncf %62 : vector<16x512xf32> to vector<16x512xbf16>
    %cst_35 = arith.constant dense<0.000000e+00> : vector<16x128xf32>
    %68 = tpu.matmul %67, %65, %cst_35 {dimension_numbers = #tpu.dot_dimension_numbers<[1], [0], [0], [1], [0, 0, 1, 1], [], []>} : vector<16x512xbf16>, vector<512x128xbf16>, vector<16x128xf32> -> vector<16x128xf32>
    %69 = vector.broadcast %66 : vector<1x128xf32> to vector<16x128xf32>
    %70 = arith.addf %68, %69 : vector<16x128xf32>
    %c0_36 = arith.constant 0 : index
    %c0_37 = arith.constant 0 : index
    %71 = vector.load %arg8[%c0_36, %c0_37] : memref<16x128xf32, #tpu.memory_space<vmem>>, vector<16x128xf32>
    tpu.vector_store %arg8[%c0_36, %c0_37], %70 {strides = array<i32>} : memref<16x128xf32, #tpu.memory_space<vmem>>, vector<16x128xf32>,
    return
  }
}

</mosaic_0001>

<bundles_post_ra>
// kernel: tpu_custom_call.1
= control target key start
LH: loop header
LB: loop body
LE: loop exit
PB: predicated region body
PF: predicated region fallthrough
CT: control target
= control target key end

     0   :  { %13 = vsyncpa [#allocation10], 0  ;;  %s5449_s0 = inlined_call_operand.hbm [shape: f32[16,16], index: 0, kind: input, shape index: {}]   ;;  %s5450_s1 = inlined_call_operand.hbm [shape: f32[1,4224], index: 1, kind: input, shape index: {}]   ;;  %s5451_s2 = inlined_call_operand.hbm [shape: bf16[16,512], index: 2, kind: input, shape index: {}]   ;;  %s5452_s3 = inlined_call_operand.hbm [shape: bf16[512,1024], index: 3, kind: input, shape index: {}]   ;;  %s5453_s4 = inlined_call_operand.hbm [shape: bf16[1024,1024], index: 4, kind: input, shape index: {}]   ;;  %s5454_s5 = inlined_call_operand.hbm [shape: bf16[1024,1024], index: 5, kind: input, shape index: {}]   ;;  %s5455_s6 = inlined_call_operand.hbm [shape: bf16[1024,512], index: 6, kind: input, shape index: {}]   ;;  %s5456_s7 = inlined_call_operand.hbm [shape: bf16[512,128], index: 7, kind: input, shape index: {}]   ;;  %s5457_s8 = inlined_call_operand.hbm [shape: f32[16,128], index: 8, kind: output, shape index: {}]  }
   0x1   :  { %14 = vsyncpa [#allocation13], 0 }
   0x2   :  { %15 = vsyncpa [#allocation11], 0  ;;  %s4780_s27 = smov [#allocation9]   ;;  %s4674_s9 = scalar_lea.hbm %s5449_s0, 256 }
   0x3   :  { %s21_s28 = sshll.u32 %s4780_s27, 4  ;;  %p4675_p0 = scmp.ne.s32.totalorder %s5449_s0, %s4674_s9  ;;  %s22_s28 = int_to_ptr.vmem [resolvable:$true] %s21_s28 }
   0x4   :  { %p4678_p1 = scmp.lt.u32.totalorder %s4674_s9, %s5449_s0 }
   0x6   :  { %p4680_p2 = pnand %p4678_p1, %p4675_p0 }
   0x8   :  { %4683 = shalt.err (!%p4680_p2)
}
   0x9   :  { %s4684_s14 = scalar_lea.vmem %s22_s28, 256  ;;  %p4689_p4 = scmp.lt.s32.totalorder %s22_s28, %s22_s28 }
   0xa   :  { %p4685_p3 = scmp.ne.s32.totalorder %s22_s28, %s4684_s14  ;;  %p4690_p5 = scmp.lt.s32.totalorder %s4684_s14, %s4684_s14 }
   0xc   :  { %p4691_p6 = por %p4690_p5, %p4689_p4 }
   0xe   :  { %p4692_p7 = pnand %p4691_p6, %p4685_p3 }
  0x10   :  { %4695 = shalt.err (!%p4692_p7)
}
  0x11   :  { %s4781_s15 = smov 128   ;;  %s4782_s16 = smov 8  }
  0x12   :  { %27 = dma.hbm_to_vmem [thread:$0]  %s5449_s0, 256, %s22_s28, [#allocation10], %s4781_s15, %s4781_s15, %s4782_s16  }
  0x13   :  { %s4783_s19 = smov [#allocation12]   ;;  %s4696_s23 = scalar_lea.hbm %s5450_s1, 528 }
  0x14   :  { %s34_s20 = sshll.u32 %s4783_s19, 4  ;;  %p4697_p8 = scmp.ne.s32.totalorder %s5450_s1, %s4696_s23  ;;  %s35_s20 = int_to_ptr.vmem [resolvable:$true] %s34_s20 }
  0x15   :  { %p4700_p9 = scmp.lt.u32.totalorder %s4696_s23, %s5450_s1 }
  0x17   :  { %p4702_p10 = pnand %p4700_p9, %p4697_p8 }
  0x19   :  { %4705 = shalt.err (!%p4702_p10)
}
  0x1a   :  { %s4706_s29 = scalar_lea.vmem %s35_s20, 528  ;;  %s4710_s0 = scalar_lea.vmem %s35_s20, 544 }
  0x1b   :  { %p4707_p11 = scmp.ne.s32.totalorder %s35_s20, %s4706_s29  ;;  %p4711_p12 = scmp.lt.s32.totalorder %s35_s20, %s35_s20 }
  0x1c   :  { %p4712_p13 = scmp.lt.s32.totalorder %s4710_s0, %s4706_s29 }
  0x1e   :  { %p4713_p0 = por %p4712_p13, %p4711_p12 }
  0x20   :  { %p4714_p1 = pnand %p4713_p0, %p4707_p11 }
  0x22   :  { %4717 = shalt.err (!%p4714_p1)
}
  0x23   :  { %37 = dma.hbm_to_vmem [thread:$0]  %s5450_s1, 528, %s35_s20, [#allocation13]  }
  0x24   :  { %4762 = dma.done.wait [#allocation10], 256  }
  0x25   :  { %4763 = vsyncadd [#allocation10], 4294967040 }
  0x26   :  { %4764 = dma.done.wait [#allocation13], 528  }
  0x27   :  { %4765 = vsyncadd [#allocation13], 4294966768  ;;  %s49_s9 = sld [smem:[#allocation0]]   ;;  %s4784_s10 = smov 64  }
  0x28   :  { %61 = sst [smem:[#allocation16]] %s4784_s10  ;;  %s4785_s11 = smov 2  }
  0x29   :  { %63 = sst [smem:[#allocation16 + $0x1]] %s4781_s15  ;;  %s4786_s12 = smov 256  }
  0x2a   :  { %65 = sst [smem:[#allocation16 + $0x2]] %s4785_s11  ;;  %s4787_s13 = smov [#allocation2]  }
  0x2b   :  { %67 = sst [smem:[#allocation16 + $0x3]] %s4786_s12  ;;  %s57_s1 = sshll.u32 %s4787_s13, 4  ;;  %s58_s1 = int_to_ptr.vmem [resolvable:$true] %s57_s1 }
  0x2c   :  { %69 = sst [smem:[#allocation16 + $0x4]] %s4784_s10  ;;  %s4788_s14 = smov 4  }
  0x2d   :  { %71 = sst [smem:[#allocation16 + $0x5]] %s4788_s14  ;;  %s4391_s17 = sshll.u32 %s49_s9, 26 }
  0x2e   :  { %s4886_s18 = sadd.s32 134217728, %s4391_s17  ;;  %s4789_s19 = smov [#allocation8]  }
  0x2f   :  { %s4790_s20 = smov [#allocation15]   ;;  %s4791_s23 = smov 1024  }
  0x30   :  { %73 = dma.general %s5451_s2, 512, %s58_s1, %s4789_s19, %s4790_s20, [#allocation16], %s4886_s18, 0  }
  0x31   :  { %94 = sst [smem:[#allocation18 + $0x2]] %s4782_s16  ;;  %s4792_s24 = smov [#allocation3]  }
  0x32   :  { %90 = sst [smem:[#allocation18]] %s4791_s23  ;;  %s86_s25 = sshll.u32 %s4792_s24, 4  ;;  %s87_s25 = int_to_ptr.vmem [resolvable:$true] %s86_s25 }
  0x33   :  { %92 = sst [smem:[#allocation18 + $0x1]] %s4791_s23  ;;  %s4793_s26 = smov 512  }
  0x34   :  { %96 = sst [smem:[#allocation18 + $0x3]] %s4784_s10  ;;  %s4794_s2 = smov [#allocation8 + $0x1]  }
  0x35   :  { %98 = sst [smem:[#allocation18 + $0x4]] %s4781_s15  ;;  %s4795_s27 = smov [#allocation17]  }
  0x36   :  { %100 = sst [smem:[#allocation18 + $0x5]] %s4785_s11  ;;  %s4796_s28 = smov [#allocation4]  }
  0x37   :  { %102 = sst [smem:[#allocation18 + $0x6]] %s4793_s26  ;;  %s121_s30 = sshll.u32 %s4796_s28, 4  ;;  %s122_s30 = int_to_ptr.vmem [resolvable:$true] %s121_s30 }
  0x38   :  { %104 = sst [smem:[#allocation18 + $0x7]] %s4784_s10  ;;  %s4798_s9 = smov [#allocation19]  }
  0x39   :  { %106 = sst [smem:[#allocation18 + $0x8]] %s4788_s14  ;;  %s4799_s17 = smov [#allocation5]  }
  0x3a   :  { %108 = dma.general %s5452_s3, 32768, %s87_s25, %s4794_s2, %s4795_s27, [#allocation18], %s4886_s18, 0  }
  0x3b   :  { %125 = sst [smem:[#allocation20]] %s4791_s23  ;;  %s4797_s3 = smov [#allocation8 + $0x2]  }
  0x3c   :  { %127 = sst [smem:[#allocation20 + $0x1]] %s4791_s23  ;;  %s156_s19 = sshll.u32 %s4799_s17, 4  ;;  %s157_s19 = int_to_ptr.vmem [resolvable:$true] %s156_s19 }
  0x3d   :  { %129 = sst [smem:[#allocation20 + $0x2]] %s4782_s16  ;;  %s4801_s20 = smov [#allocation21]  }
  0x3e   :  { %131 = sst [smem:[#allocation20 + $0x3]] %s4784_s10  ;;  %s4803_s25 = smov [#allocation7]  }
  0x3f   :  { %133 = sst [smem:[#allocation20 + $0x4]] %s4781_s15  ;;  %s222_s2 = sshll.u32 %s4803_s25, 4  ;;  %s223_s2 = int_to_ptr.vmem [resolvable:$true] %s222_s2 }
  0x40   :  { %135 = sst [smem:[#allocation20 + $0x5]] %s4785_s11 }
  0x41   :  { %137 = sst [smem:[#allocation20 + $0x6]] %s4793_s26 }
  0x42   :  { %139 = sst [smem:[#allocation20 + $0x7]] %s4784_s10 }
  0x43   :  { %141 = sst [smem:[#allocation20 + $0x8]] %s4788_s14 }
  0x44   :  { %143 = dma.general %s5453_s4, 65536, %s122_s30, %s4797_s3, %s4798_s9, [#allocation20], %s4886_s18, 0  }
  0x45   :  { %160 = sst [smem:[#allocation22]] %s4791_s23  ;;  %s4800_s4 = smov [#allocation8 + $0x3]  }
  0x46   :  { %162 = sst [smem:[#allocation22 + $0x1]] %s4791_s23  ;;  %s4802_s23 = smov [#allocation6]  }
  0x47   :  { %164 = sst [smem:[#allocation22 + $0x2]] %s4782_s16  ;;  %s191_s24 = sshll.u32 %s4802_s23, 4  ;;  %s192_s24 = int_to_ptr.vmem [resolvable:$true] %s191_s24 }
  0x48   :  { %166 = sst [smem:[#allocation22 + $0x3]] %s4784_s10  ;;  %s4718_s30 = scalar_lea.hbm %s5456_s7, 4096 }
  0x49   :  { %168 = sst [smem:[#allocation22 + $0x4]] %s4781_s15  ;;  %p4719_p2 = scmp.ne.s32.totalorder %s5456_s7, %s4718_s30 }
  0x4a   :  { %170 = sst [smem:[#allocation22 + $0x5]] %s4785_s11  ;;  %p4722_p3 = scmp.lt.u32.totalorder %s4718_s30, %s5456_s7 }
  0x4b   :  { %172 = sst [smem:[#allocation22 + $0x6]] %s4793_s26 }
  0x4c   :  { %174 = sst [smem:[#allocation22 + $0x7]] %s4784_s10  ;;  %p4724_p4 = pnand %p4722_p3, %p4719_p2 }
  0x4d   :  { %176 = sst [smem:[#allocation22 + $0x8]] %s4788_s14 }
  0x4e   :  { %178 = dma.general %s5454_s5, 65536, %s157_s19, %s4800_s4, %s4801_s20, [#allocation22], %s4886_s18, 0  }
  0x4f   :  { %195 = sst [smem:[#allocation24]] %s4793_s26  ;;  %s4804_s5 = smov [#allocation8 + $0x4]  }
  0x50   :  { %197 = sst [smem:[#allocation24 + $0x1]] %s4793_s26  ;;  %s4805_s26 = smov [#allocation23]  }
  0x51   :  { %199 = sst [smem:[#allocation24 + $0x2]] %s4788_s14 }
  0x52   :  { %201 = sst [smem:[#allocation24 + $0x3]] %s4784_s10 }
  0x53   :  { %203 = sst [smem:[#allocation24 + $0x4]] %s4781_s15 }
  0x54   :  { %205 = sst [smem:[#allocation24 + $0x5]] %s4785_s11 }
  0x55   :  { %207 = sst [smem:[#allocation24 + $0x6]] %s4786_s12 }
  0x56   :  { %209 = sst [smem:[#allocation24 + $0x7]] %s4784_s10 }
  0x57   :  { %211 = sst [smem:[#allocation24 + $0x8]] %s4788_s14 }
  0x58   :  { %213 = dma.general %s5455_s6, 32768, %s192_s24, %s4804_s5, %s4805_s26, [#allocation24], %s4886_s18, 0  }
  0x59   :  { %4727 = shalt.err (!%p4724_p4)  }
  0x5a   :  { %s4728_s10 = scalar_lea.vmem %s223_s2, 4096  ;;  %p4733_p6 = scmp.lt.s32.totalorder %s223_s2, %s223_s2 }
  0x5b   :  { %p4729_p5 = scmp.ne.s32.totalorder %s223_s2, %s4728_s10  ;;  %p4734_p7 = scmp.lt.s32.totalorder %s4728_s10, %s4728_s10 }
  0x5d   :  { %p4735_p8 = por %p4734_p7, %p4733_p6 }
  0x5f   :  { %p4736_p9 = pnand %p4735_p8, %p4729_p5 }
  0x61   :  { %4739 = shalt.err (!%p4736_p9)  }
  0x62   :  { %225 = dma.hbm_to_vmem [thread:$0]  %s5456_s7, 4096, %s223_s2, [#allocation8 + $0x5]  ;;  %v226_v0 = vld [vmem:[#allocation9] sm:$0xff]  ;;  %v227_v1 = vld [vmem:[#allocation9 + $0x8] sm:$0xff] }
  0x63   :  { %4766 = dma.done.wait [#allocation8], 512 }
  0x64   :  { %4767 = vsyncadd [#allocation8], 4294966784  ;;  %v4806_v2 = vmov 0   ;;  %v233_v3 = vld [vmem:[#allocation2 + $0x8] sm:$0xff]  ;;  %v235_v4 = vld [vmem:[#allocation2 + $0x18] sm:$0xff]  ;;  %v237_v7 = vpack.c.bf16 %v227_v1, %v226_v0  ;;  %vm259_vm0 = vcmask 130048   ;;  %v239_v8 = vlaneseq }
  0x65   :  { %295 = vmatprep.mubr.bf16.mxu0 %v4806_v2  ;;  %338 = vmatprep.mubr.bf16.mxu1 %v4806_v2  ;;  %v232_v5 = vld [vmem:[#allocation2] sm:$0xff]  ;;  %v234_v6 = vld [vmem:[#allocation2 + $0x10] sm:$0xff] }
  0x66   :  { %263 = vmatprep.subr.bf16.mxu0 %v233_v3  ;;  %306 = vmatprep.subr.bf16.mxu1 %v235_v4  ;;  %v4956_v9 = vshrl.u32 %v239_v8, 7  ;;  %v236_v12 = vld [vmem:[#allocation12] sm:$0xf] }
  0x67   :  { %264 = vmatpush1.bf16.msra.mxu0 %v232_v5  ;;  %307 = vmatpush1.bf16.msra.mxu1 %v234_v6 }
  0x68   :  { %v4959_v10 = vsub.s32 0, %v4956_v9  ;;  %v4962_v11 = vsub.s32 2, %v4956_v9  ;;  %v4965_v13 = vsub.s32 1, %v4956_v9  ;;  %v4968_v14 = vsub.s32 3, %v4956_v9 }
  0x6a   :  { %4401 = vmatmul.mubr.msk.bf16.vlgmr.msra.gmra.mrb[0].mxu0 %vm259_vm0, %v237_v7  ;;  %4402 = vmatmul.mubr.msk.bf16.vlgmr.msra.gmra.mrb[0].mxu1 %vm259_vm0, %v237_v7  ;;  %v242_v15 = vrot.slane %v236_v12, %v4959_v10  ;;  %v250_v16 = vrot.slane %v236_v12, %v4962_v11  ;;  %v246_v17 = vrot.slane %v236_v12, %v4965_v13 }
  0x6b   :  { %v254_v18 = vrot.slane %v236_v12, %v4968_v14 }
 0x13d   :  { %v297_v19 = vpop.f32.mrb[0].mxu0  ;;  %v340_v20 = vpop.f32.mrb[0].mxu1 }
 0x13e   :  { %v4974_v21 = vadd.f32 %v297_v19, %v242_v15  ;;  %v4976_v22 = vadd.f32 %v340_v20, %v250_v16  ;;  %v299_v23 = vpop.f32.mrb[1].mxu0  ;;  %v342_v24 = vpop.f32.mrb[1].mxu1 }
 0x13f   :  { %v300_v25 = vadd.f32 %v299_v23, %v246_v17  ;;  %v4978_v26 = vadd.f32 %v342_v24, %v254_v18  ;;  %v301_v27 = vpop.f32.mrb[2].mxu0  ;;  %v344_v28 = vpop.f32.mrb[2].mxu1 }
 0x140   :  { %v349_v29 = vmax.f32 %v4974_v21, 0.0  ;;  %v351_v30 = vmax.f32 %v4976_v22, 0.0  ;;  %v4982_v31 = vadd.f32 %v301_v27, %v242_v15  ;;  %v4984_v32 = vadd.f32 %v344_v28, %v250_v16  ;;  %v303_v33 = vpop.f32.mrb[3].mxu0  ;;  %v346_v34 = vpop.f32.mrb[3].mxu1 }
 0x141   :  { %v350_v35 = vmax.f32 %v300_v25, 0.0  ;;  %v352_v36 = vmax.f32 %v4978_v26, 0.0  ;;  %v304_v37 = vadd.f32 %v303_v33, %v246_v17  ;;  %v4987_v38 = vadd.f32 %v346_v34, %v254_v18 }
 0x142   :  { %v353_v39 = vmax.f32 %v4982_v31, 0.0  ;;  %v355_v40 = vmax.f32 %v4984_v32, 0.0 }
 0x143   :  { %v354_v41 = vmax.f32 %v304_v37, 0.0  ;;  %v356_v42 = vmax.f32 %v4987_v38, 0.0 }
 0x144   :  { %4768 = dma.done.wait [#allocation8 + $0x1], 32768 }
 0x145   :  { %4769 = vsyncadd [#allocation8 + $0x1], 4294934528  ;;  %v4992_v43 = vpack.c.bf16 %v354_v41, %v350_v35  ;;  %v362_v44 = vld [vmem:[#allocation3 + $0x8] sm:$0xff]  ;;  %v364_v45 = vld [vmem:[#allocation3 + $0x18] sm:$0xff] }
 0x146   :  { %v361_v46 = vld [vmem:[#allocation3] sm:$0xff]  ;;  %663 = vmatprep.subr.bf16.mxu0 %v362_v44  ;;  %749 = vmatprep.subr.bf16.mxu1 %v364_v45  ;;  %v363_v47 = vld [vmem:[#allocation3 + $0x10] sm:$0xff]  ;;  %v370_v48 = vld [vmem:[#allocation3 + $0x48] sm:$0xff] }
 0x147   :  { %695 = vmatprep.mubr.bf16.mxu0 %v4992_v43  ;;  %781 = vmatprep.mubr.bf16.mxu1 %v4992_v43  ;;  %v372_v49 = vld [vmem:[#allocation3 + $0x58] sm:$0xff]  ;;  %v369_v50 = vld [vmem:[#allocation3 + $0x40] sm:$0xff]  ;;  %v371_v51 = vld [vmem:[#allocation3 + $0x50] sm:$0xff] }
 0x148   :  { %664 = vmatpush1.bf16.msra.mxu0 %v361_v46  ;;  %750 = vmatpush1.bf16.msra.mxu1 %v363_v47  ;;  %v378_v52 = vld [vmem:[#allocation3 + $0x88] sm:$0xff]  ;;  %v380_v53 = vld [vmem:[#allocation3 + $0x98] sm:$0xff]  ;;  %v377_v54 = vld [vmem:[#allocation3 + $0x80] sm:$0xff] }
 0x149   :  { %665 = vmatprep.subr.bf16.mxu0 %v370_v48  ;;  %751 = vmatprep.subr.bf16.mxu1 %v372_v49  ;;  %v379_v55 = vld [vmem:[#allocation3 + $0x90] sm:$0xff]  ;;  %v386_v56 = vld [vmem:[#allocation3 + $0xc8] sm:$0xff]  ;;  %v388_v57 = vld [vmem:[#allocation3 + $0xd8] sm:$0xff] }
 0x14a   :  { %v385_v58 = vld [vmem:[#allocation3 + $0xc0] sm:$0xff]  ;;  %v387_v59 = vld [vmem:[#allocation3 + $0xd0] sm:$0xff]  ;;  %v394_v60 = vld [vmem:[#allocation3 + $0x108] sm:$0xff] }
 0x14b   :  { %v396_v61 = vld [vmem:[#allocation3 + $0x118] sm:$0xff]  ;;  %v393_v62 = vld [vmem:[#allocation3 + $0x100] sm:$0xff]  ;;  %v395_v63 = vld [vmem:[#allocation3 + $0x110] sm:$0xff] }
 0x14c   :  { %666 = vmatpush1.bf16.msra.mxu0 %v369_v50  ;;  %752 = vmatpush1.bf16.msra.mxu1 %v371_v51  ;;  %v402_v0 = vld [vmem:[#allocation3 + $0x148] sm:$0xff]  ;;  %v404_v1 = vld [vmem:[#allocation3 + $0x158] sm:$0xff]  ;;  %v401_v2 = vld [vmem:[#allocation3 + $0x140] sm:$0xff] }
 0x14d   :  { %667 = vmatprep.subr.bf16.mxu0 %v378_v52  ;;  %753 = vmatprep.subr.bf16.mxu1 %v380_v53  ;;  %v403_v3 = vld [vmem:[#allocation3 + $0x150] sm:$0xff]  ;;  %v410_v4 = vld [vmem:[#allocation3 + $0x188] sm:$0xff]  ;;  %v412_v5 = vld [vmem:[#allocation3 + $0x198] sm:$0xff] }
 0x14e   :  { %v409_v6 = vld [vmem:[#allocation3 + $0x180] sm:$0xff]  ;;  %v411_v7 = vld [vmem:[#allocation3 + $0x190] sm:$0xff]  ;;  %v418_v8 = vld [vmem:[#allocation3 + $0x1c8] sm:$0xff] }
 0x14f   :  { %v420_v12 = vld [vmem:[#allocation3 + $0x1d8] sm:$0xff]  ;;  %v417_v15 = vld [vmem:[#allocation3 + $0x1c0] sm:$0xff]  ;;  %v419_v16 = vld [vmem:[#allocation3 + $0x1d0] sm:$0xff] }
 0x150   :  { %668 = vmatpush1.bf16.msra.mxu0 %v377_v54  ;;  %754 = vmatpush1.bf16.msra.mxu1 %v379_v55  ;;  %v426_v17 = vld [vmem:[#allocation3 + $0x208] sm:$0xff]  ;;  %v428_v18 = vld [vmem:[#allocation3 + $0x218] sm:$0xff]  ;;  %v425_v19 = vld [vmem:[#allocation3 + $0x200] sm:$0xff] }
 0x151   :  { %669 = vmatprep.subr.bf16.mxu0 %v386_v56  ;;  %755 = vmatprep.subr.bf16.mxu1 %v388_v57  ;;  %v427_v20 = vld [vmem:[#allocation3 + $0x210] sm:$0xff]  ;;  %v434_v23 = vld [vmem:[#allocation3 + $0x248] sm:$0xff]  ;;  %v436_v24 = vld [vmem:[#allocation3 + $0x258] sm:$0xff] }
 0x152   :  { %v433_v25 = vld [vmem:[#allocation3 + $0x240] sm:$0xff]  ;;  %v435_v27 = vld [vmem:[#allocation3 + $0x250] sm:$0xff]  ;;  %v442_v28 = vld [vmem:[#allocation3 + $0x288] sm:$0xff] }
 0x153   :  { %v444_v33 = vld [vmem:[#allocation3 + $0x298] sm:$0xff]  ;;  %v441_v34 = vld [vmem:[#allocation3 + $0x280] sm:$0xff]  ;;  %v443_v35 = vld [vmem:[#allocation3 + $0x290] sm:$0xff] }
 0x154   :  { %670 = vmatpush1.bf16.msra.mxu0 %v385_v58  ;;  %756 = vmatpush1.bf16.msra.mxu1 %v387_v59  ;;  %v450_v37 = vld [vmem:[#allocation3 + $0x2c8] sm:$0xff]  ;;  %v452_v41 = vld [vmem:[#allocation3 + $0x2d8] sm:$0xff]  ;;  %v449_v44 = vld [vmem:[#allocation3 + $0x2c0] sm:$0xff] }
 0x155   :  { %671 = vmatprep.subr.bf16.mxu0 %v394_v60  ;;  %757 = vmatprep.subr.bf16.mxu1 %v396_v61  ;;  %v451_v45 = vld [vmem:[#allocation3 + $0x2d0] sm:$0xff]  ;;  %v458_v46 = vld [vmem:[#allocation3 + $0x308] sm:$0xff]  ;;  %v460_v47 = vld [vmem:[#allocation3 + $0x318] sm:$0xff] }
 0x156   :  { %v457_v48 = vld [vmem:[#allocation3 + $0x300] sm:$0xff]  ;;  %v459_v49 = vld [vmem:[#allocation3 + $0x310] sm:$0xff]  ;;  %v466_v50 = vld [vmem:[#allocation3 + $0x348] sm:$0xff] }
 0x157   :  { %v468_v51 = vld [vmem:[#allocation3 + $0x358] sm:$0xff]  ;;  %v465_v52 = vld [vmem:[#allocation3 + $0x340] sm:$0xff]  ;;  %v467_v53 = vld [vmem:[#allocation3 + $0x350] sm:$0xff] }
 0x158   :  { %672 = vmatpush1.bf16.msra.mxu0 %v393_v62  ;;  %758 = vmatpush1.bf16.msra.mxu1 %v395_v63  ;;  %v474_v54 = vld [vmem:[#allocation3 + $0x388] sm:$0xff]  ;;  %v476_v55 = vld [vmem:[#allocation3 + $0x398] sm:$0xff]  ;;  %v473_v56 = vld [vmem:[#allocation3 + $0x380] sm:$0xff] }
 0x159   :  { %673 = vmatprep.subr.bf16.mxu0 %v402_v0  ;;  %759 = vmatprep.subr.bf16.mxu1 %v404_v1  ;;  %v475_v57 = vld [vmem:[#allocation3 + $0x390] sm:$0xff]  ;;  %v482_v58 = vld [vmem:[#allocation3 + $0x3c8] sm:$0xff]  ;;  %v484_v59 = vld [vmem:[#allocation3 + $0x3d8] sm:$0xff]  ;;  %v5000_v0 = vpack.c.bf16 %v353_v39, %v349_v29 }
 0x15a   :  { %v481_v60 = vld [vmem:[#allocation3 + $0x3c0] sm:$0xff]  ;;  %v483_v61 = vld [vmem:[#allocation3 + $0x3d0] sm:$0xff]  ;;  %v490_v62 = vld [vmem:[#allocation3 + $0x408] sm:$0xff] }
 0x15b   :  { %v492_v63 = vld [vmem:[#allocation3 + $0x418] sm:$0xff]  ;;  %v489_v1 = vld [vmem:[#allocation3 + $0x400] sm:$0xff]  ;;  %v499_v29 = vld [vmem:[#allocation3 + $0x450] sm:$0xff] }
 0x15c   :  { %674 = vmatpush1.bf16.msra.mxu0 %v401_v2  ;;  %760 = vmatpush1.bf16.msra.mxu1 %v403_v3  ;;  %v491_v2 = vld [vmem:[#allocation3 + $0x410] sm:$0xff]  ;;  %v498_v3 = vld [vmem:[#allocation3 + $0x448] sm:$0xff]  ;;  %v497_v21 = vld [vmem:[#allocation3 + $0x440] sm:$0xff] }
 0x15d   :  { %675 = vmatprep.subr.bf16.mxu0 %v410_v4  ;;  %761 = vmatprep.subr.bf16.mxu1 %v412_v5  ;;  %v500_v4 = vld [vmem:[#allocation3 + $0x458] sm:$0xff]  ;;  %v5006_v5 = vpack.c.bf16 %v356_v42, %v352_v36  ;;  %v506_v31 = vld [vmem:[#allocation3 + $0x488] sm:$0xff]  ;;  %v505_v26 = vld [vmem:[#allocation3 + $0x480] sm:$0xff] }
 0x15e   :  { %v508_v39 = vld [vmem:[#allocation3 + $0x498] sm:$0xff]  ;;  %v507_v36 = vld [vmem:[#allocation3 + $0x490] sm:$0xff]  ;;  %v514_v38 = vld [vmem:[#allocation3 + $0x4c8] sm:$0xff] }
 0x15f   :  { %v516_v42 = vld [vmem:[#allocation3 + $0x4d8] sm:$0xff]  ;;  %v373_v22 = vld [vmem:[#allocation3 + $0x60] sm:$0xff]  ;;  %v375_v32 = vld [vmem:[#allocation3 + $0x70] sm:$0xff] }
 0x160   :  { %676 = vmatpush1.bf16.msra.mxu0 %v409_v6  ;;  %762 = vmatpush1.bf16.msra.mxu1 %v411_v7  ;;  %v513_v6 = vld [vmem:[#allocation3 + $0x4c0] sm:$0xff]  ;;  %v515_v7 = vld [vmem:[#allocation3 + $0x4d0] sm:$0xff] }
 0x161   :  { %677 = vmatprep.subr.bf16.mxu0 %v418_v8  ;;  %763 = vmatprep.subr.bf16.mxu1 %v420_v12  ;;  %v522_v8 = vld [vmem:[#allocation3 + $0x508] sm:$0xff]  ;;  %v524_v12 = vld [vmem:[#allocation3 + $0x518] sm:$0xff] }
 0x164   :  { %678 = vmatpush1.bf16.msra.mxu0 %v417_v15  ;;  %764 = vmatpush1.bf16.msra.mxu1 %v419_v16  ;;  %v521_v15 = vld [vmem:[#allocation3 + $0x500] sm:$0xff]  ;;  %v523_v16 = vld [vmem:[#allocation3 + $0x510] sm:$0xff] }
 0x165   :  { %679 = vmatprep.subr.bf16.mxu0 %v426_v17  ;;  %765 = vmatprep.subr.bf16.mxu1 %v428_v18  ;;  %v530_v17 = vld [vmem:[#allocation3 + $0x548] sm:$0xff]  ;;  %v532_v18 = vld [vmem:[#allocation3 + $0x558] sm:$0xff] }
 0x168   :  { %680 = vmatpush1.bf16.msra.mxu0 %v425_v19  ;;  %766 = vmatpush1.bf16.msra.mxu1 %v427_v20  ;;  %v529_v19 = vld [vmem:[#allocation3 + $0x540] sm:$0xff]  ;;  %v531_v20 = vld [vmem:[#allocation3 + $0x550] sm:$0xff] }
 0x169   :  { %681 = vmatprep.subr.bf16.mxu0 %v434_v23  ;;  %767 = vmatprep.subr.bf16.mxu1 %v436_v24  ;;  %v538_v23 = vld [vmem:[#allocation3 + $0x588] sm:$0xff]  ;;  %v540_v24 = vld [vmem:[#allocation3 + $0x598] sm:$0xff] }
 0x16c   :  { %682 = vmatpush1.bf16.msra.mxu0 %v433_v25  ;;  %768 = vmatpush1.bf16.msra.mxu1 %v435_v27  ;;  %v537_v25 = vld [vmem:[#allocation3 + $0x580] sm:$0xff]  ;;  %v539_v27 = vld [vmem:[#allocation3 + $0x590] sm:$0xff] }
 0x16d   :  { %683 = vmatprep.subr.bf16.mxu0 %v442_v28  ;;  %769 = vmatprep.subr.bf16.mxu1 %v444_v33  ;;  %v546_v28 = vld [vmem:[#allocation3 + $0x5c8] sm:$0xff]  ;;  %v548_v33 = vld [vmem:[#allocation3 + $0x5d8] sm:$0xff] }
 0x170   :  { %684 = vmatpush1.bf16.msra.mxu0 %v441_v34  ;;  %770 = vmatpush1.bf16.msra.mxu1 %v443_v35  ;;  %v545_v34 = vld [vmem:[#allocation3 + $0x5c0] sm:$0xff]  ;;  %v547_v35 = vld [vmem:[#allocation3 + $0x5d0] sm:$0xff] }
 0x171   :  { %685 = vmatprep.subr.bf16.mxu0 %v450_v37  ;;  %771 = vmatprep.subr.bf16.mxu1 %v452_v41  ;;  %v554_v37 = vld [vmem:[#allocation3 + $0x608] sm:$0xff]  ;;  %v556_v41 = vld [vmem:[#allocation3 + $0x618] sm:$0xff] }
 0x174   :  { %686 = vmatpush1.bf16.msra.mxu0 %v449_v44  ;;  %772 = vmatpush1.bf16.msra.mxu1 %v451_v45  ;;  %v553_v44 = vld [vmem:[#allocation3 + $0x600] sm:$0xff]  ;;  %v555_v45 = vld [vmem:[#allocation3 + $0x610] sm:$0xff] }
 0x175   :  { %687 = vmatprep.subr.bf16.mxu0 %v458_v46  ;;  %773 = vmatprep.subr.bf16.mxu1 %v460_v47  ;;  %v562_v46 = vld [vmem:[#allocation3 + $0x648] sm:$0xff]  ;;  %v564_v47 = vld [vmem:[#allocation3 + $0x658] sm:$0xff] }
 0x178   :  { %688 = vmatpush1.bf16.msra.mxu0 %v457_v48  ;;  %774 = vmatpush1.bf16.msra.mxu1 %v459_v49  ;;  %v561_v48 = vld [vmem:[#allocation3 + $0x640] sm:$0xff]  ;;  %v563_v49 = vld [vmem:[#allocation3 + $0x650] sm:$0xff] }
 0x179   :  { %689 = vmatprep.subr.bf16.mxu0 %v466_v50  ;;  %775 = vmatprep.subr.bf16.mxu1 %v468_v51  ;;  %v570_v50 = vld [vmem:[#allocation3 + $0x688] sm:$0xff]  ;;  %v572_v51 = vld [vmem:[#allocation3 + $0x698] sm:$0xff] }
 0x17c   :  { %690 = vmatpush1.bf16.msra.mxu0 %v465_v52  ;;  %776 = vmatpush1.bf16.msra.mxu1 %v467_v53  ;;  %v569_v52 = vld [vmem:[#allocation3 + $0x680] sm:$0xff]  ;;  %v571_v53 = vld [vmem:[#allocation3 + $0x690] sm:$0xff] }
 0x17d   :  { %691 = vmatprep.subr.bf16.mxu0 %v474_v54  ;;  %777 = vmatprep.subr.bf16.mxu1 %v476_v55  ;;  %v578_v54 = vld [vmem:[#allocation3 + $0x6c8] sm:$0xff]  ;;  %v580_v55 = vld [vmem:[#allocation3 + $0x6d8] sm:$0xff] }
 0x180   :  { %692 = vmatpush1.bf16.msra.mxu0 %v473_v56  ;;  %778 = vmatpush1.bf16.msra.mxu1 %v475_v57  ;;  %v577_v56 = vld [vmem:[#allocation3 + $0x6c0] sm:$0xff]  ;;  %v579_v57 = vld [vmem:[#allocation3 + $0x6d0] sm:$0xff] }
 0x181   :  { %693 = vmatprep.subr.bf16.mxu0 %v482_v58  ;;  %779 = vmatprep.subr.bf16.mxu1 %v484_v59  ;;  %v586_v58 = vld [vmem:[#allocation3 + $0x708] sm:$0xff]  ;;  %v588_v59 = vld [vmem:[#allocation3 + $0x718] sm:$0xff] }
 0x184   :  { %694 = vmatpush1.bf16.msra.mxu0 %v481_v60  ;;  %780 = vmatpush1.bf16.msra.mxu1 %v483_v61  ;;  %v585_v60 = vld [vmem:[#allocation3 + $0x700] sm:$0xff]  ;;  %v587_v61 = vld [vmem:[#allocation3 + $0x710] sm:$0xff] }
 0x185   :  { %706 = vmatprep.subr.bf16.mxu0 %v490_v62  ;;  %792 = vmatprep.subr.bf16.mxu1 %v492_v63  ;;  %v594_v62 = vld [vmem:[#allocation3 + $0x748] sm:$0xff]  ;;  %v596_v63 = vld [vmem:[#allocation3 + $0x758] sm:$0xff] }
 0x187   :  { %696 = vmatmul.mubr.bf16.vlgmr.msra.gmra.mrb[4].mxu0 %v5000_v0  ;;  %782 = vmatmul.mubr.bf16.vlgmr.msra.gmra.mrb[4].mxu1 %v5000_v0 }
 0x188   :  { %707 = vmatpush1.bf16.msra.mxu0 %v489_v1  ;;  %793 = vmatpush1.bf16.msra.mxu1 %v491_v2  ;;  %v593_v1 = vld [vmem:[#allocation3 + $0x740] sm:$0xff]  ;;  %v595_v2 = vld [vmem:[#allocation3 + $0x750] sm:$0xff] }
 0x189   :  { %708 = vmatprep.subr.bf16.mxu0 %v498_v3  ;;  %794 = vmatprep.subr.bf16.mxu1 %v500_v4  ;;  %v602_v3 = vld [vmem:[#allocation3 + $0x788] sm:$0xff]  ;;  %v604_v4 = vld [vmem:[#allocation3 + $0x798] sm:$0xff] }
 0x18a   :  { %738 = vmatprep.mubr.bf16.mxu0 %v5006_v5  ;;  %824 = vmatprep.mubr.bf16.mxu1 %v5006_v5 }
 0x18c   :  { %709 = vmatpush1.bf16.msra.mxu0 %v497_v21  ;;  %795 = vmatpush1.bf16.msra.mxu1 %v499_v29  ;;  %v601_v21 = vld [vmem:[#allocation3 + $0x780] sm:$0xff]  ;;  %v603_v29 = vld [vmem:[#allocation3 + $0x790] sm:$0xff] }
 0x18d   :  { %710 = vmatprep.subr.bf16.mxu0 %v506_v31  ;;  %796 = vmatprep.subr.bf16.mxu1 %v508_v39  ;;  %v610_v31 = vld [vmem:[#allocation3 + $0x7c8] sm:$0xff]  ;;  %v612_v39 = vld [vmem:[#allocation3 + $0x7d8] sm:$0xff] }
 0x190   :  { %711 = vmatpush1.bf16.msra.mxu0 %v505_v26  ;;  %797 = vmatpush1.bf16.msra.mxu1 %v507_v36  ;;  %v609_v26 = vld [vmem:[#allocation3 + $0x7c0] sm:$0xff]  ;;  %v611_v36 = vld [vmem:[#allocation3 + $0x7d0] sm:$0xff] }
 0x191   :  { %712 = vmatprep.subr.bf16.mxu0 %v514_v38  ;;  %798 = vmatprep.subr.bf16.mxu1 %v516_v42  ;;  %v366_v38 = vld [vmem:[#allocation3 + $0x28] sm:$0xff]  ;;  %v368_v42 = vld [vmem:[#allocation3 + $0x38] sm:$0xff] }
 0x194   :  { %713 = vmatpush1.bf16.msra.mxu0 %v513_v6  ;;  %799 = vmatpush1.bf16.msra.mxu1 %v515_v7  ;;  %v5016_v6 = vpack.c.bf16 %v355_v40, %v351_v30  ;;  %v365_v7 = vld [vmem:[#allocation3 + $0x20] sm:$0xff]  ;;  %v382_v30 = vld [vmem:[#allocation3 + $0xa8] sm:$0xff]  ;;  %v384_v40 = vld [vmem:[#allocation3 + $0xb8] sm:$0xff] }
 0x195   :  { %714 = vmatprep.subr.bf16.mxu0 %v522_v8  ;;  %800 = vmatprep.subr.bf16.mxu1 %v524_v12  ;;  %v367_v8 = vld [vmem:[#allocation3 + $0x30] sm:$0xff]  ;;  %v374_v12 = vld [vmem:[#allocation3 + $0x68] sm:$0xff] }
 0x198   :  { %715 = vmatpush1.bf16.msra.mxu0 %v521_v15  ;;  %801 = vmatpush1.bf16.msra.mxu1 %v523_v16  ;;  %v376_v15 = vld [vmem:[#allocation3 + $0x78] sm:$0xff]  ;;  %v381_v16 = vld [vmem:[#allocation3 + $0xa0] sm:$0xff] }
 0x199   :  { %716 = vmatprep.subr.bf16.mxu0 %v530_v17  ;;  %802 = vmatprep.subr.bf16.mxu1 %v532_v18  ;;  %v383_v17 = vld [vmem:[#allocation3 + $0xb0] sm:$0xff]  ;;  %v390_v18 = vld [vmem:[#allocation3 + $0xe8] sm:$0xff] }
 0x19c   :  { %717 = vmatpush1.bf16.msra.mxu0 %v529_v19  ;;  %803 = vmatpush1.bf16.msra.mxu1 %v531_v20  ;;  %v392_v19 = vld [vmem:[#allocation3 + $0xf8] sm:$0xff]  ;;  %v389_v20 = vld [vmem:[#allocation3 + $0xe0] sm:$0xff] }
 0x19d   :  { %718 = vmatprep.subr.bf16.mxu0 %v538_v23  ;;  %804 = vmatprep.subr.bf16.mxu1 %v540_v24  ;;  %v391_v23 = vld [vmem:[#allocation3 + $0xf0] sm:$0xff]  ;;  %v398_v24 = vld [vmem:[#allocation3 + $0x128] sm:$0xff] }
 0x1a0   :  { %719 = vmatpush1.bf16.msra.mxu0 %v537_v25  ;;  %805 = vmatpush1.bf16.msra.mxu1 %v539_v27  ;;  %v400_v25 = vld [vmem:[#allocation3 + $0x138] sm:$0xff]  ;;  %v399_v27 = vld [vmem:[#allocation3 + $0x130] sm:$0xff] }
 0x1a1   :  { %720 = vmatprep.subr.bf16.mxu0 %v546_v28  ;;  %806 = vmatprep.subr.bf16.mxu1 %v548_v33  ;;  %v406_v28 = vld [vmem:[#allocation3 + $0x168] sm:$0xff]  ;;  %v408_v33 = vld [vmem:[#allocation3 + $0x178] sm:$0xff] }
 0x1a4   :  { %721 = vmatpush1.bf16.msra.mxu0 %v545_v34  ;;  %807 = vmatpush1.bf16.msra.mxu1 %v547_v35  ;;  %v405_v34 = vld [vmem:[#allocation3 + $0x160] sm:$0xff]  ;;  %v407_v35 = vld [vmem:[#allocation3 + $0x170] sm:$0xff] }
 0x1a5   :  { %722 = vmatprep.subr.bf16.mxu0 %v554_v37  ;;  %808 = vmatprep.subr.bf16.mxu1 %v556_v41  ;;  %v414_v37 = vld [vmem:[#allocation3 + $0x1a8] sm:$0xff]  ;;  %v416_v41 = vld [vmem:[#allocation3 + $0x1b8] sm:$0xff] }
 0x1a8   :  { %723 = vmatpush1.bf16.msra.mxu0 %v553_v44  ;;  %809 = vmatpush1.bf16.msra.mxu1 %v555_v45  ;;  %v413_v44 = vld [vmem:[#allocation3 + $0x1a0] sm:$0xff]  ;;  %v415_v45 = vld [vmem:[#allocation3 + $0x1b0] sm:$0xff] }
 0x1a9   :  { %724 = vmatprep.subr.bf16.mxu0 %v562_v46  ;;  %810 = vmatprep.subr.bf16.mxu1 %v564_v47  ;;  %v422_v46 = vld [vmem:[#allocation3 + $0x1e8] sm:$0xff]  ;;  %v424_v47 = vld [vmem:[#allocation3 + $0x1f8] sm:$0xff] }
 0x1ac   :  { %725 = vmatpush1.bf16.msra.mxu0 %v561_v48  ;;  %811 = vmatpush1.bf16.msra.mxu1 %v563_v49  ;;  %v421_v48 = vld [vmem:[#allocation3 + $0x1e0] sm:$0xff]  ;;  %v423_v49 = vld [vmem:[#allocation3 + $0x1f0] sm:$0xff] }
 0x1ad   :  { %726 = vmatprep.subr.bf16.mxu0 %v570_v50  ;;  %812 = vmatprep.subr.bf16.mxu1 %v572_v51  ;;  %v430_v50 = vld [vmem:[#allocation3 + $0x228] sm:$0xff]  ;;  %v432_v51 = vld [vmem:[#allocation3 + $0x238] sm:$0xff] }
 0x1b0   :  { %727 = vmatpush1.bf16.msra.mxu0 %v569_v52  ;;  %813 = vmatpush1.bf16.msra.mxu1 %v571_v53  ;;  %v429_v52 = vld [vmem:[#allocation3 + $0x220] sm:$0xff]  ;;  %v431_v53 = vld [vmem:[#allocation3 + $0x230] sm:$0xff] }
 0x1b1   :  { %728 = vmatprep.subr.bf16.mxu0 %v578_v54  ;;  %814 = vmatprep.subr.bf16.mxu1 %v580_v55  ;;  %v438_v54 = vld [vmem:[#allocation3 + $0x268] sm:$0xff]  ;;  %v440_v55 = vld [vmem:[#allocation3 + $0x278] sm:$0xff] }
 0x1b4   :  { %729 = vmatpush1.bf16.msra.mxu0 %v577_v56  ;;  %815 = vmatpush1.bf16.msra.mxu1 %v579_v57  ;;  %v437_v56 = vld [vmem:[#allocation3 + $0x260] sm:$0xff]  ;;  %v439_v57 = vld [vmem:[#allocation3 + $0x270] sm:$0xff] }
 0x1b5   :  { %730 = vmatprep.subr.bf16.mxu0 %v586_v58  ;;  %816 = vmatprep.subr.bf16.mxu1 %v588_v59  ;;  %v446_v58 = vld [vmem:[#allocation3 + $0x2a8] sm:$0xff]  ;;  %v448_v59 = vld [vmem:[#allocation3 + $0x2b8] sm:$0xff] }
 0x1b8   :  { %731 = vmatpush1.bf16.msra.mxu0 %v585_v60  ;;  %817 = vmatpush1.bf16.msra.mxu1 %v587_v61  ;;  %v445_v60 = vld [vmem:[#allocation3 + $0x2a0] sm:$0xff]  ;;  %v447_v61 = vld [vmem:[#allocation3 + $0x2b0] sm:$0xff] }
 0x1b9   :  { %732 = vmatprep.subr.bf16.mxu0 %v594_v62  ;;  %818 = vmatprep.subr.bf16.mxu1 %v596_v63  ;;  %v454_v62 = vld [vmem:[#allocation3 + $0x2e8] sm:$0xff]  ;;  %v456_v63 = vld [vmem:[#allocation3 + $0x2f8] sm:$0xff] }
 0x1bc   :  { %733 = vmatpush1.bf16.msra.mxu0 %v593_v1  ;;  %819 = vmatpush1.bf16.msra.mxu1 %v595_v2  ;;  %v453_v1 = vld [vmem:[#allocation3 + $0x2e0] sm:$0xff]  ;;  %v455_v2 = vld [vmem:[#allocation3 + $0x2f0] sm:$0xff] }
 0x1bd   :  { %734 = vmatprep.subr.bf16.mxu0 %v602_v3  ;;  %820 = vmatprep.subr.bf16.mxu1 %v604_v4  ;;  %v462_v3 = vld [vmem:[#allocation3 + $0x328] sm:$0xff]  ;;  %v464_v4 = vld [vmem:[#allocation3 + $0x338] sm:$0xff] }
 0x1c0   :  { %735 = vmatpush1.bf16.msra.mxu0 %v601_v21  ;;  %821 = vmatpush1.bf16.msra.mxu1 %v603_v29  ;;  %v461_v21 = vld [vmem:[#allocation3 + $0x320] sm:$0xff]  ;;  %v463_v29 = vld [vmem:[#allocation3 + $0x330] sm:$0xff] }
 0x1c1   :  { %736 = vmatprep.subr.bf16.mxu0 %v610_v31  ;;  %822 = vmatprep.subr.bf16.mxu1 %v612_v39  ;;  %v470_v31 = vld [vmem:[#allocation3 + $0x368] sm:$0xff]  ;;  %v472_v39 = vld [vmem:[#allocation3 + $0x378] sm:$0xff] }
 0x1c4   :  { %737 = vmatpush1.bf16.msra.mxu0 %v609_v26  ;;  %823 = vmatpush1.bf16.msra.mxu1 %v611_v36  ;;  %v469_v26 = vld [vmem:[#allocation3 + $0x360] sm:$0xff]  ;;  %v471_v36 = vld [vmem:[#allocation3 + $0x370] sm:$0xff] }
 0x1c5   :  { %835 = vmatprep.subr.bf16.mxu0 %v366_v38  ;;  %921 = vmatprep.subr.bf16.mxu1 %v368_v42  ;;  %v478_v38 = vld [vmem:[#allocation3 + $0x3a8] sm:$0xff]  ;;  %v480_v42 = vld [vmem:[#allocation3 + $0x3b8] sm:$0xff] }
 0x1c7   :  { %739 = vmatmul.mubr.bf16.vlgmr.msra.gmra.mrb[4].mxu0 %v5016_v6  ;;  %825 = vmatmul.mubr.bf16.vlgmr.msra.gmra.mrb[4].mxu1 %v5016_v6 }
 0x1c8   :  { %836 = vmatpush1.bf16.msra.mxu0 %v365_v7  ;;  %922 = vmatpush1.bf16.msra.mxu1 %v367_v8  ;;  %v477_v7 = vld [vmem:[#allocation3 + $0x3a0] sm:$0xff]  ;;  %v479_v8 = vld [vmem:[#allocation3 + $0x3b0] sm:$0xff] }
 0x1c9   :  { %837 = vmatprep.subr.bf16.mxu0 %v374_v12  ;;  %923 = vmatprep.subr.bf16.mxu1 %v376_v15  ;;  %v486_v12 = vld [vmem:[#allocation3 + $0x3e8] sm:$0xff]  ;;  %v488_v15 = vld [vmem:[#allocation3 + $0x3f8] sm:$0xff] }
 0x1ca   :  { %867 = vmatprep.mubr.bf16.mxu0 %v4992_v43  ;;  %953 = vmatprep.mubr.bf16.mxu1 %v4992_v43  ;;  %v397_v43 = vld [vmem:[#allocation3 + $0x120] sm:$0xff] }
 0x1cc   :  { %838 = vmatpush1.bf16.msra.mxu0 %v373_v22  ;;  %924 = vmatpush1.bf16.msra.mxu1 %v375_v32  ;;  %v485_v22 = vld [vmem:[#allocation3 + $0x3e0] sm:$0xff]  ;;  %v487_v32 = vld [vmem:[#allocation3 + $0x3f0] sm:$0xff] }
 0x1cd   :  { %839 = vmatprep.subr.bf16.mxu0 %v382_v30  ;;  %925 = vmatprep.subr.bf16.mxu1 %v384_v40  ;;  %v494_v30 = vld [vmem:[#allocation3 + $0x428] sm:$0xff]  ;;  %v496_v40 = vld [vmem:[#allocation3 + $0x438] sm:$0xff] }
 0x1d0   :  { %840 = vmatpush1.bf16.msra.mxu0 %v381_v16  ;;  %926 = vmatpush1.bf16.msra.mxu1 %v383_v17  ;;  %v493_v16 = vld [vmem:[#allocation3 + $0x420] sm:$0xff]  ;;  %v495_v17 = vld [vmem:[#allocation3 + $0x430] sm:$0xff] }
 0x1d1   :  { %841 = vmatprep.subr.bf16.mxu0 %v390_v18  ;;  %927 = vmatprep.subr.bf16.mxu1 %v392_v19  ;;  %v502_v18 = vld [vmem:[#allocation3 + $0x468] sm:$0xff]  ;;  %v504_v19 = vld [vmem:[#allocation3 + $0x478] sm:$0xff] }
 0x1d4   :  { %842 = vmatpush1.bf16.msra.mxu0 %v389_v20  ;;  %928 = vmatpush1.bf16.msra.mxu1 %v391_v23  ;;  %v501_v20 = vld [vmem:[#allocation3 + $0x460] sm:$0xff]  ;;  %v503_v23 = vld [vmem:[#allocation3 + $0x470] sm:$0xff] }
 0x1d5   :  { %843 = vmatprep.subr.bf16.mxu0 %v398_v24  ;;  %929 = vmatprep.subr.bf16.mxu1 %v400_v25  ;;  %v510_v24 = vld [vmem:[#allocation3 + $0x4a8] sm:$0xff]  ;;  %v512_v25 = vld [vmem:[#allocation3 + $0x4b8] sm:$0xff] }
 0x1d8   :  { %844 = vmatpush1.bf16.msra.mxu0 %v397_v43  ;;  %930 = vmatpush1.bf16.msra.mxu1 %v399_v27  ;;  %v509_v43 = vld [vmem:[#allocation3 + $0x4a0] sm:$0xff]  ;;  %v511_v27 = vld [vmem:[#allocation3 + $0x4b0] sm:$0xff] }
 0x1d9   :  { %845 = vmatprep.subr.bf16.mxu0 %v406_v28  ;;  %931 = vmatprep.subr.bf16.mxu1 %v408_v33  ;;  %v518_v28 = vld [vmem:[#allocation3 + $0x4e8] sm:$0xff]  ;;  %v517_v33 = vld [vmem:[#allocation3 + $0x4e0] sm:$0xff] }
 0x1dc   :  { %846 = vmatpush1.bf16.msra.mxu0 %v405_v34  ;;  %932 = vmatpush1.bf16.msra.mxu1 %v407_v35  ;;  %v519_v34 = vld [vmem:[#allocation3 + $0x4f0] sm:$0xff]  ;;  %v526_v35 = vld [vmem:[#allocation3 + $0x528] sm:$0xff] }
 0x1dd   :  { %847 = vmatprep.subr.bf16.mxu0 %v414_v37  ;;  %933 = vmatprep.subr.bf16.mxu1 %v416_v41  ;;  %v528_v37 = vld [vmem:[#allocation3 + $0x538] sm:$0xff]  ;;  %v527_v41 = vld [vmem:[#allocation3 + $0x530] sm:$0xff] }
 0x1e0   :  { %848 = vmatpush1.bf16.msra.mxu0 %v413_v44  ;;  %934 = vmatpush1.bf16.msra.mxu1 %v415_v45  ;;  %v534_v44 = vld [vmem:[#allocation3 + $0x568] sm:$0xff]  ;;  %v536_v45 = vld [vmem:[#allocation3 + $0x578] sm:$0xff] }
 0x1e1   :  { %849 = vmatprep.subr.bf16.mxu0 %v422_v46  ;;  %935 = vmatprep.subr.bf16.mxu1 %v424_v47  ;;  %v533_v46 = vld [vmem:[#allocation3 + $0x560] sm:$0xff]  ;;  %v535_v47 = vld [vmem:[#allocation3 + $0x570] sm:$0xff] }
 0x1e4   :  { %850 = vmatpush1.bf16.msra.mxu0 %v421_v48  ;;  %936 = vmatpush1.bf16.msra.mxu1 %v423_v49  ;;  %v542_v48 = vld [vmem:[#allocation3 + $0x5a8] sm:$0xff]  ;;  %v544_v49 = vld [vmem:[#allocation3 + $0x5b8] sm:$0xff] }
 0x1e5   :  { %851 = vmatprep.subr.bf16.mxu0 %v430_v50  ;;  %937 = vmatprep.subr.bf16.mxu1 %v432_v51  ;;  %v541_v50 = vld [vmem:[#allocation3 + $0x5a0] sm:$0xff]  ;;  %v543_v51 = vld [vmem:[#allocation3 + $0x5b0] sm:$0xff] }
 0x1e8   :  { %852 = vmatpush1.bf16.msra.mxu0 %v429_v52  ;;  %938 = vmatpush1.bf16.msra.mxu1 %v431_v53  ;;  %v550_v52 = vld [vmem:[#allocation3 + $0x5e8] sm:$0xff]  ;;  %v552_v53 = vld [vmem:[#allocation3 + $0x5f8] sm:$0xff] }
 0x1e9   :  { %853 = vmatprep.subr.bf16.mxu0 %v438_v54  ;;  %939 = vmatprep.subr.bf16.mxu1 %v440_v55  ;;  %v549_v54 = vld [vmem:[#allocation3 + $0x5e0] sm:$0xff]  ;;  %v551_v55 = vld [vmem:[#allocation3 + $0x5f0] sm:$0xff] }
 0x1ec   :  { %854 = vmatpush1.bf16.msra.mxu0 %v437_v56  ;;  %940 = vmatpush1.bf16.msra.mxu1 %v439_v57  ;;  %v558_v56 = vld [vmem:[#allocation3 + $0x628] sm:$0xff]  ;;  %v560_v57 = vld [vmem:[#allocation3 + $0x638] sm:$0xff] }
 0x1ed   :  { %855 = vmatprep.subr.bf16.mxu0 %v446_v58  ;;  %941 = vmatprep.subr.bf16.mxu1 %v448_v59  ;;  %v557_v58 = vld [vmem:[#allocation3 + $0x620] sm:$0xff]  ;;  %v559_v59 = vld [vmem:[#allocation3 + $0x630] sm:$0xff] }
 0x1f0   :  { %856 = vmatpush1.bf16.msra.mxu0 %v445_v60  ;;  %942 = vmatpush1.bf16.msra.mxu1 %v447_v61  ;;  %v566_v60 = vld [vmem:[#allocation3 + $0x668] sm:$0xff]  ;;  %v568_v61 = vld [vmem:[#allocation3 + $0x678] sm:$0xff] }
 0x1f1   :  { %857 = vmatprep.subr.bf16.mxu0 %v454_v62  ;;  %943 = vmatprep.subr.bf16.mxu1 %v456_v63  ;;  %v565_v62 = vld [vmem:[#allocation3 + $0x660] sm:$0xff]  ;;  %v567_v63 = vld [vmem:[#allocation3 + $0x670] sm:$0xff] }
 0x1f4   :  { %858 = vmatpush1.bf16.msra.mxu0 %v453_v1  ;;  %944 = vmatpush1.bf16.msra.mxu1 %v455_v2  ;;  %v574_v1 = vld [vmem:[#allocation3 + $0x6a8] sm:$0xff]  ;;  %v576_v2 = vld [vmem:[#allocation3 + $0x6b8] sm:$0xff] }
 0x1f5   :  { %859 = vmatprep.subr.bf16.mxu0 %v462_v3  ;;  %945 = vmatprep.subr.bf16.mxu1 %v464_v4  ;;  %v573_v3 = vld [vmem:[#allocation3 + $0x6a0] sm:$0xff]  ;;  %v575_v4 = vld [vmem:[#allocation3 + $0x6b0] sm:$0xff] }
 0x1f8   :  { %860 = vmatpush1.bf16.msra.mxu0 %v461_v21  ;;  %946 = vmatpush1.bf16.msra.mxu1 %v463_v29  ;;  %v582_v21 = vld [vmem:[#allocation3 + $0x6e8] sm:$0xff]  ;;  %v584_v29 = vld [vmem:[#allocation3 + $0x6f8] sm:$0xff] }
 0x1f9   :  { %861 = vmatprep.subr.bf16.mxu0 %v470_v31  ;;  %947 = vmatprep.subr.bf16.mxu1 %v472_v39  ;;  %v581_v31 = vld [vmem:[#allocation3 + $0x6e0] sm:$0xff]  ;;  %v583_v39 = vld [vmem:[#allocation3 + $0x6f0] sm:$0xff] }
 0x1fc   :  { %862 = vmatpush1.bf16.msra.mxu0 %v469_v26  ;;  %948 = vmatpush1.bf16.msra.mxu1 %v471_v36  ;;  %v590_v26 = vld [vmem:[#allocation3 + $0x728] sm:$0xff]  ;;  %v592_v36 = vld [vmem:[#allocation3 + $0x738] sm:$0xff] }
 0x1fd   :  { %863 = vmatprep.subr.bf16.mxu0 %v478_v38  ;;  %949 = vmatprep.subr.bf16.mxu1 %v480_v42  ;;  %v589_v38 = vld [vmem:[#allocation3 + $0x720] sm:$0xff]  ;;  %v591_v42 = vld [vmem:[#allocation3 + $0x730] sm:$0xff] }
 0x200   :  { %864 = vmatpush1.bf16.msra.mxu0 %v477_v7  ;;  %950 = vmatpush1.bf16.msra.mxu1 %v479_v8  ;;  %v598_v7 = vld [vmem:[#allocation3 + $0x768] sm:$0xff]  ;;  %v600_v8 = vld [vmem:[#allocation3 + $0x778] sm:$0xff] }
 0x201   :  { %865 = vmatprep.subr.bf16.mxu0 %v486_v12  ;;  %951 = vmatprep.subr.bf16.mxu1 %v488_v15  ;;  %v597_v12 = vld [vmem:[#allocation3 + $0x760] sm:$0xff]  ;;  %v599_v15 = vld [vmem:[#allocation3 + $0x770] sm:$0xff] }
 0x204   :  { %866 = vmatpush1.bf16.msra.mxu0 %v485_v22  ;;  %952 = vmatpush1.bf16.msra.mxu1 %v487_v32  ;;  %v606_v22 = vld [vmem:[#allocation3 + $0x7a8] sm:$0xff]  ;;  %v608_v32 = vld [vmem:[#allocation3 + $0x7b8] sm:$0xff] }
 0x205   :  { %878 = vmatprep.subr.bf16.mxu0 %v494_v30  ;;  %964 = vmatprep.subr.bf16.mxu1 %v496_v40  ;;  %v605_v30 = vld [vmem:[#allocation3 + $0x7a0] sm:$0xff]  ;;  %v607_v40 = vld [vmem:[#allocation3 + $0x7b0] sm:$0xff] }
 0x207   :  { %868 = vmatmul.mubr.bf16.vlgmr.msra.gmra.mrb[8].mxu0 %v5000_v0  ;;  %954 = vmatmul.mubr.bf16.vlgmr.msra.gmra.mrb[8].mxu1 %v5000_v0  ;;  %v520_v0 = vld [vmem:[#allocation3 + $0x4f8] sm:$0xff] }
 0x208   :  { %879 = vmatpush1.bf16.msra.mxu0 %v493_v16  ;;  %965 = vmatpush1.bf16.msra.mxu1 %v495_v17  ;;  %v614_v16 = vld [vmem:[#allocation3 + $0x7e8] sm:$0xff]  ;;  %v616_v17 = vld [vmem:[#allocation3 + $0x7f8] sm:$0xff] }
 0x209   :  { %880 = vmatprep.subr.bf16.mxu0 %v502_v18  ;;  %966 = vmatprep.subr.bf16.mxu1 %v504_v19  ;;  %v613_v18 = vld [vmem:[#allocation3 + $0x7e0] sm:$0xff]  ;;  %v615_v19 = vld [vmem:[#allocation3 + $0x7f0] sm:$0xff] }
 0x20a   :  { %910 = vmatprep.mubr.bf16.mxu0 %v5006_v5  ;;  %996 = vmatprep.mubr.bf16.mxu1 %v5006_v5  ;;  %v525_v5 = vld [vmem:[#allocation3 + $0x520] sm:$0xff] }
 0x20c   :  { %881 = vmatpush1.bf16.msra.mxu0 %v501_v20  ;;  %967 = vmatpush1.bf16.msra.mxu1 %v503_v23  ;;  %v617_v20 = vld [vmem:[#allocation12 + $0x4] sm:$0xff] }
 0x20d   :  { %882 = vmatprep.subr.bf16.mxu0 %v510_v24  ;;  %968 = vmatprep.subr.bf16.mxu1 %v512_v25  ;;  %v626_v23 = vrot.slane %v617_v20, %v4959_v10  ;;  %v634_v24 = vrot.slane %v617_v20, %v4962_v11  ;;  %v630_v25 = vrot.slane %v617_v20, %v4965_v13 }
 0x210   :  { %883 = vmatpush1.bf16.msra.mxu0 %v509_v43  ;;  %969 = vmatpush1.bf16.msra.mxu1 %v511_v27  ;;  %v638_v43 = vrot.slane %v617_v20, %v4968_v14 }
 0x211   :  { %884 = vmatprep.subr.bf16.mxu0 %v518_v28  ;;  %970 = vmatprep.subr.bf16.mxu1 %v520_v0 }
 0x214   :  { %885 = vmatpush1.bf16.msra.mxu0 %v517_v33  ;;  %971 = vmatpush1.bf16.msra.mxu1 %v519_v34 }
 0x215   :  { %886 = vmatprep.subr.bf16.mxu0 %v526_v35  ;;  %972 = vmatprep.subr.bf16.mxu1 %v528_v37 }
 0x218   :  { %887 = vmatpush1.bf16.msra.mxu0 %v525_v5  ;;  %973 = vmatpush1.bf16.msra.mxu1 %v527_v41 }
 0x219   :  { %888 = vmatprep.subr.bf16.mxu0 %v534_v44  ;;  %974 = vmatprep.subr.bf16.mxu1 %v536_v45 }
 0x21c   :  { %889 = vmatpush1.bf16.msra.mxu0 %v533_v46  ;;  %975 = vmatpush1.bf16.msra.mxu1 %v535_v47 }
 0x21d   :  { %890 = vmatprep.subr.bf16.mxu0 %v542_v48  ;;  %976 = vmatprep.subr.bf16.mxu1 %v544_v49 }
 0x220   :  { %891 = vmatpush1.bf16.msra.mxu0 %v541_v50  ;;  %977 = vmatpush1.bf16.msra.mxu1 %v543_v51 }
 0x221   :  { %892 = vmatprep.subr.bf16.mxu0 %v550_v52  ;;  %978 = vmatprep.subr.bf16.mxu1 %v552_v53 }
 0x224   :  { %893 = vmatpush1.bf16.msra.mxu0 %v549_v54  ;;  %979 = vmatpush1.bf16.msra.mxu1 %v551_v55 }
 0x225   :  { %894 = vmatprep.subr.bf16.mxu0 %v558_v56  ;;  %980 = vmatprep.subr.bf16.mxu1 %v560_v57 }
 0x228   :  { %895 = vmatpush1.bf16.msra.mxu0 %v557_v58  ;;  %981 = vmatpush1.bf16.msra.mxu1 %v559_v59  ;;  %v5051_v58 = vsub.s32 4, %v4956_v9  ;;  %v5054_v59 = vsub.s32 6, %v4956_v9 }
 0x229   :  { %896 = vmatprep.subr.bf16.mxu0 %v566_v60  ;;  %982 = vmatprep.subr.bf16.mxu1 %v568_v61  ;;  %v5057_v60 = vsub.s32 5, %v4956_v9  ;;  %v5060_v61 = vsub.s32 7, %v4956_v9 }
 0x22c   :  { %897 = vmatpush1.bf16.msra.mxu0 %v565_v62  ;;  %983 = vmatpush1.bf16.msra.mxu1 %v567_v63  ;;  %v642_v62 = vrot.slane %v617_v20, %v5051_v58  ;;  %v650_v63 = vrot.slane %v617_v20, %v5054_v59 }
 0x22d   :  { %898 = vmatprep.subr.bf16.mxu0 %v574_v1  ;;  %984 = vmatprep.subr.bf16.mxu1 %v576_v2  ;;  %v646_v1 = vrot.slane %v617_v20, %v5057_v60  ;;  %v654_v2 = vrot.slane %v617_v20, %v5060_v61 }
 0x230   :  { %899 = vmatpush1.bf16.msra.mxu0 %v573_v3  ;;  %985 = vmatpush1.bf16.msra.mxu1 %v575_v4 }
 0x231   :  { %900 = vmatprep.subr.bf16.mxu0 %v582_v21  ;;  %986 = vmatprep.subr.bf16.mxu1 %v584_v29 }
 0x234   :  { %901 = vmatpush1.bf16.msra.mxu0 %v581_v31  ;;  %987 = vmatpush1.bf16.msra.mxu1 %v583_v39 }
 0x235   :  { %902 = vmatprep.subr.bf16.mxu0 %v590_v26  ;;  %988 = vmatprep.subr.bf16.mxu1 %v592_v36 }
 0x238   :  { %903 = vmatpush1.bf16.msra.mxu0 %v589_v38  ;;  %989 = vmatpush1.bf16.msra.mxu1 %v591_v42 }
 0x239   :  { %904 = vmatprep.subr.bf16.mxu0 %v598_v7  ;;  %990 = vmatprep.subr.bf16.mxu1 %v600_v8 }
 0x23c   :  { %905 = vmatpush1.bf16.msra.mxu0 %v597_v12  ;;  %991 = vmatpush1.bf16.msra.mxu1 %v599_v15 }
 0x23d   :  { %906 = vmatprep.subr.bf16.mxu0 %v606_v22  ;;  %992 = vmatprep.subr.bf16.mxu1 %v608_v32 }
 0x240   :  { %907 = vmatpush1.bf16.msra.mxu0 %v605_v30  ;;  %993 = vmatpush1.bf16.msra.mxu1 %v607_v40 }
 0x241   :  { %908 = vmatprep.subr.bf16.mxu0 %v614_v16  ;;  %994 = vmatprep.subr.bf16.mxu1 %v616_v17 }
 0x244   :  { %909 = vmatpush1.bf16.msra.mxu0 %v613_v18  ;;  %995 = vmatpush1.bf16.msra.mxu1 %v615_v19 }
 0x247   :  { %911 = vmatmul.mubr.bf16.vlgmr.msra.gmra.mrb[8].mxu0 %v5016_v6  ;;  %997 = vmatmul.mubr.bf16.vlgmr.msra.gmra.mrb[8].mxu1 %v5016_v6 }
 0x29a   :  { %v740_v27 = vpop.f32.mrb[4].mxu0  ;;  %v826_v28 = vpop.f32.mrb[4].mxu1 }
 0x29b   :  { %v5032_v0 = vadd.f32 %v740_v27, %v626_v23  ;;  %v5034_v33 = vadd.f32 %v826_v28, %v634_v24  ;;  %v742_v34 = vpop.f32.mrb[5].mxu0  ;;  %v828_v35 = vpop.f32.mrb[5].mxu1 }
 0x29c   :  { %v4455_v37 = vadd.f32 %v742_v34, %v630_v25  ;;  %v5036_v5 = vadd.f32 %v828_v35, %v638_v43  ;;  %v744_v6 = vpop.f32.mrb[6].mxu0  ;;  %v830_v41 = vpop.f32.mrb[6].mxu1 }
 0x29d   :  { %v1007_v44 = vmax.f32 %v5032_v0, 0.0  ;;  %v1009_v45 = vmax.f32 %v5034_v33, 0.0  ;;  %v5040_v46 = vadd.f32 %v744_v6, %v626_v23  ;;  %v5042_v47 = vadd.f32 %v830_v41, %v634_v24  ;;  %v746_v48 = vpop.f32.mrb[7].mxu0  ;;  %v832_v49 = vpop.f32.mrb[7].mxu1 }
 0x29e   :  { %v1008_v50 = vmax.f32 %v4455_v37, 0.0  ;;  %v1010_v51 = vmax.f32 %v5036_v5, 0.0  ;;  %v4457_v52 = vadd.f32 %v746_v48, %v630_v25  ;;  %v5045_v53 = vadd.f32 %v832_v49, %v638_v43 }
 0x29f   :  { %v1015_v54 = vmax.f32 %v5040_v46, 0.0  ;;  %v1017_v55 = vmax.f32 %v5042_v47, 0.0 }
 0x2a0   :  { %v1016_v56 = vmax.f32 %v4457_v52, 0.0  ;;  %v1018_v57 = vmax.f32 %v5045_v53, 0.0 }
 0x31a   :  { %v912_v3 = vpop.f32.mrb[8].mxu0  ;;  %v998_v4 = vpop.f32.mrb[8].mxu1 }
 0x31b   :  { %v5066_v21 = vadd.f32 %v912_v3, %v642_v62  ;;  %v5068_v29 = vadd.f32 %v998_v4, %v650_v63  ;;  %v914_v31 = vpop.f32.mrb[9].mxu0  ;;  %v1000_v39 = vpop.f32.mrb[9].mxu1 }
 0x31c   :  { %v5070_v26 = vadd.f32 %v914_v31, %v646_v1  ;;  %v5072_v9 = vadd.f32 %v1000_v39, %v654_v2  ;;  %v916_v36 = vpop.f32.mrb[10].mxu0  ;;  %v1002_v38 = vpop.f32.mrb[10].mxu1 }
 0x31d   :  { %v1011_v42 = vmax.f32 %v5066_v21, 0.0  ;;  %v1013_v7 = vmax.f32 %v5068_v29, 0.0  ;;  %v5076_v8 = vadd.f32 %v916_v36, %v642_v62  ;;  %v5078_v12 = vadd.f32 %v1002_v38, %v650_v63  ;;  %v918_v15 = vpop.f32.mrb[11].mxu0  ;;  %v1004_v22 = vpop.f32.mrb[11].mxu1 }
 0x31e   :  { %v1012_v32 = vmax.f32 %v5070_v26, 0.0  ;;  %v1014_v30 = vmax.f32 %v5072_v9, 0.0  ;;  %v5082_v40 = vadd.f32 %v918_v15, %v646_v1  ;;  %v5084_v16 = vadd.f32 %v1004_v22, %v654_v2 }
 0x31f   :  { %v1019_v17 = vmax.f32 %v5076_v8, 0.0  ;;  %v1021_v18 = vmax.f32 %v5078_v12, 0.0 }
 0x320   :  { %v1020_v19 = vmax.f32 %v5082_v40, 0.0  ;;  %v1022_v20 = vmax.f32 %v5084_v16, 0.0 }
 0x321   :  { %4770 = dma.done.wait [#allocation8 + $0x2], 65536 }
 0x322   :  { %4771 = vsyncadd [#allocation8 + $0x2], 4294901760  ;;  %v5090_v23 = vpack.c.bf16 %v1016_v56, %v1008_v50  ;;  %v1028_v24 = vld [vmem:[#allocation4 + $0x8] sm:$0xff]  ;;  %v1030_v25 = vld [vmem:[#allocation4 + $0x18] sm:$0xff] }
 0x323   :  { %v1027_v43 = vld [vmem:[#allocation4] sm:$0xff]  ;;  %1589 = vmatprep.subr.bf16.mxu0 %v1028_v24  ;;  %1761 = vmatprep.subr.bf16.mxu1 %v1030_v25  ;;  %v1029_v27 = vld [vmem:[#allocation4 + $0x10] sm:$0xff]  ;;  %v1036_v28 = vld [vmem:[#allocation4 + $0x48] sm:$0xff] }
 0x324   :  { %1621 = vmatprep.mubr.bf16.mxu0 %v5090_v23  ;;  %1793 = vmatprep.mubr.bf16.mxu1 %v5090_v23  ;;  %v1038_v34 = vld [vmem:[#allocation4 + $0x58] sm:$0xff]  ;;  %v1035_v35 = vld [vmem:[#allocation4 + $0x40] sm:$0xff]  ;;  %v1037_v37 = vld [vmem:[#allocation4 + $0x50] sm:$0xff] }
 0x325   :  { %1590 = vmatpush1.bf16.msra.mxu0 %v1027_v43  ;;  %1762 = vmatpush1.bf16.msra.mxu1 %v1029_v27  ;;  %v1044_v6 = vld [vmem:[#allocation4 + $0x88] sm:$0xff]  ;;  %v1046_v41 = vld [vmem:[#allocation4 + $0x98] sm:$0xff]  ;;  %v1043_v48 = vld [vmem:[#allocation4 + $0x80] sm:$0xff] }
 0x326   :  { %1591 = vmatprep.subr.bf16.mxu0 %v1036_v28  ;;  %1763 = vmatprep.subr.bf16.mxu1 %v1038_v34  ;;  %v1045_v49 = vld [vmem:[#allocation4 + $0x90] sm:$0xff]  ;;  %v1052_v50 = vld [vmem:[#allocation4 + $0xc8] sm:$0xff]  ;;  %v1054_v52 = vld [vmem:[#allocation4 + $0xd8] sm:$0xff] }
 0x327   :  { %v1051_v56 = vld [vmem:[#allocation4 + $0xc0] sm:$0xff]  ;;  %v1053_v62 = vld [vmem:[#allocation4 + $0xd0] sm:$0xff]  ;;  %v1060_v63 = vld [vmem:[#allocation4 + $0x108] sm:$0xff] }
 0x328   :  { %v1062_v1 = vld [vmem:[#allocation4 + $0x118] sm:$0xff]  ;;  %v1059_v2 = vld [vmem:[#allocation4 + $0x100] sm:$0xff]  ;;  %v1061_v3 = vld [vmem:[#allocation4 + $0x110] sm:$0xff] }
 0x329   :  { %1592 = vmatpush1.bf16.msra.mxu0 %v1035_v35  ;;  %1764 = vmatpush1.bf16.msra.mxu1 %v1037_v37  ;;  %v1068_v4 = vld [vmem:[#allocation4 + $0x148] sm:$0xff]  ;;  %v1070_v31 = vld [vmem:[#allocation4 + $0x158] sm:$0xff]  ;;  %v1067_v39 = vld [vmem:[#allocation4 + $0x140] sm:$0xff] }
 0x32a   :  { %1593 = vmatprep.subr.bf16.mxu0 %v1044_v6  ;;  %1765 = vmatprep.subr.bf16.mxu1 %v1046_v41  ;;  %v1069_v36 = vld [vmem:[#allocation4 + $0x150] sm:$0xff]  ;;  %v1076_v38 = vld [vmem:[#allocation4 + $0x188] sm:$0xff]  ;;  %v1078_v15 = vld [vmem:[#allocation4 + $0x198] sm:$0xff] }
 0x32b   :  { %v1075_v22 = vld [vmem:[#allocation4 + $0x180] sm:$0xff]  ;;  %v1077_v24 = vld [vmem:[#allocation4 + $0x190] sm:$0xff]  ;;  %v1084_v25 = vld [vmem:[#allocation4 + $0x1c8] sm:$0xff] }
 0x32c   :  { %v1086_v43 = vld [vmem:[#allocation4 + $0x1d8] sm:$0xff]  ;;  %v1083_v27 = vld [vmem:[#allocation4 + $0x1c0] sm:$0xff]  ;;  %v1085_v28 = vld [vmem:[#allocation4 + $0x1d0] sm:$0xff] }
 0x32d   :  { %1594 = vmatpush1.bf16.msra.mxu0 %v1043_v48  ;;  %1766 = vmatpush1.bf16.msra.mxu1 %v1045_v49  ;;  %v1092_v34 = vld [vmem:[#allocation4 + $0x208] sm:$0xff]  ;;  %v1094_v35 = vld [vmem:[#allocation4 + $0x218] sm:$0xff]  ;;  %v1091_v37 = vld [vmem:[#allocation4 + $0x200] sm:$0xff] }
 0x32e   :  { %1595 = vmatprep.subr.bf16.mxu0 %v1052_v50  ;;  %1767 = vmatprep.subr.bf16.mxu1 %v1054_v52  ;;  %v1093_v6 = vld [vmem:[#allocation4 + $0x210] sm:$0xff]  ;;  %v1100_v41 = vld [vmem:[#allocation4 + $0x248] sm:$0xff]  ;;  %v1102_v48 = vld [vmem:[#allocation4 + $0x258] sm:$0xff] }
 0x32f   :  { %v1099_v49 = vld [vmem:[#allocation4 + $0x240] sm:$0xff]  ;;  %v1101_v50 = vld [vmem:[#allocation4 + $0x250] sm:$0xff]  ;;  %v1108_v52 = vld [vmem:[#allocation4 + $0x288] sm:$0xff] }
 0x330   :  { %v1163_v0 = vld [vmem:[#allocation4 + $0x440] sm:$0xff]  ;;  %v1172_v46 = vld [vmem:[#allocation4 + $0x488] sm:$0xff]  ;;  %v1041_v12 = vld [vmem:[#allocation4 + $0x70] sm:$0xff] }
 0x331   :  { %1596 = vmatpush1.bf16.msra.mxu0 %v1051_v56  ;;  %1768 = vmatpush1.bf16.msra.mxu1 %v1053_v62  ;;  %v1110_v56 = vld [vmem:[#allocation4 + $0x298] sm:$0xff]  ;;  %v1107_v62 = vld [vmem:[#allocation4 + $0x280] sm:$0xff]  ;;  %v1180_v53 = vld [vmem:[#allocation4 + $0x4c8] sm:$0xff] }
 0x332   :  { %1597 = vmatprep.subr.bf16.mxu0 %v1060_v63  ;;  %1769 = vmatprep.subr.bf16.mxu1 %v1062_v1  ;;  %v1109_v63 = vld [vmem:[#allocation4 + $0x290] sm:$0xff]  ;;  %v1116_v1 = vld [vmem:[#allocation4 + $0x2c8] sm:$0xff]  ;;  %v1171_v5 = vld [vmem:[#allocation4 + $0x480] sm:$0xff] }
 0x333   :  { %v1291_v33 = vld [vmem:[#allocation4 + $0x840] sm:$0xff]  ;;  %v1300_v47 = vld [vmem:[#allocation4 + $0x888] sm:$0xff] }
 0x334   :  { %v1299_v26 = vld [vmem:[#allocation4 + $0x880] sm:$0xff]  ;;  %v1308_v40 = vld [vmem:[#allocation4 + $0x8c8] sm:$0xff] }
 0x335   :  { %1598 = vmatpush1.bf16.msra.mxu0 %v1059_v2  ;;  %1770 = vmatpush1.bf16.msra.mxu1 %v1061_v3  ;;  %v1118_v2 = vld [vmem:[#allocation4 + $0x2d8] sm:$0xff]  ;;  %v1115_v3 = vld [vmem:[#allocation4 + $0x2c0] sm:$0xff]  ;;  %v1428_v8 = vld [vmem:[#allocation4 + $0xc88] sm:$0xff] }
 0x336   :  { %1599 = vmatprep.subr.bf16.mxu0 %v1068_v4  ;;  %1771 = vmatprep.subr.bf16.mxu1 %v1070_v31  ;;  %v1117_v4 = vld [vmem:[#allocation4 + $0x2d0] sm:$0xff]  ;;  %v1124_v31 = vld [vmem:[#allocation4 + $0x308] sm:$0xff]  ;;  %v1419_v21 = vld [vmem:[#allocation4 + $0xc40] sm:$0xff] }
 0x337   :  { %v1427_v9 = vld [vmem:[#allocation4 + $0xc80] sm:$0xff]  ;;  %v1436_v16 = vld [vmem:[#allocation4 + $0xcc8] sm:$0xff] }
 0x338   :  { %v1039_v29 = vld [vmem:[#allocation4 + $0x60] sm:$0xff] }
 0x339   :  { %1600 = vmatpush1.bf16.msra.mxu0 %v1067_v39  ;;  %1772 = vmatpush1.bf16.msra.mxu1 %v1069_v36  ;;  %v1126_v39 = vld [vmem:[#allocation4 + $0x318] sm:$0xff]  ;;  %v1123_v36 = vld [vmem:[#allocation4 + $0x300] sm:$0xff] }
 0x33a   :  { %1601 = vmatprep.subr.bf16.mxu0 %v1076_v38  ;;  %1773 = vmatprep.subr.bf16.mxu1 %v1078_v15  ;;  %v1125_v38 = vld [vmem:[#allocation4 + $0x310] sm:$0xff]  ;;  %v1132_v15 = vld [vmem:[#allocation4 + $0x348] sm:$0xff] }
 0x33d   :  { %1602 = vmatpush1.bf16.msra.mxu0 %v1075_v22  ;;  %1774 = vmatpush1.bf16.msra.mxu1 %v1077_v24  ;;  %v1134_v22 = vld [vmem:[#allocation4 + $0x358] sm:$0xff]  ;;  %v1131_v24 = vld [vmem:[#allocation4 + $0x340] sm:$0xff] }
 0x33e   :  { %1603 = vmatprep.subr.bf16.mxu0 %v1084_v25  ;;  %1775 = vmatprep.subr.bf16.mxu1 %v1086_v43  ;;  %v1133_v25 = vld [vmem:[#allocation4 + $0x350] sm:$0xff]  ;;  %v1140_v43 = vld [vmem:[#allocation4 + $0x388] sm:$0xff] }
 0x341   :  { %1604 = vmatpush1.bf16.msra.mxu0 %v1083_v27  ;;  %1776 = vmatpush1.bf16.msra.mxu1 %v1085_v28  ;;  %v1142_v27 = vld [vmem:[#allocation4 + $0x398] sm:$0xff]  ;;  %v1139_v28 = vld [vmem:[#allocation4 + $0x380] sm:$0xff] }
 0x342   :  { %1605 = vmatprep.subr.bf16.mxu0 %v1092_v34  ;;  %1777 = vmatprep.subr.bf16.mxu1 %v1094_v35  ;;  %v1141_v34 = vld [vmem:[#allocation4 + $0x390] sm:$0xff]  ;;  %v1148_v35 = vld [vmem:[#allocation4 + $0x3c8] sm:$0xff] }
 0x345   :  { %1606 = vmatpush1.bf16.msra.mxu0 %v1091_v37  ;;  %1778 = vmatpush1.bf16.msra.mxu1 %v1093_v6  ;;  %v1150_v37 = vld [vmem:[#allocation4 + $0x3d8] sm:$0xff]  ;;  %v1147_v6 = vld [vmem:[#allocation4 + $0x3c0] sm:$0xff] }
 0x346   :  { %1607 = vmatprep.subr.bf16.mxu0 %v1100_v41  ;;  %1779 = vmatprep.subr.bf16.mxu1 %v1102_v48  ;;  %v1149_v41 = vld [vmem:[#allocation4 + $0x3d0] sm:$0xff]  ;;  %v1156_v48 = vld [vmem:[#allocation4 + $0x408] sm:$0xff] }
 0x349   :  { %1608 = vmatpush1.bf16.msra.mxu0 %v1099_v49  ;;  %1780 = vmatpush1.bf16.msra.mxu1 %v1101_v50  ;;  %v1158_v49 = vld [vmem:[#allocation4 + $0x418] sm:$0xff]  ;;  %v5098_v50 = vpack.c.bf16 %v1015_v54, %v1007_v44  ;;  %v1165_v44 = vld [vmem:[#allocation4 + $0x450] sm:$0xff] }
 0x34a   :  { %1609 = vmatprep.subr.bf16.mxu0 %v1108_v52  ;;  %1781 = vmatprep.subr.bf16.mxu1 %v1110_v56  ;;  %v1155_v52 = vld [vmem:[#allocation4 + $0x400] sm:$0xff]  ;;  %v1157_v56 = vld [vmem:[#allocation4 + $0x410] sm:$0xff]  ;;  %v1174_v54 = vld [vmem:[#allocation4 + $0x498] sm:$0xff] }
 0x34d   :  { %1610 = vmatpush1.bf16.msra.mxu0 %v1107_v62  ;;  %1782 = vmatpush1.bf16.msra.mxu1 %v1109_v63  ;;  %v1164_v62 = vld [vmem:[#allocation4 + $0x448] sm:$0xff]  ;;  %v1166_v63 = vld [vmem:[#allocation4 + $0x458] sm:$0xff] }
 0x34e   :  { %1611 = vmatprep.subr.bf16.mxu0 %v1116_v1  ;;  %1783 = vmatprep.subr.bf16.mxu1 %v1118_v2  ;;  %v5104_v1 = vpack.c.bf16 %v1018_v57, %v1010_v51  ;;  %v1173_v51 = vld [vmem:[#allocation4 + $0x490] sm:$0xff]  ;;  %v1182_v57 = vld [vmem:[#allocation4 + $0x4d8] sm:$0xff]  ;;  %v1179_v2 = vld [vmem:[#allocation4 + $0x4c0] sm:$0xff] }
 0x351   :  { %1612 = vmatpush1.bf16.msra.mxu0 %v1115_v3  ;;  %1784 = vmatpush1.bf16.msra.mxu1 %v1117_v4  ;;  %v1181_v3 = vld [vmem:[#allocation4 + $0x4d0] sm:$0xff]  ;;  %v1188_v4 = vld [vmem:[#allocation4 + $0x508] sm:$0xff] }
 0x352   :  { %1613 = vmatprep.subr.bf16.mxu0 %v1124_v31  ;;  %1785 = vmatprep.subr.bf16.mxu1 %v1126_v39  ;;  %v1190_v31 = vld [vmem:[#allocation4 + $0x518] sm:$0xff]  ;;  %v1187_v39 = vld [vmem:[#allocation4 + $0x500] sm:$0xff] }
 0x355   :  { %1614 = vmatpush1.bf16.msra.mxu0 %v1123_v36  ;;  %1786 = vmatpush1.bf16.msra.mxu1 %v1125_v38  ;;  %v1189_v36 = vld [vmem:[#allocation4 + $0x510] sm:$0xff]  ;;  %v1196_v38 = vld [vmem:[#allocation4 + $0x548] sm:$0xff] }
 0x356   :  { %1615 = vmatprep.subr.bf16.mxu0 %v1132_v15  ;;  %1787 = vmatprep.subr.bf16.mxu1 %v1134_v22  ;;  %v1198_v15 = vld [vmem:[#allocation4 + $0x558] sm:$0xff]  ;;  %v1195_v22 = vld [vmem:[#allocation4 + $0x540] sm:$0xff] }
 0x359   :  { %1616 = vmatpush1.bf16.msra.mxu0 %v1131_v24  ;;  %1788 = vmatpush1.bf16.msra.mxu1 %v1133_v25  ;;  %v1197_v24 = vld [vmem:[#allocation4 + $0x550] sm:$0xff]  ;;  %v1204_v25 = vld [vmem:[#allocation4 + $0x588] sm:$0xff] }
 0x35a   :  { %1617 = vmatprep.subr.bf16.mxu0 %v1140_v43  ;;  %1789 = vmatprep.subr.bf16.mxu1 %v1142_v27  ;;  %v1206_v43 = vld [vmem:[#allocation4 + $0x598] sm:$0xff]  ;;  %v1203_v27 = vld [vmem:[#allocation4 + $0x580] sm:$0xff] }
 0x35d   :  { %1618 = vmatpush1.bf16.msra.mxu0 %v1139_v28  ;;  %1790 = vmatpush1.bf16.msra.mxu1 %v1141_v34  ;;  %v1205_v28 = vld [vmem:[#allocation4 + $0x590] sm:$0xff]  ;;  %v1212_v34 = vld [vmem:[#allocation4 + $0x5c8] sm:$0xff] }
 0x35e   :  { %1619 = vmatprep.subr.bf16.mxu0 %v1148_v35  ;;  %1791 = vmatprep.subr.bf16.mxu1 %v1150_v37  ;;  %v1214_v35 = vld [vmem:[#allocation4 + $0x5d8] sm:$0xff]  ;;  %v1211_v37 = vld [vmem:[#allocation4 + $0x5c0] sm:$0xff] }
 0x361   :  { %1620 = vmatpush1.bf16.msra.mxu0 %v1147_v6  ;;  %1792 = vmatpush1.bf16.msra.mxu1 %v1149_v41  ;;  %v1213_v6 = vld [vmem:[#allocation4 + $0x5d0] sm:$0xff]  ;;  %v1220_v41 = vld [vmem:[#allocation4 + $0x608] sm:$0xff] }
 0x362   :  { %1632 = vmatprep.subr.bf16.mxu0 %v1156_v48  ;;  %1804 = vmatprep.subr.bf16.mxu1 %v1158_v49  ;;  %v1222_v48 = vld [vmem:[#allocation4 + $0x618] sm:$0xff]  ;;  %v1219_v49 = vld [vmem:[#allocation4 + $0x600] sm:$0xff] }
 0x364   :  { %1622 = vmatmul.mubr.bf16.vlgmr.msra.gmra.mrb[12].mxu0 %v5098_v50  ;;  %1794 = vmatmul.mubr.bf16.vlgmr.msra.gmra.mrb[12].mxu1 %v5098_v50 }
 0x365   :  { %1633 = vmatpush1.bf16.msra.mxu0 %v1155_v52  ;;  %1805 = vmatpush1.bf16.msra.mxu1 %v1157_v56  ;;  %v1221_v52 = vld [vmem:[#allocation4 + $0x610] sm:$0xff]  ;;  %v1228_v56 = vld [vmem:[#allocation4 + $0x648] sm:$0xff] }
 0x366   :  { %1634 = vmatprep.subr.bf16.mxu0 %v1164_v62  ;;  %1806 = vmatprep.subr.bf16.mxu1 %v1166_v63  ;;  %v1230_v62 = vld [vmem:[#allocation4 + $0x658] sm:$0xff]  ;;  %v1227_v63 = vld [vmem:[#allocation4 + $0x640] sm:$0xff] }
 0x367   :  { %1664 = vmatprep.mubr.bf16.mxu0 %v5104_v1  ;;  %1836 = vmatprep.mubr.bf16.mxu1 %v5104_v1 }
 0x369   :  { %1635 = vmatpush1.bf16.msra.mxu0 %v1163_v0  ;;  %1807 = vmatpush1.bf16.msra.mxu1 %v1165_v44  ;;  %v1229_v0 = vld [vmem:[#allocation4 + $0x650] sm:$0xff]  ;;  %v1236_v44 = vld [vmem:[#allocation4 + $0x688] sm:$0xff] }
 0x36a   :  { %1636 = vmatprep.subr.bf16.mxu0 %v1172_v46  ;;  %1808 = vmatprep.subr.bf16.mxu1 %v1174_v54  ;;  %v1238_v46 = vld [vmem:[#allocation4 + $0x698] sm:$0xff]  ;;  %v1235_v54 = vld [vmem:[#allocation4 + $0x680] sm:$0xff] }
 0x36d   :  { %1637 = vmatpush1.bf16.msra.mxu0 %v1171_v5  ;;  %1809 = vmatpush1.bf16.msra.mxu1 %v1173_v51  ;;  %v1237_v5 = vld [vmem:[#allocation4 + $0x690] sm:$0xff]  ;;  %v1244_v51 = vld [vmem:[#allocation4 + $0x6c8] sm:$0xff] }
 0x36e   :  { %1638 = vmatprep.subr.bf16.mxu0 %v1180_v53  ;;  %1810 = vmatprep.subr.bf16.mxu1 %v1182_v57  ;;  %v1246_v53 = vld [vmem:[#allocation4 + $0x6d8] sm:$0xff]  ;;  %v1243_v57 = vld [vmem:[#allocation4 + $0x6c0] sm:$0xff] }
 0x371   :  { %1639 = vmatpush1.bf16.msra.mxu0 %v1179_v2  ;;  %1811 = vmatpush1.bf16.msra.mxu1 %v1181_v3  ;;  %v1245_v2 = vld [vmem:[#allocation4 + $0x6d0] sm:$0xff]  ;;  %v1252_v3 = vld [vmem:[#allocation4 + $0x708] sm:$0xff] }
 0x372   :  { %1640 = vmatprep.subr.bf16.mxu0 %v1188_v4  ;;  %1812 = vmatprep.subr.bf16.mxu1 %v1190_v31  ;;  %v1254_v4 = vld [vmem:[#allocation4 + $0x718] sm:$0xff]  ;;  %v1251_v31 = vld [vmem:[#allocation4 + $0x700] sm:$0xff] }
 0x375   :  { %1641 = vmatpush1.bf16.msra.mxu0 %v1187_v39  ;;  %1813 = vmatpush1.bf16.msra.mxu1 %v1189_v36  ;;  %v1253_v39 = vld [vmem:[#allocation4 + $0x710] sm:$0xff]  ;;  %v1260_v36 = vld [vmem:[#allocation4 + $0x748] sm:$0xff] }
 0x376   :  { %1642 = vmatprep.subr.bf16.mxu0 %v1196_v38  ;;  %1814 = vmatprep.subr.bf16.mxu1 %v1198_v15  ;;  %v1262_v38 = vld [vmem:[#allocation4 + $0x758] sm:$0xff]  ;;  %v1259_v15 = vld [vmem:[#allocation4 + $0x740] sm:$0xff] }
 0x379   :  { %1643 = vmatpush1.bf16.msra.mxu0 %v1195_v22  ;;  %1815 = vmatpush1.bf16.msra.mxu1 %v1197_v24  ;;  %v1261_v22 = vld [vmem:[#allocation4 + $0x750] sm:$0xff]  ;;  %v1268_v24 = vld [vmem:[#allocation4 + $0x788] sm:$0xff] }
 0x37a   :  { %1644 = vmatprep.subr.bf16.mxu0 %v1204_v25  ;;  %1816 = vmatprep.subr.bf16.mxu1 %v1206_v43  ;;  %v1270_v25 = vld [vmem:[#allocation4 + $0x798] sm:$0xff]  ;;  %v1267_v43 = vld [vmem:[#allocation4 + $0x780] sm:$0xff] }
 0x37d   :  { %1645 = vmatpush1.bf16.msra.mxu0 %v1203_v27  ;;  %1817 = vmatpush1.bf16.msra.mxu1 %v1205_v28  ;;  %v1269_v27 = vld [vmem:[#allocation4 + $0x790] sm:$0xff]  ;;  %v1276_v28 = vld [vmem:[#allocation4 + $0x7c8] sm:$0xff] }
 0x37e   :  { %1646 = vmatprep.subr.bf16.mxu0 %v1212_v34  ;;  %1818 = vmatprep.subr.bf16.mxu1 %v1214_v35  ;;  %v1278_v34 = vld [vmem:[#allocation4 + $0x7d8] sm:$0xff]  ;;  %v1275_v35 = vld [vmem:[#allocation4 + $0x7c0] sm:$0xff] }
 0x381   :  { %1647 = vmatpush1.bf16.msra.mxu0 %v1211_v37  ;;  %1819 = vmatpush1.bf16.msra.mxu1 %v1213_v6  ;;  %v1277_v37 = vld [vmem:[#allocation4 + $0x7d0] sm:$0xff]  ;;  %v1284_v6 = vld [vmem:[#allocation4 + $0x808] sm:$0xff] }
 0x382   :  { %1648 = vmatprep.subr.bf16.mxu0 %v1220_v41  ;;  %1820 = vmatprep.subr.bf16.mxu1 %v1222_v48  ;;  %v1286_v41 = vld [vmem:[#allocation4 + $0x818] sm:$0xff]  ;;  %v5114_v48 = vpack.c.bf16 %v1017_v55, %v1009_v45  ;;  %v1293_v45 = vld [vmem:[#allocation4 + $0x850] sm:$0xff] }
 0x383   :  { %v1302_v55 = vld [vmem:[#allocation4 + $0x898] sm:$0xff] }
 0x385   :  { %1649 = vmatpush1.bf16.msra.mxu0 %v1219_v49  ;;  %1821 = vmatpush1.bf16.msra.mxu1 %v1221_v52  ;;  %v1283_v49 = vld [vmem:[#allocation4 + $0x800] sm:$0xff]  ;;  %v1285_v52 = vld [vmem:[#allocation4 + $0x810] sm:$0xff] }
 0x386   :  { %1650 = vmatprep.subr.bf16.mxu0 %v1228_v56  ;;  %1822 = vmatprep.subr.bf16.mxu1 %v1230_v62  ;;  %v1292_v56 = vld [vmem:[#allocation4 + $0x848] sm:$0xff]  ;;  %v1294_v62 = vld [vmem:[#allocation4 + $0x858] sm:$0xff] }
 0x389   :  { %1651 = vmatpush1.bf16.msra.mxu0 %v1227_v63  ;;  %1823 = vmatpush1.bf16.msra.mxu1 %v1229_v0  ;;  %v5120_v63 = vpack.c.bf16 %v1020_v19, %v1012_v32  ;;  %v1301_v32 = vld [vmem:[#allocation4 + $0x890] sm:$0xff]  ;;  %v1310_v19 = vld [vmem:[#allocation4 + $0x8d8] sm:$0xff]  ;;  %v1307_v0 = vld [vmem:[#allocation4 + $0x8c0] sm:$0xff] }
 0x38a   :  { %1652 = vmatprep.subr.bf16.mxu0 %v1236_v44  ;;  %1824 = vmatprep.subr.bf16.mxu1 %v1238_v46  ;;  %v1309_v44 = vld [vmem:[#allocation4 + $0x8d0] sm:$0xff]  ;;  %v1316_v46 = vld [vmem:[#allocation4 + $0x908] sm:$0xff] }
 0x38d   :  { %1653 = vmatpush1.bf16.msra.mxu0 %v1235_v54  ;;  %1825 = vmatpush1.bf16.msra.mxu1 %v1237_v5  ;;  %v1318_v54 = vld [vmem:[#allocation4 + $0x918] sm:$0xff]  ;;  %v1315_v5 = vld [vmem:[#allocation4 + $0x900] sm:$0xff] }
 0x38e   :  { %1654 = vmatprep.subr.bf16.mxu0 %v1244_v51  ;;  %1826 = vmatprep.subr.bf16.mxu1 %v1246_v53  ;;  %v1317_v51 = vld [vmem:[#allocation4 + $0x910] sm:$0xff]  ;;  %v1324_v53 = vld [vmem:[#allocation4 + $0x948] sm:$0xff] }
 0x391   :  { %1655 = vmatpush1.bf16.msra.mxu0 %v1243_v57  ;;  %1827 = vmatpush1.bf16.msra.mxu1 %v1245_v2  ;;  %v1326_v57 = vld [vmem:[#allocation4 + $0x958] sm:$0xff]  ;;  %v1323_v2 = vld [vmem:[#allocation4 + $0x940] sm:$0xff] }
 0x392   :  { %1656 = vmatprep.subr.bf16.mxu0 %v1252_v3  ;;  %1828 = vmatprep.subr.bf16.mxu1 %v1254_v4  ;;  %v1325_v3 = vld [vmem:[#allocation4 + $0x950] sm:$0xff]  ;;  %v1332_v4 = vld [vmem:[#allocation4 + $0x988] sm:$0xff] }
 0x395   :  { %1657 = vmatpush1.bf16.msra.mxu0 %v1251_v31  ;;  %1829 = vmatpush1.bf16.msra.mxu1 %v1253_v39  ;;  %v1334_v31 = vld [vmem:[#allocation4 + $0x998] sm:$0xff]  ;;  %v1331_v39 = vld [vmem:[#allocation4 + $0x980] sm:$0xff] }
 0x396   :  { %1658 = vmatprep.subr.bf16.mxu0 %v1260_v36  ;;  %1830 = vmatprep.subr.bf16.mxu1 %v1262_v38  ;;  %v1333_v36 = vld [vmem:[#allocation4 + $0x990] sm:$0xff]  ;;  %v1340_v38 = vld [vmem:[#allocation4 + $0x9c8] sm:$0xff] }
 0x399   :  { %1659 = vmatpush1.bf16.msra.mxu0 %v1259_v15  ;;  %1831 = vmatpush1.bf16.msra.mxu1 %v1261_v22  ;;  %v1342_v15 = vld [vmem:[#allocation4 + $0x9d8] sm:$0xff]  ;;  %v1339_v22 = vld [vmem:[#allocation4 + $0x9c0] sm:$0xff] }
 0x39a   :  { %1660 = vmatprep.subr.bf16.mxu0 %v1268_v24  ;;  %1832 = vmatprep.subr.bf16.mxu1 %v1270_v25  ;;  %v1341_v24 = vld [vmem:[#allocation4 + $0x9d0] sm:$0xff]  ;;  %v1348_v25 = vld [vmem:[#allocation4 + $0xa08] sm:$0xff] }
 0x39d   :  { %1661 = vmatpush1.bf16.msra.mxu0 %v1267_v43  ;;  %1833 = vmatpush1.bf16.msra.mxu1 %v1269_v27  ;;  %v1350_v43 = vld [vmem:[#allocation4 + $0xa18] sm:$0xff]  ;;  %v1347_v27 = vld [vmem:[#allocation4 + $0xa00] sm:$0xff] }
 0x39e   :  { %1662 = vmatprep.subr.bf16.mxu0 %v1276_v28  ;;  %1834 = vmatprep.subr.bf16.mxu1 %v1278_v34  ;;  %v1349_v28 = vld [vmem:[#allocation4 + $0xa10] sm:$0xff]  ;;  %v1356_v34 = vld [vmem:[#allocation4 + $0xa48] sm:$0xff] }
 0x3a1   :  { %1663 = vmatpush1.bf16.msra.mxu0 %v1275_v35  ;;  %1835 = vmatpush1.bf16.msra.mxu1 %v1277_v37  ;;  %v1358_v35 = vld [vmem:[#allocation4 + $0xa58] sm:$0xff]  ;;  %v1355_v37 = vld [vmem:[#allocation4 + $0xa40] sm:$0xff] }
 0x3a2   :  { %1675 = vmatprep.subr.bf16.mxu0 %v1284_v6  ;;  %1847 = vmatprep.subr.bf16.mxu1 %v1286_v41  ;;  %v1357_v6 = vld [vmem:[#allocation4 + $0xa50] sm:$0xff]  ;;  %v1364_v41 = vld [vmem:[#allocation4 + $0xa88] sm:$0xff] }
 0x3a4   :  { %1665 = vmatmul.mubr.bf16.vlgmr.msra.gmra.mrb[12].mxu0 %v5114_v48  ;;  %1837 = vmatmul.mubr.bf16.vlgmr.msra.gmra.mrb[12].mxu1 %v5114_v48 }
 0x3a5   :  { %1676 = vmatpush1.bf16.msra.mxu0 %v1283_v49  ;;  %1848 = vmatpush1.bf16.msra.mxu1 %v1285_v52  ;;  %v1366_v49 = vld [vmem:[#allocation4 + $0xa98] sm:$0xff]  ;;  %v1363_v52 = vld [vmem:[#allocation4 + $0xa80] sm:$0xff] }
 0x3a6   :  { %1677 = vmatprep.subr.bf16.mxu0 %v1292_v56  ;;  %1849 = vmatprep.subr.bf16.mxu1 %v1294_v62  ;;  %v1365_v56 = vld [vmem:[#allocation4 + $0xa90] sm:$0xff]  ;;  %v1372_v62 = vld [vmem:[#allocation4 + $0xac8] sm:$0xff] }
 0x3a7   :  { %1707 = vmatprep.mubr.bf16.mxu0 %v5120_v63  ;;  %1879 = vmatprep.mubr.bf16.mxu1 %v5120_v63 }
 0x3a9   :  { %1678 = vmatpush1.bf16.msra.mxu0 %v1291_v33  ;;  %1850 = vmatpush1.bf16.msra.mxu1 %v1293_v45  ;;  %v1374_v33 = vld [vmem:[#allocation4 + $0xad8] sm:$0xff]  ;;  %v1371_v45 = vld [vmem:[#allocation4 + $0xac0] sm:$0xff] }
 0x3aa   :  { %1679 = vmatprep.subr.bf16.mxu0 %v1300_v47  ;;  %1851 = vmatprep.subr.bf16.mxu1 %v1302_v55  ;;  %v1373_v47 = vld [vmem:[#allocation4 + $0xad0] sm:$0xff]  ;;  %v1380_v55 = vld [vmem:[#allocation4 + $0xb08] sm:$0xff] }
 0x3ad   :  { %1680 = vmatpush1.bf16.msra.mxu0 %v1299_v26  ;;  %1852 = vmatpush1.bf16.msra.mxu1 %v1301_v32  ;;  %v1382_v26 = vld [vmem:[#allocation4 + $0xb18] sm:$0xff]  ;;  %v1379_v32 = vld [vmem:[#allocation4 + $0xb00] sm:$0xff] }
 0x3ae   :  { %1681 = vmatprep.subr.bf16.mxu0 %v1308_v40  ;;  %1853 = vmatprep.subr.bf16.mxu1 %v1310_v19  ;;  %v1381_v40 = vld [vmem:[#allocation4 + $0xb10] sm:$0xff]  ;;  %v1388_v19 = vld [vmem:[#allocation4 + $0xb48] sm:$0xff] }
 0x3b1   :  { %1682 = vmatpush1.bf16.msra.mxu0 %v1307_v0  ;;  %1854 = vmatpush1.bf16.msra.mxu1 %v1309_v44  ;;  %v1390_v0 = vld [vmem:[#allocation4 + $0xb58] sm:$0xff]  ;;  %v1387_v44 = vld [vmem:[#allocation4 + $0xb40] sm:$0xff] }
 0x3b2   :  { %1683 = vmatprep.subr.bf16.mxu0 %v1316_v46  ;;  %1855 = vmatprep.subr.bf16.mxu1 %v1318_v54  ;;  %v1389_v46 = vld [vmem:[#allocation4 + $0xb50] sm:$0xff]  ;;  %v1396_v54 = vld [vmem:[#allocation4 + $0xb88] sm:$0xff] }
 0x3b5   :  { %1684 = vmatpush1.bf16.msra.mxu0 %v1315_v5  ;;  %1856 = vmatpush1.bf16.msra.mxu1 %v1317_v51  ;;  %v1398_v5 = vld [vmem:[#allocation4 + $0xb98] sm:$0xff]  ;;  %v1395_v51 = vld [vmem:[#allocation4 + $0xb80] sm:$0xff] }
 0x3b6   :  { %1685 = vmatprep.subr.bf16.mxu0 %v1324_v53  ;;  %1857 = vmatprep.subr.bf16.mxu1 %v1326_v57  ;;  %v1397_v53 = vld [vmem:[#allocation4 + $0xb90] sm:$0xff]  ;;  %v1404_v57 = vld [vmem:[#allocation4 + $0xbc8] sm:$0xff] }
 0x3b9   :  { %1686 = vmatpush1.bf16.msra.mxu0 %v1323_v2  ;;  %1858 = vmatpush1.bf16.msra.mxu1 %v1325_v3  ;;  %v1406_v2 = vld [vmem:[#allocation4 + $0xbd8] sm:$0xff]  ;;  %v1403_v3 = vld [vmem:[#allocation4 + $0xbc0] sm:$0xff] }
 0x3ba   :  { %1687 = vmatprep.subr.bf16.mxu0 %v1332_v4  ;;  %1859 = vmatprep.subr.bf16.mxu1 %v1334_v31  ;;  %v1405_v4 = vld [vmem:[#allocation4 + $0xbd0] sm:$0xff]  ;;  %v1412_v31 = vld [vmem:[#allocation4 + $0xc08] sm:$0xff] }
 0x3bd   :  { %1688 = vmatpush1.bf16.msra.mxu0 %v1331_v39  ;;  %1860 = vmatpush1.bf16.msra.mxu1 %v1333_v36  ;;  %v1414_v39 = vld [vmem:[#allocation4 + $0xc18] sm:$0xff]  ;;  %v5130_v36 = vpack.c.bf16 %v1019_v17, %v1011_v42  ;;  %v1421_v42 = vld [vmem:[#allocation4 + $0xc50] sm:$0xff] }
 0x3be   :  { %1689 = vmatprep.subr.bf16.mxu0 %v1340_v38  ;;  %1861 = vmatprep.subr.bf16.mxu1 %v1342_v15  ;;  %v1411_v38 = vld [vmem:[#allocation4 + $0xc00] sm:$0xff]  ;;  %v1413_v15 = vld [vmem:[#allocation4 + $0xc10] sm:$0xff]  ;;  %v1430_v17 = vld [vmem:[#allocation4 + $0xc98] sm:$0xff] }
 0x3c1   :  { %1690 = vmatpush1.bf16.msra.mxu0 %v1339_v22  ;;  %1862 = vmatpush1.bf16.msra.mxu1 %v1341_v24  ;;  %v1420_v22 = vld [vmem:[#allocation4 + $0xc48] sm:$0xff]  ;;  %v1422_v24 = vld [vmem:[#allocation4 + $0xc58] sm:$0xff] }
 0x3c2   :  { %1691 = vmatprep.subr.bf16.mxu0 %v1348_v25  ;;  %1863 = vmatprep.subr.bf16.mxu1 %v1350_v43  ;;  %v5136_v25 = vpack.c.bf16 %v1022_v20, %v1014_v30  ;;  %v1429_v30 = vld [vmem:[#allocation4 + $0xc90] sm:$0xff]  ;;  %v1438_v20 = vld [vmem:[#allocation4 + $0xcd8] sm:$0xff]  ;;  %v1435_v43 = vld [vmem:[#allocation4 + $0xcc0] sm:$0xff] }
 0x3c5   :  { %1692 = vmatpush1.bf16.msra.mxu0 %v1347_v27  ;;  %1864 = vmatpush1.bf16.msra.mxu1 %v1349_v28  ;;  %v1437_v27 = vld [vmem:[#allocation4 + $0xcd0] sm:$0xff]  ;;  %v1444_v28 = vld [vmem:[#allocation4 + $0xd08] sm:$0xff] }
 0x3c6   :  { %1693 = vmatprep.subr.bf16.mxu0 %v1356_v34  ;;  %1865 = vmatprep.subr.bf16.mxu1 %v1358_v35  ;;  %v1446_v34 = vld [vmem:[#allocation4 + $0xd18] sm:$0xff]  ;;  %v1443_v35 = vld [vmem:[#allocation4 + $0xd00] sm:$0xff] }
 0x3c9   :  { %1694 = vmatpush1.bf16.msra.mxu0 %v1355_v37  ;;  %1866 = vmatpush1.bf16.msra.mxu1 %v1357_v6  ;;  %v1445_v37 = vld [vmem:[#allocation4 + $0xd10] sm:$0xff]  ;;  %v1452_v6 = vld [vmem:[#allocation4 + $0xd48] sm:$0xff] }
 0x3ca   :  { %1695 = vmatprep.subr.bf16.mxu0 %v1364_v41  ;;  %1867 = vmatprep.subr.bf16.mxu1 %v1366_v49  ;;  %v1454_v41 = vld [vmem:[#allocation4 + $0xd58] sm:$0xff]  ;;  %v1451_v49 = vld [vmem:[#allocation4 + $0xd40] sm:$0xff] }
 0x3cd   :  { %1696 = vmatpush1.bf16.msra.mxu0 %v1363_v52  ;;  %1868 = vmatpush1.bf16.msra.mxu1 %v1365_v56  ;;  %v1453_v52 = vld [vmem:[#allocation4 + $0xd50] sm:$0xff]  ;;  %v1460_v56 = vld [vmem:[#allocation4 + $0xd88] sm:$0xff] }
 0x3ce   :  { %1697 = vmatprep.subr.bf16.mxu0 %v1372_v62  ;;  %1869 = vmatprep.subr.bf16.mxu1 %v1374_v33  ;;  %v1462_v62 = vld [vmem:[#allocation4 + $0xd98] sm:$0xff]  ;;  %v1459_v33 = vld [vmem:[#allocation4 + $0xd80] sm:$0xff] }
 0x3d1   :  { %1698 = vmatpush1.bf16.msra.mxu0 %v1371_v45  ;;  %1870 = vmatpush1.bf16.msra.mxu1 %v1373_v47  ;;  %v1461_v45 = vld [vmem:[#allocation4 + $0xd90] sm:$0xff]  ;;  %v1468_v47 = vld [vmem:[#allocation4 + $0xdc8] sm:$0xff] }
 0x3d2   :  { %1699 = vmatprep.subr.bf16.mxu0 %v1380_v55  ;;  %1871 = vmatprep.subr.bf16.mxu1 %v1382_v26  ;;  %v1470_v55 = vld [vmem:[#allocation4 + $0xdd8] sm:$0xff]  ;;  %v1467_v26 = vld [vmem:[#allocation4 + $0xdc0] sm:$0xff] }
 0x3d5   :  { %1700 = vmatpush1.bf16.msra.mxu0 %v1379_v32  ;;  %1872 = vmatpush1.bf16.msra.mxu1 %v1381_v40  ;;  %v1469_v32 = vld [vmem:[#allocation4 + $0xdd0] sm:$0xff]  ;;  %v1476_v40 = vld [vmem:[#allocation4 + $0xe08] sm:$0xff] }
 0x3d6   :  { %1701 = vmatprep.subr.bf16.mxu0 %v1388_v19  ;;  %1873 = vmatprep.subr.bf16.mxu1 %v1390_v0  ;;  %v1478_v19 = vld [vmem:[#allocation4 + $0xe18] sm:$0xff]  ;;  %v1475_v0 = vld [vmem:[#allocation4 + $0xe00] sm:$0xff] }
 0x3d9   :  { %1702 = vmatpush1.bf16.msra.mxu0 %v1387_v44  ;;  %1874 = vmatpush1.bf16.msra.mxu1 %v1389_v46  ;;  %v1477_v44 = vld [vmem:[#allocation4 + $0xe10] sm:$0xff]  ;;  %v1484_v46 = vld [vmem:[#allocation4 + $0xe48] sm:$0xff] }
 0x3da   :  { %1703 = vmatprep.subr.bf16.mxu0 %v1396_v54  ;;  %1875 = vmatprep.subr.bf16.mxu1 %v1398_v5  ;;  %v1486_v54 = vld [vmem:[#allocation4 + $0xe58] sm:$0xff]  ;;  %v1483_v5 = vld [vmem:[#allocation4 + $0xe40] sm:$0xff] }
 0x3dd   :  { %1704 = vmatpush1.bf16.msra.mxu0 %v1395_v51  ;;  %1876 = vmatpush1.bf16.msra.mxu1 %v1397_v53  ;;  %v1485_v51 = vld [vmem:[#allocation4 + $0xe50] sm:$0xff]  ;;  %v1492_v53 = vld [vmem:[#allocation4 + $0xe88] sm:$0xff] }
 0x3de   :  { %1705 = vmatprep.subr.bf16.mxu0 %v1404_v57  ;;  %1877 = vmatprep.subr.bf16.mxu1 %v1406_v2  ;;  %v1494_v57 = vld [vmem:[#allocation4 + $0xe98] sm:$0xff]  ;;  %v1491_v2 = vld [vmem:[#allocation4 + $0xe80] sm:$0xff] }
 0x3e1   :  { %1706 = vmatpush1.bf16.msra.mxu0 %v1403_v3  ;;  %1878 = vmatpush1.bf16.msra.mxu1 %v1405_v4  ;;  %v1493_v3 = vld [vmem:[#allocation4 + $0xe90] sm:$0xff]  ;;  %v1500_v4 = vld [vmem:[#allocation4 + $0xec8] sm:$0xff] }
 0x3e2   :  { %1718 = vmatprep.subr.bf16.mxu0 %v1412_v31  ;;  %1890 = vmatprep.subr.bf16.mxu1 %v1414_v39  ;;  %v1502_v31 = vld [vmem:[#allocation4 + $0xed8] sm:$0xff]  ;;  %v1499_v39 = vld [vmem:[#allocation4 + $0xec0] sm:$0xff] }
 0x3e4   :  { %1708 = vmatmul.mubr.bf16.vlgmr.msra.gmra.mrb[12].mxu0 %v5130_v36  ;;  %1880 = vmatmul.mubr.bf16.vlgmr.msra.gmra.mrb[12].mxu1 %v5130_v36 }
 0x3e5   :  { %1719 = vmatpush1.bf16.msra.mxu0 %v1411_v38  ;;  %1891 = vmatpush1.bf16.msra.mxu1 %v1413_v15  ;;  %v1501_v38 = vld [vmem:[#allocation4 + $0xed0] sm:$0xff]  ;;  %v1508_v15 = vld [vmem:[#allocation4 + $0xf08] sm:$0xff] }
 0x3e6   :  { %1720 = vmatprep.subr.bf16.mxu0 %v1420_v22  ;;  %1892 = vmatprep.subr.bf16.mxu1 %v1422_v24  ;;  %v1510_v22 = vld [vmem:[#allocation4 + $0xf18] sm:$0xff]  ;;  %v1507_v24 = vld [vmem:[#allocation4 + $0xf00] sm:$0xff] }
 0x3e7   :  { %1750 = vmatprep.mubr.bf16.mxu0 %v5136_v25  ;;  %1922 = vmatprep.mubr.bf16.mxu1 %v5136_v25 }
 0x3e9   :  { %1721 = vmatpush1.bf16.msra.mxu0 %v1419_v21  ;;  %1893 = vmatpush1.bf16.msra.mxu1 %v1421_v42  ;;  %v1509_v21 = vld [vmem:[#allocation4 + $0xf10] sm:$0xff]  ;;  %v1516_v42 = vld [vmem:[#allocation4 + $0xf48] sm:$0xff] }
 0x3ea   :  { %1722 = vmatprep.subr.bf16.mxu0 %v1428_v8  ;;  %1894 = vmatprep.subr.bf16.mxu1 %v1430_v17  ;;  %v1518_v8 = vld [vmem:[#allocation4 + $0xf58] sm:$0xff]  ;;  %v1515_v17 = vld [vmem:[#allocation4 + $0xf40] sm:$0xff] }
 0x3ed   :  { %1723 = vmatpush1.bf16.msra.mxu0 %v1427_v9  ;;  %1895 = vmatpush1.bf16.msra.mxu1 %v1429_v30  ;;  %v1517_v9 = vld [vmem:[#allocation4 + $0xf50] sm:$0xff]  ;;  %v1524_v30 = vld [vmem:[#allocation4 + $0xf88] sm:$0xff] }
 0x3ee   :  { %1724 = vmatprep.subr.bf16.mxu0 %v1436_v16  ;;  %1896 = vmatprep.subr.bf16.mxu1 %v1438_v20  ;;  %v1526_v16 = vld [vmem:[#allocation4 + $0xf98] sm:$0xff]  ;;  %v1523_v20 = vld [vmem:[#allocation4 + $0xf80] sm:$0xff] }
 0x3f1   :  { %1725 = vmatpush1.bf16.msra.mxu0 %v1435_v43  ;;  %1897 = vmatpush1.bf16.msra.mxu1 %v1437_v27  ;;  %v1525_v43 = vld [vmem:[#allocation4 + $0xf90] sm:$0xff]  ;;  %v1532_v27 = vld [vmem:[#allocation4 + $0xfc8] sm:$0xff] }
 0x3f2   :  { %1726 = vmatprep.subr.bf16.mxu0 %v1444_v28  ;;  %1898 = vmatprep.subr.bf16.mxu1 %v1446_v34  ;;  %v1534_v28 = vld [vmem:[#allocation4 + $0xfd8] sm:$0xff]  ;;  %v1531_v34 = vld [vmem:[#allocation4 + $0xfc0] sm:$0xff] }
 0x3f5   :  { %1727 = vmatpush1.bf16.msra.mxu0 %v1443_v35  ;;  %1899 = vmatpush1.bf16.msra.mxu1 %v1445_v37  ;;  %v1533_v35 = vld [vmem:[#allocation4 + $0xfd0] sm:$0xff]  ;;  %v1032_v37 = vld [vmem:[#allocation4 + $0x28] sm:$0xff] }
 0x3f6   :  { %1728 = vmatprep.subr.bf16.mxu0 %v1452_v6  ;;  %1900 = vmatprep.subr.bf16.mxu1 %v1454_v41  ;;  %v1034_v6 = vld [vmem:[#allocation4 + $0x38] sm:$0xff]  ;;  %v5146_v41 = vpack.c.bf16 %v1021_v18, %v1013_v7  ;;  %v1048_v7 = vld [vmem:[#allocation4 + $0xa8] sm:$0xff] }
 0x3f7   :  { %v1050_v18 = vld [vmem:[#allocation4 + $0xb8] sm:$0xff] }
 0x3f9   :  { %1729 = vmatpush1.bf16.msra.mxu0 %v1451_v49  ;;  %1901 = vmatpush1.bf16.msra.mxu1 %v1453_v52  ;;  %v1031_v49 = vld [vmem:[#allocation4 + $0x20] sm:$0xff]  ;;  %v1033_v52 = vld [vmem:[#allocation4 + $0x30] sm:$0xff] }
 0x3fa   :  { %1730 = vmatprep.subr.bf16.mxu0 %v1460_v56  ;;  %1902 = vmatprep.subr.bf16.mxu1 %v1462_v62  ;;  %v1040_v56 = vld [vmem:[#allocation4 + $0x68] sm:$0xff]  ;;  %v1042_v62 = vld [vmem:[#allocation4 + $0x78] sm:$0xff] }
 0x3fd   :  { %1731 = vmatpush1.bf16.msra.mxu0 %v1459_v33  ;;  %1903 = vmatpush1.bf16.msra.mxu1 %v1461_v45  ;;  %v1047_v33 = vld [vmem:[#allocation4 + $0xa0] sm:$0xff]  ;;  %v1049_v45 = vld [vmem:[#allocation4 + $0xb0] sm:$0xff] }
 0x3fe   :  { %1732 = vmatprep.subr.bf16.mxu0 %v1468_v47  ;;  %1904 = vmatprep.subr.bf16.mxu1 %v1470_v55  ;;  %v1056_v47 = vld [vmem:[#allocation4 + $0xe8] sm:$0xff]  ;;  %v1058_v55 = vld [vmem:[#allocation4 + $0xf8] sm:$0xff] }
 0x401   :  { %1733 = vmatpush1.bf16.msra.mxu0 %v1467_v26  ;;  %1905 = vmatpush1.bf16.msra.mxu1 %v1469_v32  ;;  %v1055_v26 = vld [vmem:[#allocation4 + $0xe0] sm:$0xff]  ;;  %v1057_v32 = vld [vmem:[#allocation4 + $0xf0] sm:$0xff] }
 0x402   :  { %1734 = vmatprep.subr.bf16.mxu0 %v1476_v40  ;;  %1906 = vmatprep.subr.bf16.mxu1 %v1478_v19  ;;  %v1064_v40 = vld [vmem:[#allocation4 + $0x128] sm:$0xff]  ;;  %v1066_v19 = vld [vmem:[#allocation4 + $0x138] sm:$0xff] }
 0x405   :  { %1735 = vmatpush1.bf16.msra.mxu0 %v1475_v0  ;;  %1907 = vmatpush1.bf16.msra.mxu1 %v1477_v44  ;;  %v1065_v0 = vld [vmem:[#allocation4 + $0x130] sm:$0xff]  ;;  %v1072_v44 = vld [vmem:[#allocation4 + $0x168] sm:$0xff] }
 0x406   :  { %1736 = vmatprep.subr.bf16.mxu0 %v1484_v46  ;;  %1908 = vmatprep.subr.bf16.mxu1 %v1486_v54  ;;  %v1074_v46 = vld [vmem:[#allocation4 + $0x178] sm:$0xff]  ;;  %v1071_v54 = vld [vmem:[#allocation4 + $0x160] sm:$0xff] }
 0x409   :  { %1737 = vmatpush1.bf16.msra.mxu0 %v1483_v5  ;;  %1909 = vmatpush1.bf16.msra.mxu1 %v1485_v51  ;;  %v1073_v5 = vld [vmem:[#allocation4 + $0x170] sm:$0xff]  ;;  %v1080_v51 = vld [vmem:[#allocation4 + $0x1a8] sm:$0xff] }
 0x40a   :  { %1738 = vmatprep.subr.bf16.mxu0 %v1492_v53  ;;  %1910 = vmatprep.subr.bf16.mxu1 %v1494_v57  ;;  %v1082_v53 = vld [vmem:[#allocation4 + $0x1b8] sm:$0xff]  ;;  %v1079_v57 = vld [vmem:[#allocation4 + $0x1a0] sm:$0xff] }
 0x40d   :  { %1739 = vmatpush1.bf16.msra.mxu0 %v1491_v2  ;;  %1911 = vmatpush1.bf16.msra.mxu1 %v1493_v3  ;;  %v1081_v2 = vld [vmem:[#allocation4 + $0x1b0] sm:$0xff]  ;;  %v1088_v3 = vld [vmem:[#allocation4 + $0x1e8] sm:$0xff] }
 0x40e   :  { %1740 = vmatprep.subr.bf16.mxu0 %v1500_v4  ;;  %1912 = vmatprep.subr.bf16.mxu1 %v1502_v31  ;;  %v1090_v4 = vld [vmem:[#allocation4 + $0x1f8] sm:$0xff]  ;;  %v1087_v31 = vld [vmem:[#allocation4 + $0x1e0] sm:$0xff] }
 0x411   :  { %1741 = vmatpush1.bf16.msra.mxu0 %v1499_v39  ;;  %1913 = vmatpush1.bf16.msra.mxu1 %v1501_v38  ;;  %v1089_v39 = vld [vmem:[#allocation4 + $0x1f0] sm:$0xff]  ;;  %v1096_v38 = vld [vmem:[#allocation4 + $0x228] sm:$0xff] }
 0x412   :  { %1742 = vmatprep.subr.bf16.mxu0 %v1508_v15  ;;  %1914 = vmatprep.subr.bf16.mxu1 %v1510_v22  ;;  %v1098_v15 = vld [vmem:[#allocation4 + $0x238] sm:$0xff]  ;;  %v1095_v22 = vld [vmem:[#allocation4 + $0x220] sm:$0xff] }
 0x415   :  { %1743 = vmatpush1.bf16.msra.mxu0 %v1507_v24  ;;  %1915 = vmatpush1.bf16.msra.mxu1 %v1509_v21  ;;  %v1097_v24 = vld [vmem:[#allocation4 + $0x230] sm:$0xff]  ;;  %v1104_v21 = vld [vmem:[#allocation4 + $0x268] sm:$0xff] }
 0x416   :  { %1744 = vmatprep.subr.bf16.mxu0 %v1516_v42  ;;  %1916 = vmatprep.subr.bf16.mxu1 %v1518_v8  ;;  %v1106_v42 = vld [vmem:[#allocation4 + $0x278] sm:$0xff]  ;;  %v1103_v8 = vld [vmem:[#allocation4 + $0x260] sm:$0xff] }
 0x419   :  { %1745 = vmatpush1.bf16.msra.mxu0 %v1515_v17  ;;  %1917 = vmatpush1.bf16.msra.mxu1 %v1517_v9  ;;  %v1105_v17 = vld [vmem:[#allocation4 + $0x270] sm:$0xff]  ;;  %v1112_v9 = vld [vmem:[#allocation4 + $0x2a8] sm:$0xff] }
 0x41a   :  { %1746 = vmatprep.subr.bf16.mxu0 %v1524_v30  ;;  %1918 = vmatprep.subr.bf16.mxu1 %v1526_v16  ;;  %v1114_v30 = vld [vmem:[#allocation4 + $0x2b8] sm:$0xff]  ;;  %v1111_v16 = vld [vmem:[#allocation4 + $0x2a0] sm:$0xff] }
 0x41d   :  { %1747 = vmatpush1.bf16.msra.mxu0 %v1523_v20  ;;  %1919 = vmatpush1.bf16.msra.mxu1 %v1525_v43  ;;  %v1113_v20 = vld [vmem:[#allocation4 + $0x2b0] sm:$0xff]  ;;  %v1120_v43 = vld [vmem:[#allocation4 + $0x2e8] sm:$0xff] }
 0x41e   :  { %1748 = vmatprep.subr.bf16.mxu0 %v1532_v27  ;;  %1920 = vmatprep.subr.bf16.mxu1 %v1534_v28  ;;  %v1122_v27 = vld [vmem:[#allocation4 + $0x2f8] sm:$0xff]  ;;  %v1119_v28 = vld [vmem:[#allocation4 + $0x2e0] sm:$0xff] }
 0x421   :  { %1749 = vmatpush1.bf16.msra.mxu0 %v1531_v34  ;;  %1921 = vmatpush1.bf16.msra.mxu1 %v1533_v35  ;;  %v1121_v34 = vld [vmem:[#allocation4 + $0x2f0] sm:$0xff]  ;;  %v1128_v35 = vld [vmem:[#allocation4 + $0x328] sm:$0xff] }
 0x422   :  { %1933 = vmatprep.subr.bf16.mxu0 %v1032_v37  ;;  %2105 = vmatprep.subr.bf16.mxu1 %v1034_v6  ;;  %v1130_v37 = vld [vmem:[#allocation4 + $0x338] sm:$0xff]  ;;  %v1127_v6 = vld [vmem:[#allocation4 + $0x320] sm:$0xff] }
 0x424   :  { %1751 = vmatmul.mubr.bf16.vlgmr.msra.gmra.mrb[12].mxu0 %v5146_v41  ;;  %1923 = vmatmul.mubr.bf16.vlgmr.msra.gmra.mrb[12].mxu1 %v5146_v41 }
 0x425   :  { %1934 = vmatpush1.bf16.msra.mxu0 %v1031_v49  ;;  %2106 = vmatpush1.bf16.msra.mxu1 %v1033_v52  ;;  %v1129_v49 = vld [vmem:[#allocation4 + $0x330] sm:$0xff]  ;;  %v1136_v52 = vld [vmem:[#allocation4 + $0x368] sm:$0xff] }
 0x426   :  { %1935 = vmatprep.subr.bf16.mxu0 %v1040_v56  ;;  %2107 = vmatprep.subr.bf16.mxu1 %v1042_v62  ;;  %v1138_v56 = vld [vmem:[#allocation4 + $0x378] sm:$0xff]  ;;  %v1135_v62 = vld [vmem:[#allocation4 + $0x360] sm:$0xff] }
 0x427   :  { %1965 = vmatprep.mubr.bf16.mxu0 %v5090_v23  ;;  %2137 = vmatprep.mubr.bf16.mxu1 %v5090_v23  ;;  %v1063_v23 = vld [vmem:[#allocation4 + $0x120] sm:$0xff] }
 0x429   :  { %1936 = vmatpush1.bf16.msra.mxu0 %v1039_v29  ;;  %2108 = vmatpush1.bf16.msra.mxu1 %v1041_v12  ;;  %v1137_v29 = vld [vmem:[#allocation4 + $0x370] sm:$0xff]  ;;  %v1144_v12 = vld [vmem:[#allocation4 + $0x3a8] sm:$0xff] }
 0x42a   :  { %1937 = vmatprep.subr.bf16.mxu0 %v1048_v7  ;;  %2109 = vmatprep.subr.bf16.mxu1 %v1050_v18  ;;  %v1146_v7 = vld [vmem:[#allocation4 + $0x3b8] sm:$0xff]  ;;  %v1143_v18 = vld [vmem:[#allocation4 + $0x3a0] sm:$0xff] }
 0x42d   :  { %1938 = vmatpush1.bf16.msra.mxu0 %v1047_v33  ;;  %2110 = vmatpush1.bf16.msra.mxu1 %v1049_v45  ;;  %v1145_v33 = vld [vmem:[#allocation4 + $0x3b0] sm:$0xff]  ;;  %v1152_v45 = vld [vmem:[#allocation4 + $0x3e8] sm:$0xff] }
 0x42e   :  { %1939 = vmatprep.subr.bf16.mxu0 %v1056_v47  ;;  %2111 = vmatprep.subr.bf16.mxu1 %v1058_v55  ;;  %v1154_v47 = vld [vmem:[#allocation4 + $0x3f8] sm:$0xff]  ;;  %v1151_v55 = vld [vmem:[#allocation4 + $0x3e0] sm:$0xff] }
 0x431   :  { %1940 = vmatpush1.bf16.msra.mxu0 %v1055_v26  ;;  %2112 = vmatpush1.bf16.msra.mxu1 %v1057_v32  ;;  %v1153_v26 = vld [vmem:[#allocation4 + $0x3f0] sm:$0xff]  ;;  %v1160_v32 = vld [vmem:[#allocation4 + $0x428] sm:$0xff] }
 0x432   :  { %1941 = vmatprep.subr.bf16.mxu0 %v1064_v40  ;;  %2113 = vmatprep.subr.bf16.mxu1 %v1066_v19  ;;  %v1162_v40 = vld [vmem:[#allocation4 + $0x438] sm:$0xff]  ;;  %v1159_v19 = vld [vmem:[#allocation4 + $0x420] sm:$0xff] }
 0x435   :  { %1942 = vmatpush1.bf16.msra.mxu0 %v1063_v23  ;;  %2114 = vmatpush1.bf16.msra.mxu1 %v1065_v0  ;;  %v1161_v23 = vld [vmem:[#allocation4 + $0x430] sm:$0xff]  ;;  %v1168_v0 = vld [vmem:[#allocation4 + $0x468] sm:$0xff] }
 0x436   :  { %1943 = vmatprep.subr.bf16.mxu0 %v1072_v44  ;;  %2115 = vmatprep.subr.bf16.mxu1 %v1074_v46  ;;  %v1170_v44 = vld [vmem:[#allocation4 + $0x478] sm:$0xff]  ;;  %v1167_v46 = vld [vmem:[#allocation4 + $0x460] sm:$0xff] }
 0x439   :  { %1944 = vmatpush1.bf16.msra.mxu0 %v1071_v54  ;;  %2116 = vmatpush1.bf16.msra.mxu1 %v1073_v5  ;;  %v1169_v54 = vld [vmem:[#allocation4 + $0x470] sm:$0xff]  ;;  %v1176_v5 = vld [vmem:[#allocation4 + $0x4a8] sm:$0xff] }
 0x43a   :  { %1945 = vmatprep.subr.bf16.mxu0 %v1080_v51  ;;  %2117 = vmatprep.subr.bf16.mxu1 %v1082_v53  ;;  %v1178_v51 = vld [vmem:[#allocation4 + $0x4b8] sm:$0xff]  ;;  %v1175_v53 = vld [vmem:[#allocation4 + $0x4a0] sm:$0xff] }
 0x43d   :  { %1946 = vmatpush1.bf16.msra.mxu0 %v1079_v57  ;;  %2118 = vmatpush1.bf16.msra.mxu1 %v1081_v2  ;;  %v1177_v57 = vld [vmem:[#allocation4 + $0x4b0] sm:$0xff]  ;;  %v1184_v2 = vld [vmem:[#allocation4 + $0x4e8] sm:$0xff] }
 0x43e   :  { %1947 = vmatprep.subr.bf16.mxu0 %v1088_v3  ;;  %2119 = vmatprep.subr.bf16.mxu1 %v1090_v4  ;;  %v1183_v3 = vld [vmem:[#allocation4 + $0x4e0] sm:$0xff]  ;;  %v1185_v4 = vld [vmem:[#allocation4 + $0x4f0] sm:$0xff] }
 0x441   :  { %1948 = vmatpush1.bf16.msra.mxu0 %v1087_v31  ;;  %2120 = vmatpush1.bf16.msra.mxu1 %v1089_v39  ;;  %v1192_v31 = vld [vmem:[#allocation4 + $0x528] sm:$0xff]  ;;  %v1194_v39 = vld [vmem:[#allocation4 + $0x538] sm:$0xff] }
 0x442   :  { %1949 = vmatprep.subr.bf16.mxu0 %v1096_v38  ;;  %2121 = vmatprep.subr.bf16.mxu1 %v1098_v15  ;;  %v1193_v38 = vld [vmem:[#allocation4 + $0x530] sm:$0xff]  ;;  %v1200_v15 = vld [vmem:[#allocation4 + $0x568] sm:$0xff] }
 0x445   :  { %1950 = vmatpush1.bf16.msra.mxu0 %v1095_v22  ;;  %2122 = vmatpush1.bf16.msra.mxu1 %v1097_v24  ;;  %v1202_v22 = vld [vmem:[#allocation4 + $0x578] sm:$0xff]  ;;  %v1199_v24 = vld [vmem:[#allocation4 + $0x560] sm:$0xff] }
 0x446   :  { %1951 = vmatprep.subr.bf16.mxu0 %v1104_v21  ;;  %2123 = vmatprep.subr.bf16.mxu1 %v1106_v42  ;;  %v1201_v21 = vld [vmem:[#allocation4 + $0x570] sm:$0xff]  ;;  %v1208_v42 = vld [vmem:[#allocation4 + $0x5a8] sm:$0xff] }
 0x449   :  { %1952 = vmatpush1.bf16.msra.mxu0 %v1103_v8  ;;  %2124 = vmatpush1.bf16.msra.mxu1 %v1105_v17  ;;  %v1210_v8 = vld [vmem:[#allocation4 + $0x5b8] sm:$0xff]  ;;  %v1207_v17 = vld [vmem:[#allocation4 + $0x5a0] sm:$0xff] }
 0x44a   :  { %1953 = vmatprep.subr.bf16.mxu0 %v1112_v9  ;;  %2125 = vmatprep.subr.bf16.mxu1 %v1114_v30  ;;  %v1209_v9 = vld [vmem:[#allocation4 + $0x5b0] sm:$0xff]  ;;  %v1216_v30 = vld [vmem:[#allocation4 + $0x5e8] sm:$0xff] }
 0x44d   :  { %1954 = vmatpush1.bf16.msra.mxu0 %v1111_v16  ;;  %2126 = vmatpush1.bf16.msra.mxu1 %v1113_v20  ;;  %v1218_v16 = vld [vmem:[#allocation4 + $0x5f8] sm:$0xff]  ;;  %v1215_v20 = vld [vmem:[#allocation4 + $0x5e0] sm:$0xff] }
 0x44e   :  { %1955 = vmatprep.subr.bf16.mxu0 %v1120_v43  ;;  %2127 = vmatprep.subr.bf16.mxu1 %v1122_v27  ;;  %v1217_v43 = vld [vmem:[#allocation4 + $0x5f0] sm:$0xff]  ;;  %v1224_v27 = vld [vmem:[#allocation4 + $0x628] sm:$0xff] }
 0x451   :  { %1956 = vmatpush1.bf16.msra.mxu0 %v1119_v28  ;;  %2128 = vmatpush1.bf16.msra.mxu1 %v1121_v34  ;;  %v1226_v28 = vld [vmem:[#allocation4 + $0x638] sm:$0xff]  ;;  %v1223_v34 = vld [vmem:[#allocation4 + $0x620] sm:$0xff] }
 0x452   :  { %1957 = vmatprep.subr.bf16.mxu0 %v1128_v35  ;;  %2129 = vmatprep.subr.bf16.mxu1 %v1130_v37  ;;  %v1225_v35 = vld [vmem:[#allocation4 + $0x630] sm:$0xff]  ;;  %v1232_v37 = vld [vmem:[#allocation4 + $0x668] sm:$0xff] }
 0x455   :  { %1958 = vmatpush1.bf16.msra.mxu0 %v1127_v6  ;;  %2130 = vmatpush1.bf16.msra.mxu1 %v1129_v49  ;;  %v1234_v6 = vld [vmem:[#allocation4 + $0x678] sm:$0xff]  ;;  %v1231_v49 = vld [vmem:[#allocation4 + $0x660] sm:$0xff] }
 0x456   :  { %1959 = vmatprep.subr.bf16.mxu0 %v1136_v52  ;;  %2131 = vmatprep.subr.bf16.mxu1 %v1138_v56  ;;  %v1233_v52 = vld [vmem:[#allocation4 + $0x670] sm:$0xff]  ;;  %v1240_v56 = vld [vmem:[#allocation4 + $0x6a8] sm:$0xff] }
 0x459   :  { %1960 = vmatpush1.bf16.msra.mxu0 %v1135_v62  ;;  %2132 = vmatpush1.bf16.msra.mxu1 %v1137_v29  ;;  %v1242_v62 = vld [vmem:[#allocation4 + $0x6b8] sm:$0xff]  ;;  %v1239_v29 = vld [vmem:[#allocation4 + $0x6a0] sm:$0xff] }
 0x45a   :  { %1961 = vmatprep.subr.bf16.mxu0 %v1144_v12  ;;  %2133 = vmatprep.subr.bf16.mxu1 %v1146_v7  ;;  %v1241_v12 = vld [vmem:[#allocation4 + $0x6b0] sm:$0xff]  ;;  %v1248_v7 = vld [vmem:[#allocation4 + $0x6e8] sm:$0xff] }
 0x45d   :  { %1962 = vmatpush1.bf16.msra.mxu0 %v1143_v18  ;;  %2134 = vmatpush1.bf16.msra.mxu1 %v1145_v33  ;;  %v1250_v18 = vld [vmem:[#allocation4 + $0x6f8] sm:$0xff]  ;;  %v1247_v33 = vld [vmem:[#allocation4 + $0x6e0] sm:$0xff] }
 0x45e   :  { %1963 = vmatprep.subr.bf16.mxu0 %v1152_v45  ;;  %2135 = vmatprep.subr.bf16.mxu1 %v1154_v47  ;;  %v1249_v45 = vld [vmem:[#allocation4 + $0x6f0] sm:$0xff]  ;;  %v1256_v47 = vld [vmem:[#allocation4 + $0x728] sm:$0xff] }
 0x461   :  { %1964 = vmatpush1.bf16.msra.mxu0 %v1151_v55  ;;  %2136 = vmatpush1.bf16.msra.mxu1 %v1153_v26  ;;  %v1258_v55 = vld [vmem:[#allocation4 + $0x738] sm:$0xff]  ;;  %v1255_v26 = vld [vmem:[#allocation4 + $0x720] sm:$0xff] }
 0x462   :  { %1976 = vmatprep.subr.bf16.mxu0 %v1160_v32  ;;  %2148 = vmatprep.subr.bf16.mxu1 %v1162_v40  ;;  %v1257_v32 = vld [vmem:[#allocation4 + $0x730] sm:$0xff]  ;;  %v1264_v40 = vld [vmem:[#allocation4 + $0x768] sm:$0xff] }
 0x464   :  { %1966 = vmatmul.mubr.bf16.vlgmr.msra.gmra.mrb[16].mxu0 %v5098_v50  ;;  %2138 = vmatmul.mubr.bf16.vlgmr.msra.gmra.mrb[16].mxu1 %v5098_v50  ;;  %v1186_v50 = vld [vmem:[#allocation4 + $0x4f8] sm:$0xff] }
 0x465   :  { %1977 = vmatpush1.bf16.msra.mxu0 %v1159_v19  ;;  %2149 = vmatpush1.bf16.msra.mxu1 %v1161_v23  ;;  %v1266_v19 = vld [vmem:[#allocation4 + $0x778] sm:$0xff]  ;;  %v1263_v23 = vld [vmem:[#allocation4 + $0x760] sm:$0xff] }
 0x466   :  { %1978 = vmatprep.subr.bf16.mxu0 %v1168_v0  ;;  %2150 = vmatprep.subr.bf16.mxu1 %v1170_v44  ;;  %v1265_v0 = vld [vmem:[#allocation4 + $0x770] sm:$0xff]  ;;  %v1272_v44 = vld [vmem:[#allocation4 + $0x7a8] sm:$0xff] }
 0x467   :  { %2008 = vmatprep.mubr.bf16.mxu0 %v5104_v1  ;;  %2180 = vmatprep.mubr.bf16.mxu1 %v5104_v1  ;;  %v1191_v1 = vld [vmem:[#allocation4 + $0x520] sm:$0xff] }
 0x469   :  { %1979 = vmatpush1.bf16.msra.mxu0 %v1167_v46  ;;  %2151 = vmatpush1.bf16.msra.mxu1 %v1169_v54  ;;  %v1274_v46 = vld [vmem:[#allocation4 + $0x7b8] sm:$0xff]  ;;  %v1271_v54 = vld [vmem:[#allocation4 + $0x7a0] sm:$0xff] }
 0x46a   :  { %1980 = vmatprep.subr.bf16.mxu0 %v1176_v5  ;;  %2152 = vmatprep.subr.bf16.mxu1 %v1178_v51  ;;  %v1273_v5 = vld [vmem:[#allocation4 + $0x7b0] sm:$0xff]  ;;  %v1280_v51 = vld [vmem:[#allocation4 + $0x7e8] sm:$0xff] }
 0x46d   :  { %1981 = vmatpush1.bf16.msra.mxu0 %v1175_v53  ;;  %2153 = vmatpush1.bf16.msra.mxu1 %v1177_v57  ;;  %v1282_v53 = vld [vmem:[#allocation4 + $0x7f8] sm:$0xff]  ;;  %v1279_v57 = vld [vmem:[#allocation4 + $0x7e0] sm:$0xff] }
 0x46e   :  { %1982 = vmatprep.subr.bf16.mxu0 %v1184_v2  ;;  %2154 = vmatprep.subr.bf16.mxu1 %v1186_v50  ;;  %v1281_v2 = vld [vmem:[#allocation4 + $0x7f0] sm:$0xff]  ;;  %v1288_v50 = vld [vmem:[#allocation4 + $0x828] sm:$0xff] }
 0x471   :  { %1983 = vmatpush1.bf16.msra.mxu0 %v1183_v3  ;;  %2155 = vmatpush1.bf16.msra.mxu1 %v1185_v4  ;;  %v1290_v3 = vld [vmem:[#allocation4 + $0x838] sm:$0xff]  ;;  %v1287_v4 = vld [vmem:[#allocation4 + $0x820] sm:$0xff] }
 0x472   :  { %1984 = vmatprep.subr.bf16.mxu0 %v1192_v31  ;;  %2156 = vmatprep.subr.bf16.mxu1 %v1194_v39  ;;  %v1289_v31 = vld [vmem:[#allocation4 + $0x830] sm:$0xff]  ;;  %v1296_v39 = vld [vmem:[#allocation4 + $0x868] sm:$0xff] }
 0x475   :  { %1985 = vmatpush1.bf16.msra.mxu0 %v1191_v1  ;;  %2157 = vmatpush1.bf16.msra.mxu1 %v1193_v38  ;;  %v1298_v1 = vld [vmem:[#allocation4 + $0x878] sm:$0xff]  ;;  %v1295_v38 = vld [vmem:[#allocation4 + $0x860] sm:$0xff] }
 0x476   :  { %1986 = vmatprep.subr.bf16.mxu0 %v1200_v15  ;;  %2158 = vmatprep.subr.bf16.mxu1 %v1202_v22  ;;  %v1297_v15 = vld [vmem:[#allocation4 + $0x870] sm:$0xff]  ;;  %v1304_v22 = vld [vmem:[#allocation4 + $0x8a8] sm:$0xff] }
 0x479   :  { %1987 = vmatpush1.bf16.msra.mxu0 %v1199_v24  ;;  %2159 = vmatpush1.bf16.msra.mxu1 %v1201_v21  ;;  %v1306_v24 = vld [vmem:[#allocation4 + $0x8b8] sm:$0xff]  ;;  %v1303_v21 = vld [vmem:[#allocation4 + $0x8a0] sm:$0xff] }
 0x47a   :  { %1988 = vmatprep.subr.bf16.mxu0 %v1208_v42  ;;  %2160 = vmatprep.subr.bf16.mxu1 %v1210_v8  ;;  %v1305_v42 = vld [vmem:[#allocation4 + $0x8b0] sm:$0xff]  ;;  %v1312_v8 = vld [vmem:[#allocation4 + $0x8e8] sm:$0xff] }
 0x47d   :  { %1989 = vmatpush1.bf16.msra.mxu0 %v1207_v17  ;;  %2161 = vmatpush1.bf16.msra.mxu1 %v1209_v9  ;;  %v1311_v17 = vld [vmem:[#allocation4 + $0x8e0] sm:$0xff]  ;;  %v1313_v9 = vld [vmem:[#allocation4 + $0x8f0] sm:$0xff] }
 0x47e   :  { %1990 = vmatprep.subr.bf16.mxu0 %v1216_v30  ;;  %2162 = vmatprep.subr.bf16.mxu1 %v1218_v16  ;;  %v1320_v30 = vld [vmem:[#allocation4 + $0x928] sm:$0xff]  ;;  %v1322_v16 = vld [vmem:[#allocation4 + $0x938] sm:$0xff] }
 0x481   :  { %1991 = vmatpush1.bf16.msra.mxu0 %v1215_v20  ;;  %2163 = vmatpush1.bf16.msra.mxu1 %v1217_v43  ;;  %v1321_v20 = vld [vmem:[#allocation4 + $0x930] sm:$0xff]  ;;  %v1328_v43 = vld [vmem:[#allocation4 + $0x968] sm:$0xff] }
 0x482   :  { %1992 = vmatprep.subr.bf16.mxu0 %v1224_v27  ;;  %2164 = vmatprep.subr.bf16.mxu1 %v1226_v28  ;;  %v1330_v27 = vld [vmem:[#allocation4 + $0x978] sm:$0xff]  ;;  %v1327_v28 = vld [vmem:[#allocation4 + $0x960] sm:$0xff] }
 0x485   :  { %1993 = vmatpush1.bf16.msra.mxu0 %v1223_v34  ;;  %2165 = vmatpush1.bf16.msra.mxu1 %v1225_v35  ;;  %v1329_v34 = vld [vmem:[#allocation4 + $0x970] sm:$0xff]  ;;  %v1336_v35 = vld [vmem:[#allocation4 + $0x9a8] sm:$0xff] }
 0x486   :  { %1994 = vmatprep.subr.bf16.mxu0 %v1232_v37  ;;  %2166 = vmatprep.subr.bf16.mxu1 %v1234_v6  ;;  %v1338_v37 = vld [vmem:[#allocation4 + $0x9b8] sm:$0xff]  ;;  %v1335_v6 = vld [vmem:[#allocation4 + $0x9a0] sm:$0xff] }
 0x489   :  { %1995 = vmatpush1.bf16.msra.mxu0 %v1231_v49  ;;  %2167 = vmatpush1.bf16.msra.mxu1 %v1233_v52  ;;  %v1337_v49 = vld [vmem:[#allocation4 + $0x9b0] sm:$0xff]  ;;  %v1344_v52 = vld [vmem:[#allocation4 + $0x9e8] sm:$0xff] }
 0x48a   :  { %1996 = vmatprep.subr.bf16.mxu0 %v1240_v56  ;;  %2168 = vmatprep.subr.bf16.mxu1 %v1242_v62  ;;  %v1346_v56 = vld [vmem:[#allocation4 + $0x9f8] sm:$0xff]  ;;  %v1343_v62 = vld [vmem:[#allocation4 + $0x9e0] sm:$0xff] }
 0x48d   :  { %1997 = vmatpush1.bf16.msra.mxu0 %v1239_v29  ;;  %2169 = vmatpush1.bf16.msra.mxu1 %v1241_v12  ;;  %v1345_v29 = vld [vmem:[#allocation4 + $0x9f0] sm:$0xff]  ;;  %v1352_v12 = vld [vmem:[#allocation4 + $0xa28] sm:$0xff] }
 0x48e   :  { %1998 = vmatprep.subr.bf16.mxu0 %v1248_v7  ;;  %2170 = vmatprep.subr.bf16.mxu1 %v1250_v18  ;;  %v1354_v7 = vld [vmem:[#allocation4 + $0xa38] sm:$0xff]  ;;  %v1351_v18 = vld [vmem:[#allocation4 + $0xa20] sm:$0xff] }
 0x491   :  { %1999 = vmatpush1.bf16.msra.mxu0 %v1247_v33  ;;  %2171 = vmatpush1.bf16.msra.mxu1 %v1249_v45  ;;  %v1353_v33 = vld [vmem:[#allocation4 + $0xa30] sm:$0xff]  ;;  %v1360_v45 = vld [vmem:[#allocation4 + $0xa68] sm:$0xff] }
 0x492   :  { %2000 = vmatprep.subr.bf16.mxu0 %v1256_v47  ;;  %2172 = vmatprep.subr.bf16.mxu1 %v1258_v55  ;;  %v1362_v47 = vld [vmem:[#allocation4 + $0xa78] sm:$0xff]  ;;  %v1359_v55 = vld [vmem:[#allocation4 + $0xa60] sm:$0xff] }
 0x495   :  { %2001 = vmatpush1.bf16.msra.mxu0 %v1255_v26  ;;  %2173 = vmatpush1.bf16.msra.mxu1 %v1257_v32  ;;  %v1361_v26 = vld [vmem:[#allocation4 + $0xa70] sm:$0xff]  ;;  %v1368_v32 = vld [vmem:[#allocation4 + $0xaa8] sm:$0xff] }
 0x496   :  { %2002 = vmatprep.subr.bf16.mxu0 %v1264_v40  ;;  %2174 = vmatprep.subr.bf16.mxu1 %v1266_v19  ;;  %v1370_v40 = vld [vmem:[#allocation4 + $0xab8] sm:$0xff]  ;;  %v1367_v19 = vld [vmem:[#allocation4 + $0xaa0] sm:$0xff] }
 0x499   :  { %2003 = vmatpush1.bf16.msra.mxu0 %v1263_v23  ;;  %2175 = vmatpush1.bf16.msra.mxu1 %v1265_v0  ;;  %v1369_v23 = vld [vmem:[#allocation4 + $0xab0] sm:$0xff]  ;;  %v1376_v0 = vld [vmem:[#allocation4 + $0xae8] sm:$0xff] }
 0x49a   :  { %2004 = vmatprep.subr.bf16.mxu0 %v1272_v44  ;;  %2176 = vmatprep.subr.bf16.mxu1 %v1274_v46  ;;  %v1378_v44 = vld [vmem:[#allocation4 + $0xaf8] sm:$0xff]  ;;  %v1375_v46 = vld [vmem:[#allocation4 + $0xae0] sm:$0xff] }
 0x49d   :  { %2005 = vmatpush1.bf16.msra.mxu0 %v1271_v54  ;;  %2177 = vmatpush1.bf16.msra.mxu1 %v1273_v5  ;;  %v1377_v54 = vld [vmem:[#allocation4 + $0xaf0] sm:$0xff]  ;;  %v1384_v5 = vld [vmem:[#allocation4 + $0xb28] sm:$0xff] }
 0x49e   :  { %2006 = vmatprep.subr.bf16.mxu0 %v1280_v51  ;;  %2178 = vmatprep.subr.bf16.mxu1 %v1282_v53  ;;  %v1386_v51 = vld [vmem:[#allocation4 + $0xb38] sm:$0xff]  ;;  %v1383_v53 = vld [vmem:[#allocation4 + $0xb20] sm:$0xff] }
 0x4a1   :  { %2007 = vmatpush1.bf16.msra.mxu0 %v1279_v57  ;;  %2179 = vmatpush1.bf16.msra.mxu1 %v1281_v2  ;;  %v1385_v57 = vld [vmem:[#allocation4 + $0xb30] sm:$0xff]  ;;  %v1392_v2 = vld [vmem:[#allocation4 + $0xb68] sm:$0xff] }
 0x4a2   :  { %2019 = vmatprep.subr.bf16.mxu0 %v1288_v50  ;;  %2191 = vmatprep.subr.bf16.mxu1 %v1290_v3  ;;  %v1394_v50 = vld [vmem:[#allocation4 + $0xb78] sm:$0xff]  ;;  %v1391_v3 = vld [vmem:[#allocation4 + $0xb60] sm:$0xff] }
 0x4a4   :  { %2009 = vmatmul.mubr.bf16.vlgmr.msra.gmra.mrb[16].mxu0 %v5114_v48  ;;  %2181 = vmatmul.mubr.bf16.vlgmr.msra.gmra.mrb[16].mxu1 %v5114_v48  ;;  %v1314_v48 = vld [vmem:[#allocation4 + $0x8f8] sm:$0xff] }
 0x4a5   :  { %2020 = vmatpush1.bf16.msra.mxu0 %v1287_v4  ;;  %2192 = vmatpush1.bf16.msra.mxu1 %v1289_v31  ;;  %v1393_v4 = vld [vmem:[#allocation4 + $0xb70] sm:$0xff]  ;;  %v1400_v31 = vld [vmem:[#allocation4 + $0xba8] sm:$0xff] }
 0x4a6   :  { %2021 = vmatprep.subr.bf16.mxu0 %v1296_v39  ;;  %2193 = vmatprep.subr.bf16.mxu1 %v1298_v1  ;;  %v1402_v39 = vld [vmem:[#allocation4 + $0xbb8] sm:$0xff]  ;;  %v1399_v1 = vld [vmem:[#allocation4 + $0xba0] sm:$0xff] }
 0x4a7   :  { %2051 = vmatprep.mubr.bf16.mxu0 %v5120_v63  ;;  %2223 = vmatprep.mubr.bf16.mxu1 %v5120_v63  ;;  %v1319_v63 = vld [vmem:[#allocation4 + $0x920] sm:$0xff] }
 0x4a9   :  { %2022 = vmatpush1.bf16.msra.mxu0 %v1295_v38  ;;  %2194 = vmatpush1.bf16.msra.mxu1 %v1297_v15  ;;  %v1401_v38 = vld [vmem:[#allocation4 + $0xbb0] sm:$0xff]  ;;  %v1408_v15 = vld [vmem:[#allocation4 + $0xbe8] sm:$0xff] }
 0x4aa   :  { %2023 = vmatprep.subr.bf16.mxu0 %v1304_v22  ;;  %2195 = vmatprep.subr.bf16.mxu1 %v1306_v24  ;;  %v1410_v22 = vld [vmem:[#allocation4 + $0xbf8] sm:$0xff]  ;;  %v1407_v24 = vld [vmem:[#allocation4 + $0xbe0] sm:$0xff] }
 0x4ad   :  { %2024 = vmatpush1.bf16.msra.mxu0 %v1303_v21  ;;  %2196 = vmatpush1.bf16.msra.mxu1 %v1305_v42  ;;  %v1409_v21 = vld [vmem:[#allocation4 + $0xbf0] sm:$0xff]  ;;  %v1416_v42 = vld [vmem:[#allocation4 + $0xc28] sm:$0xff] }
 0x4ae   :  { %2025 = vmatprep.subr.bf16.mxu0 %v1312_v8  ;;  %2197 = vmatprep.subr.bf16.mxu1 %v1314_v48  ;;  %v1418_v8 = vld [vmem:[#allocation4 + $0xc38] sm:$0xff]  ;;  %v1415_v48 = vld [vmem:[#allocation4 + $0xc20] sm:$0xff] }
 0x4b1   :  { %2026 = vmatpush1.bf16.msra.mxu0 %v1311_v17  ;;  %2198 = vmatpush1.bf16.msra.mxu1 %v1313_v9  ;;  %v1417_v17 = vld [vmem:[#allocation4 + $0xc30] sm:$0xff]  ;;  %v1424_v9 = vld [vmem:[#allocation4 + $0xc68] sm:$0xff] }
 0x4b2   :  { %2027 = vmatprep.subr.bf16.mxu0 %v1320_v30  ;;  %2199 = vmatprep.subr.bf16.mxu1 %v1322_v16  ;;  %v1426_v30 = vld [vmem:[#allocation4 + $0xc78] sm:$0xff]  ;;  %v1423_v16 = vld [vmem:[#allocation4 + $0xc60] sm:$0xff] }
 0x4b5   :  { %2028 = vmatpush1.bf16.msra.mxu0 %v1319_v63  ;;  %2200 = vmatpush1.bf16.msra.mxu1 %v1321_v20  ;;  %v1425_v63 = vld [vmem:[#allocation4 + $0xc70] sm:$0xff]  ;;  %v1432_v20 = vld [vmem:[#allocation4 + $0xca8] sm:$0xff] }
 0x4b6   :  { %2029 = vmatprep.subr.bf16.mxu0 %v1328_v43  ;;  %2201 = vmatprep.subr.bf16.mxu1 %v1330_v27  ;;  %v1434_v43 = vld [vmem:[#allocation4 + $0xcb8] sm:$0xff]  ;;  %v1431_v27 = vld [vmem:[#allocation4 + $0xca0] sm:$0xff] }
 0x4b9   :  { %2030 = vmatpush1.bf16.msra.mxu0 %v1327_v28  ;;  %2202 = vmatpush1.bf16.msra.mxu1 %v1329_v34  ;;  %v1433_v28 = vld [vmem:[#allocation4 + $0xcb0] sm:$0xff]  ;;  %v1440_v34 = vld [vmem:[#allocation4 + $0xce8] sm:$0xff] }
 0x4ba   :  { %2031 = vmatprep.subr.bf16.mxu0 %v1336_v35  ;;  %2203 = vmatprep.subr.bf16.mxu1 %v1338_v37  ;;  %v1439_v35 = vld [vmem:[#allocation4 + $0xce0] sm:$0xff]  ;;  %v1441_v37 = vld [vmem:[#allocation4 + $0xcf0] sm:$0xff] }
 0x4bd   :  { %2032 = vmatpush1.bf16.msra.mxu0 %v1335_v6  ;;  %2204 = vmatpush1.bf16.msra.mxu1 %v1337_v49  ;;  %v1448_v6 = vld [vmem:[#allocation4 + $0xd28] sm:$0xff]  ;;  %v1450_v49 = vld [vmem:[#allocation4 + $0xd38] sm:$0xff] }
 0x4be   :  { %2033 = vmatprep.subr.bf16.mxu0 %v1344_v52  ;;  %2205 = vmatprep.subr.bf16.mxu1 %v1346_v56  ;;  %v5164_v52 = vld [vmem:[#allocation12 + $0xc] sm:$0xff]  ;;  %v1449_v56 = vld [vmem:[#allocation4 + $0xd30] sm:$0xff] }
 0x4c1   :  { %2034 = vmatpush1.bf16.msra.mxu0 %v1343_v62  ;;  %2206 = vmatpush1.bf16.msra.mxu1 %v1345_v29  ;;  %v1456_v62 = vld [vmem:[#allocation4 + $0xd68] sm:$0xff]  ;;  %v1458_v29 = vld [vmem:[#allocation4 + $0xd78] sm:$0xff] }
 0x4c2   :  { %2035 = vmatprep.subr.bf16.mxu0 %v1352_v12  ;;  %2207 = vmatprep.subr.bf16.mxu1 %v1354_v7  ;;  %v1552_v12 = vrot.slane %v5164_v52, %v4959_v10  ;;  %v1560_v7 = vrot.slane %v5164_v52, %v4962_v11 }
 0x4c5   :  { %2036 = vmatpush1.bf16.msra.mxu0 %v1351_v18  ;;  %2208 = vmatpush1.bf16.msra.mxu1 %v1353_v33  ;;  %v1556_v18 = vrot.slane %v5164_v52, %v4965_v13  ;;  %v1564_v33 = vrot.slane %v5164_v52, %v4968_v14 }
 0x4c6   :  { %2037 = vmatprep.subr.bf16.mxu0 %v1360_v45  ;;  %2209 = vmatprep.subr.bf16.mxu1 %v1362_v47  ;;  %v1455_v45 = vld [vmem:[#allocation4 + $0xd60] sm:$0xff]  ;;  %v1457_v47 = vld [vmem:[#allocation4 + $0xd70] sm:$0xff] }
 0x4c9   :  { %2038 = vmatpush1.bf16.msra.mxu0 %v1359_v55  ;;  %2210 = vmatpush1.bf16.msra.mxu1 %v1361_v26 }
 0x4ca   :  { %2039 = vmatprep.subr.bf16.mxu0 %v1368_v32  ;;  %2211 = vmatprep.subr.bf16.mxu1 %v1370_v40  ;;  %v1464_v32 = vld [vmem:[#allocation4 + $0xda8] sm:$0xff]  ;;  %v1466_v40 = vld [vmem:[#allocation4 + $0xdb8] sm:$0xff] }
 0x4cd   :  { %2040 = vmatpush1.bf16.msra.mxu0 %v1367_v19  ;;  %2212 = vmatpush1.bf16.msra.mxu1 %v1369_v23 }
 0x4ce   :  { %2041 = vmatprep.subr.bf16.mxu0 %v1376_v0  ;;  %2213 = vmatprep.subr.bf16.mxu1 %v1378_v44 }
 0x4d1   :  { %2042 = vmatpush1.bf16.msra.mxu0 %v1375_v46  ;;  %2214 = vmatpush1.bf16.msra.mxu1 %v1377_v54 }
 0x4d2   :  { %2043 = vmatprep.subr.bf16.mxu0 %v1384_v5  ;;  %2215 = vmatprep.subr.bf16.mxu1 %v1386_v51 }
 0x4d5   :  { %2044 = vmatpush1.bf16.msra.mxu0 %v1383_v53  ;;  %2216 = vmatpush1.bf16.msra.mxu1 %v1385_v57 }
 0x4d6   :  { %2045 = vmatprep.subr.bf16.mxu0 %v1392_v2  ;;  %2217 = vmatprep.subr.bf16.mxu1 %v1394_v50 }
 0x4d9   :  { %2046 = vmatpush1.bf16.msra.mxu0 %v1391_v3  ;;  %2218 = vmatpush1.bf16.msra.mxu1 %v1393_v4 }
 0x4da   :  { %2047 = vmatprep.subr.bf16.mxu0 %v1400_v31  ;;  %2219 = vmatprep.subr.bf16.mxu1 %v1402_v39  ;;  %v1463_v31 = vld [vmem:[#allocation4 + $0xda0] sm:$0xff]  ;;  %v1465_v39 = vld [vmem:[#allocation4 + $0xdb0] sm:$0xff] }
 0x4dd   :  { %2048 = vmatpush1.bf16.msra.mxu0 %v1399_v1  ;;  %2220 = vmatpush1.bf16.msra.mxu1 %v1401_v38 }
 0x4de   :  { %2049 = vmatprep.subr.bf16.mxu0 %v1408_v15  ;;  %2221 = vmatprep.subr.bf16.mxu1 %v1410_v22 }
 0x4e1   :  { %2050 = vmatpush1.bf16.msra.mxu0 %v1407_v24  ;;  %2222 = vmatpush1.bf16.msra.mxu1 %v1409_v21  ;;  %v1472_v24 = vld [vmem:[#allocation4 + $0xde8] sm:$0xff]  ;;  %v1474_v21 = vld [vmem:[#allocation4 + $0xdf8] sm:$0xff] }
 0x4e2   :  { %2062 = vmatprep.subr.bf16.mxu0 %v1416_v42  ;;  %2234 = vmatprep.subr.bf16.mxu1 %v1418_v8 }
 0x4e4   :  { %2052 = vmatmul.mubr.bf16.vlgmr.msra.gmra.mrb[16].mxu0 %v5130_v36  ;;  %2224 = vmatmul.mubr.bf16.vlgmr.msra.gmra.mrb[16].mxu1 %v5130_v36  ;;  %v1442_v36 = vld [vmem:[#allocation4 + $0xcf8] sm:$0xff] }
 0x4e5   :  { %2063 = vmatpush1.bf16.msra.mxu0 %v1415_v48  ;;  %2235 = vmatpush1.bf16.msra.mxu1 %v1417_v17 }
 0x4e6   :  { %2064 = vmatprep.subr.bf16.mxu0 %v1424_v9  ;;  %2236 = vmatprep.subr.bf16.mxu1 %v1426_v30  ;;  %v1471_v9 = vld [vmem:[#allocation4 + $0xde0] sm:$0xff]  ;;  %v1473_v30 = vld [vmem:[#allocation4 + $0xdf0] sm:$0xff] }
 0x4e7   :  { %2094 = vmatprep.mubr.bf16.mxu0 %v5136_v25  ;;  %2266 = vmatprep.mubr.bf16.mxu1 %v5136_v25  ;;  %v1447_v25 = vld [vmem:[#allocation4 + $0xd20] sm:$0xff] }
 0x4e9   :  { %2065 = vmatpush1.bf16.msra.mxu0 %v1423_v16  ;;  %2237 = vmatpush1.bf16.msra.mxu1 %v1425_v63  ;;  %v1480_v16 = vld [vmem:[#allocation4 + $0xe28] sm:$0xff]  ;;  %v1482_v63 = vld [vmem:[#allocation4 + $0xe38] sm:$0xff] }
 0x4ea   :  { %2066 = vmatprep.subr.bf16.mxu0 %v1432_v20  ;;  %2238 = vmatprep.subr.bf16.mxu1 %v1434_v43  ;;  %v1479_v20 = vld [vmem:[#allocation4 + $0xe20] sm:$0xff]  ;;  %v1481_v43 = vld [vmem:[#allocation4 + $0xe30] sm:$0xff] }
 0x4ed   :  { %2067 = vmatpush1.bf16.msra.mxu0 %v1431_v27  ;;  %2239 = vmatpush1.bf16.msra.mxu1 %v1433_v28  ;;  %v1488_v27 = vld [vmem:[#allocation4 + $0xe68] sm:$0xff]  ;;  %v1490_v28 = vld [vmem:[#allocation4 + $0xe78] sm:$0xff] }
 0x4ee   :  { %2068 = vmatprep.subr.bf16.mxu0 %v1440_v34  ;;  %2240 = vmatprep.subr.bf16.mxu1 %v1442_v36  ;;  %v1487_v34 = vld [vmem:[#allocation4 + $0xe60] sm:$0xff]  ;;  %v1489_v36 = vld [vmem:[#allocation4 + $0xe70] sm:$0xff] }
 0x4f1   :  { %2069 = vmatpush1.bf16.msra.mxu0 %v1439_v35  ;;  %2241 = vmatpush1.bf16.msra.mxu1 %v1441_v37  ;;  %v1496_v35 = vld [vmem:[#allocation4 + $0xea8] sm:$0xff]  ;;  %v1498_v37 = vld [vmem:[#allocation4 + $0xeb8] sm:$0xff] }
 0x4f2   :  { %2070 = vmatprep.subr.bf16.mxu0 %v1448_v6  ;;  %2242 = vmatprep.subr.bf16.mxu1 %v1450_v49  ;;  %v1495_v6 = vld [vmem:[#allocation4 + $0xea0] sm:$0xff]  ;;  %v1497_v49 = vld [vmem:[#allocation4 + $0xeb0] sm:$0xff] }
 0x4f5   :  { %2071 = vmatpush1.bf16.msra.mxu0 %v1447_v25  ;;  %2243 = vmatpush1.bf16.msra.mxu1 %v1449_v56  ;;  %v1504_v25 = vld [vmem:[#allocation4 + $0xee8] sm:$0xff]  ;;  %v1506_v56 = vld [vmem:[#allocation4 + $0xef8] sm:$0xff] }
 0x4f6   :  { %2072 = vmatprep.subr.bf16.mxu0 %v1456_v62  ;;  %2244 = vmatprep.subr.bf16.mxu1 %v1458_v29  ;;  %v1503_v62 = vld [vmem:[#allocation4 + $0xee0] sm:$0xff]  ;;  %v1505_v29 = vld [vmem:[#allocation4 + $0xef0] sm:$0xff] }
 0x4f7   :  { %v1752_v55 = vpop.f32.mrb[12].mxu0  ;;  %v1924_v26 = vpop.f32.mrb[12].mxu1 }
 0x4f8   :  { %v5174_v19 = vadd.f32 %v1752_v55, %v1552_v12  ;;  %v5176_v23 = vadd.f32 %v1924_v26, %v1560_v7  ;;  %v1754_v0 = vpop.f32.mrb[13].mxu0  ;;  %v1926_v44 = vpop.f32.mrb[13].mxu1  ;;  %v1519_v55 = vld [vmem:[#allocation4 + $0xf60] sm:$0xff]  ;;  %v1521_v26 = vld [vmem:[#allocation4 + $0xf70] sm:$0xff] }
 0x4f9   :  { %v5178_v46 = vadd.f32 %v1754_v0, %v1556_v18  ;;  %v5180_v54 = vadd.f32 %v1926_v44, %v1564_v33  ;;  %v1756_v5 = vpop.f32.mrb[14].mxu0  ;;  %v1928_v51 = vpop.f32.mrb[14].mxu1  ;;  %2073 = vmatpush1.bf16.msra.mxu0 %v1455_v45  ;;  %2245 = vmatpush1.bf16.msra.mxu1 %v1457_v47  ;;  %v1520_v45 = vld [vmem:[#allocation4 + $0xf68] sm:$0xff]  ;;  %v1522_v47 = vld [vmem:[#allocation4 + $0xf78] sm:$0xff]  ;;  %v1527_v0 = vld [vmem:[#allocation4 + $0xfa0] sm:$0xff] }
 0x4fa   :  { %v2277_v53 = vmax.f32 %v5174_v19, 0.0  ;;  %v2279_v57 = vmax.f32 %v5176_v23, 0.0  ;;  %v5184_v2 = vadd.f32 %v1756_v5, %v1552_v12  ;;  %v5186_v50 = vadd.f32 %v1928_v51, %v1560_v7  ;;  %v1758_v3 = vpop.f32.mrb[15].mxu0  ;;  %v1930_v4 = vpop.f32.mrb[15].mxu1  ;;  %2074 = vmatprep.subr.bf16.mxu0 %v1464_v32  ;;  %2246 = vmatprep.subr.bf16.mxu1 %v1466_v40  ;;  %v1512_v12 = vld [vmem:[#allocation4 + $0xf28] sm:$0xff]  ;;  %v1514_v7 = vld [vmem:[#allocation4 + $0xf38] sm:$0xff] }
 0x4fb   :  { %v2278_v1 = vmax.f32 %v5178_v46, 0.0  ;;  %v2280_v38 = vmax.f32 %v5180_v54, 0.0  ;;  %v5190_v15 = vadd.f32 %v1758_v3, %v1556_v18  ;;  %v5192_v22 = vadd.f32 %v1930_v4, %v1564_v33  ;;  %v1511_v18 = vld [vmem:[#allocation4 + $0xf20] sm:$0xff]  ;;  %v1513_v33 = vld [vmem:[#allocation4 + $0xf30] sm:$0xff]  ;;  %v1528_v32 = vld [vmem:[#allocation4 + $0xfa8] sm:$0xff] }
 0x4fc   :  { %v2285_v42 = vmax.f32 %v5184_v2, 0.0  ;;  %v2287_v8 = vmax.f32 %v5186_v50, 0.0  ;;  %v1530_v40 = vld [vmem:[#allocation4 + $0xfb8] sm:$0xff]  ;;  %v1529_v44 = vld [vmem:[#allocation4 + $0xfb0] sm:$0xff]  ;;  %v1536_v5 = vld [vmem:[#allocation4 + $0xfe8] sm:$0xff] }
 0x4fd   :  { %v2286_v48 = vmax.f32 %v5190_v15, 0.0  ;;  %v2288_v17 = vmax.f32 %v5192_v22, 0.0  ;;  %2075 = vmatpush1.bf16.msra.mxu0 %v1463_v31  ;;  %2247 = vmatpush1.bf16.msra.mxu1 %v1465_v39  ;;  %v1538_v51 = vld [vmem:[#allocation4 + $0xff8] sm:$0xff]  ;;  %v1535_v3 = vld [vmem:[#allocation4 + $0xfe0] sm:$0xff]  ;;  %v1537_v4 = vld [vmem:[#allocation4 + $0xff0] sm:$0xff]  ;;  %v1568_v31 = vrot.slane %v5164_v52, %v5051_v58  ;;  %v1576_v39 = vrot.slane %v5164_v52, %v5054_v59 }
 0x4fe   :  { %2076 = vmatprep.subr.bf16.mxu0 %v1472_v24  ;;  %2248 = vmatprep.subr.bf16.mxu1 %v1474_v21  ;;  %v1572_v24 = vrot.slane %v5164_v52, %v5057_v60  ;;  %v1580_v21 = vrot.slane %v5164_v52, %v5060_v61 }
 0x501   :  { %2077 = vmatpush1.bf16.msra.mxu0 %v1471_v9  ;;  %2249 = vmatpush1.bf16.msra.mxu1 %v1473_v30 }
 0x502   :  { %2078 = vmatprep.subr.bf16.mxu0 %v1480_v16  ;;  %2250 = vmatprep.subr.bf16.mxu1 %v1482_v63 }
 0x505   :  { %2079 = vmatpush1.bf16.msra.mxu0 %v1479_v20  ;;  %2251 = vmatpush1.bf16.msra.mxu1 %v1481_v43 }
 0x506   :  { %2080 = vmatprep.subr.bf16.mxu0 %v1488_v27  ;;  %2252 = vmatprep.subr.bf16.mxu1 %v1490_v28 }
 0x509   :  { %2081 = vmatpush1.bf16.msra.mxu0 %v1487_v34  ;;  %2253 = vmatpush1.bf16.msra.mxu1 %v1489_v36 }
 0x50a   :  { %2082 = vmatprep.subr.bf16.mxu0 %v1496_v35  ;;  %2254 = vmatprep.subr.bf16.mxu1 %v1498_v37 }
 0x50d   :  { %2083 = vmatpush1.bf16.msra.mxu0 %v1495_v6  ;;  %2255 = vmatpush1.bf16.msra.mxu1 %v1497_v49 }
 0x50e   :  { %2084 = vmatprep.subr.bf16.mxu0 %v1504_v25  ;;  %2256 = vmatprep.subr.bf16.mxu1 %v1506_v56 }
 0x511   :  { %2085 = vmatpush1.bf16.msra.mxu0 %v1503_v62  ;;  %2257 = vmatpush1.bf16.msra.mxu1 %v1505_v29 }
 0x512   :  { %2086 = vmatprep.subr.bf16.mxu0 %v1512_v12  ;;  %2258 = vmatprep.subr.bf16.mxu1 %v1514_v7 }
 0x515   :  { %2087 = vmatpush1.bf16.msra.mxu0 %v1511_v18  ;;  %2259 = vmatpush1.bf16.msra.mxu1 %v1513_v33 }
 0x516   :  { %2088 = vmatprep.subr.bf16.mxu0 %v1520_v45  ;;  %2260 = vmatprep.subr.bf16.mxu1 %v1522_v47 }
 0x519   :  { %2089 = vmatpush1.bf16.msra.mxu0 %v1519_v55  ;;  %2261 = vmatpush1.bf16.msra.mxu1 %v1521_v26 }
 0x51a   :  { %2090 = vmatprep.subr.bf16.mxu0 %v1528_v32  ;;  %2262 = vmatprep.subr.bf16.mxu1 %v1530_v40 }
 0x51d   :  { %2091 = vmatpush1.bf16.msra.mxu0 %v1527_v0  ;;  %2263 = vmatpush1.bf16.msra.mxu1 %v1529_v44 }
 0x51e   :  { %2092 = vmatprep.subr.bf16.mxu0 %v1536_v5  ;;  %2264 = vmatprep.subr.bf16.mxu1 %v1538_v51 }
 0x521   :  { %2093 = vmatpush1.bf16.msra.mxu0 %v1535_v3  ;;  %2265 = vmatpush1.bf16.msra.mxu1 %v1537_v4 }
 0x524   :  { %2095 = vmatmul.mubr.bf16.vlgmr.msra.gmra.mrb[16].mxu0 %v5146_v41  ;;  %2267 = vmatmul.mubr.bf16.vlgmr.msra.gmra.mrb[16].mxu1 %v5146_v41 }
 0x5f7   :  { %v2096_v9 = vpop.f32.mrb[16].mxu0  ;;  %v2268_v30 = vpop.f32.mrb[16].mxu1 }
 0x5f8   :  { %v5208_v16 = vadd.f32 %v2096_v9, %v1568_v31  ;;  %v5210_v63 = vadd.f32 %v2268_v30, %v1576_v39  ;;  %v2098_v20 = vpop.f32.mrb[17].mxu0  ;;  %v2270_v41 = vpop.f32.mrb[17].mxu1 }
 0x5f9   :  { %v5212_v43 = vadd.f32 %v2098_v20, %v1572_v24  ;;  %v5214_v27 = vadd.f32 %v2270_v41, %v1580_v21  ;;  %v2100_v28 = vpop.f32.mrb[18].mxu0  ;;  %v2272_v34 = vpop.f32.mrb[18].mxu1 }
 0x5fa   :  { %v2281_v36 = vmax.f32 %v5208_v16, 0.0  ;;  %v2283_v35 = vmax.f32 %v5210_v63, 0.0  ;;  %v5218_v37 = vadd.f32 %v2100_v28, %v1568_v31  ;;  %v5220_v52 = vadd.f32 %v2272_v34, %v1576_v39  ;;  %v2102_v6 = vpop.f32.mrb[19].mxu0  ;;  %v2274_v49 = vpop.f32.mrb[19].mxu1 }
 0x5fb   :  { %v2282_v25 = vmax.f32 %v5212_v43, 0.0  ;;  %v2284_v56 = vmax.f32 %v5214_v27, 0.0  ;;  %v5224_v62 = vadd.f32 %v2102_v6, %v1572_v24  ;;  %v5226_v29 = vadd.f32 %v2274_v49, %v1580_v21 }
 0x5fc   :  { %v2289_v12 = vmax.f32 %v5218_v37, 0.0  ;;  %v2291_v7 = vmax.f32 %v5220_v52, 0.0 }
 0x5fd   :  { %v2290_v18 = vmax.f32 %v5224_v62, 0.0  ;;  %v2292_v33 = vmax.f32 %v5226_v29, 0.0 }
 0x5fe   :  { %4772 = dma.done.wait [#allocation8 + $0x3], 65536 }
 0x5ff   :  { %4773 = vsyncadd [#allocation8 + $0x3], 4294901760  ;;  %v5236_v45 = vpack.c.bf16 %v2286_v48, %v2278_v1  ;;  %v2296_v47 = vld [vmem:[#allocation5 + $0x8] sm:$0xff]  ;;  %v2298_v55 = vld [vmem:[#allocation5 + $0x18] sm:$0xff] }
 0x600   :  { %v2295_v26 = vld [vmem:[#allocation5] sm:$0xff]  ;;  %2857 = vmatprep.subr.bf16.mxu0 %v2296_v47  ;;  %3029 = vmatprep.subr.bf16.mxu1 %v2298_v55  ;;  %v2297_v32 = vld [vmem:[#allocation5 + $0x10] sm:$0xff]  ;;  %v2304_v40 = vld [vmem:[#allocation5 + $0x48] sm:$0xff] }
 0x601   :  { %2889 = vmatprep.mubr.bf16.mxu0 %v5236_v45  ;;  %3061 = vmatprep.mubr.bf16.mxu1 %v5236_v45  ;;  %v2306_v0 = vld [vmem:[#allocation5 + $0x58] sm:$0xff]  ;;  %v2303_v46 = vld [vmem:[#allocation5 + $0x40] sm:$0xff]  ;;  %v2305_v15 = vld [vmem:[#allocation5 + $0x50] sm:$0xff] }
 0x602   :  { %2858 = vmatpush1.bf16.msra.mxu0 %v2295_v26  ;;  %3030 = vmatpush1.bf16.msra.mxu1 %v2297_v32  ;;  %v2312_v1 = vld [vmem:[#allocation5 + $0x88] sm:$0xff]  ;;  %v2314_v48 = vld [vmem:[#allocation5 + $0x98] sm:$0xff]  ;;  %v2311_v44 = vld [vmem:[#allocation5 + $0x80] sm:$0xff] }
 0x603   :  { %2859 = vmatprep.subr.bf16.mxu0 %v2304_v40  ;;  %3031 = vmatprep.subr.bf16.mxu1 %v2306_v0  ;;  %v2313_v5 = vld [vmem:[#allocation5 + $0x90] sm:$0xff]  ;;  %v2320_v51 = vld [vmem:[#allocation5 + $0xc8] sm:$0xff]  ;;  %v2322_v3 = vld [vmem:[#allocation5 + $0xd8] sm:$0xff] }
 0x604   :  { %v2319_v4 = vld [vmem:[#allocation5 + $0xc0] sm:$0xff]  ;;  %v2321_v31 = vld [vmem:[#allocation5 + $0xd0] sm:$0xff]  ;;  %v2328_v39 = vld [vmem:[#allocation5 + $0x108] sm:$0xff] }
 0x605   :  { %v2330_v24 = vld [vmem:[#allocation5 + $0x118] sm:$0xff]  ;;  %v2327_v21 = vld [vmem:[#allocation5 + $0x100] sm:$0xff]  ;;  %v2329_v9 = vld [vmem:[#allocation5 + $0x110] sm:$0xff] }
 0x606   :  { %2860 = vmatpush1.bf16.msra.mxu0 %v2303_v46  ;;  %3032 = vmatpush1.bf16.msra.mxu1 %v2305_v15  ;;  %v2336_v30 = vld [vmem:[#allocation5 + $0x148] sm:$0xff]  ;;  %v2338_v20 = vld [vmem:[#allocation5 + $0x158] sm:$0xff]  ;;  %v2335_v41 = vld [vmem:[#allocation5 + $0x140] sm:$0xff] }
 0x607   :  { %2861 = vmatprep.subr.bf16.mxu0 %v2312_v1  ;;  %3033 = vmatprep.subr.bf16.mxu1 %v2314_v48  ;;  %v2337_v28 = vld [vmem:[#allocation5 + $0x150] sm:$0xff]  ;;  %v2344_v34 = vld [vmem:[#allocation5 + $0x188] sm:$0xff]  ;;  %v2346_v6 = vld [vmem:[#allocation5 + $0x198] sm:$0xff] }
 0x608   :  { %v2343_v49 = vld [vmem:[#allocation5 + $0x180] sm:$0xff]  ;;  %v2345_v47 = vld [vmem:[#allocation5 + $0x190] sm:$0xff]  ;;  %v2352_v55 = vld [vmem:[#allocation5 + $0x1c8] sm:$0xff] }
 0x609   :  { %v2354_v26 = vld [vmem:[#allocation5 + $0x1d8] sm:$0xff]  ;;  %v2351_v32 = vld [vmem:[#allocation5 + $0x1c0] sm:$0xff]  ;;  %v2353_v40 = vld [vmem:[#allocation5 + $0x1d0] sm:$0xff] }
 0x60a   :  { %2862 = vmatpush1.bf16.msra.mxu0 %v2311_v44  ;;  %3034 = vmatpush1.bf16.msra.mxu1 %v2313_v5  ;;  %v2360_v0 = vld [vmem:[#allocation5 + $0x208] sm:$0xff]  ;;  %v2362_v46 = vld [vmem:[#allocation5 + $0x218] sm:$0xff]  ;;  %v2359_v15 = vld [vmem:[#allocation5 + $0x200] sm:$0xff] }
 0x60b   :  { %2863 = vmatprep.subr.bf16.mxu0 %v2320_v51  ;;  %3035 = vmatprep.subr.bf16.mxu1 %v2322_v3  ;;  %v2361_v1 = vld [vmem:[#allocation5 + $0x210] sm:$0xff]  ;;  %v2368_v48 = vld [vmem:[#allocation5 + $0x248] sm:$0xff]  ;;  %v2370_v44 = vld [vmem:[#allocation5 + $0x258] sm:$0xff] }
 0x60c   :  { %v2367_v5 = vld [vmem:[#allocation5 + $0x240] sm:$0xff]  ;;  %v2369_v51 = vld [vmem:[#allocation5 + $0x250] sm:$0xff]  ;;  %v2376_v3 = vld [vmem:[#allocation5 + $0x288] sm:$0xff] }
 0x60d   :  { %v2431_v19 = vld [vmem:[#allocation5 + $0x440] sm:$0xff]  ;;  %v2440_v2 = vld [vmem:[#allocation5 + $0x488] sm:$0xff]  ;;  %v2309_v52 = vld [vmem:[#allocation5 + $0x70] sm:$0xff] }
 0x60e   :  { %2864 = vmatpush1.bf16.msra.mxu0 %v2319_v4  ;;  %3036 = vmatpush1.bf16.msra.mxu1 %v2321_v31  ;;  %v2378_v4 = vld [vmem:[#allocation5 + $0x298] sm:$0xff]  ;;  %v2375_v31 = vld [vmem:[#allocation5 + $0x280] sm:$0xff]  ;;  %v2448_v22 = vld [vmem:[#allocation5 + $0x4c8] sm:$0xff] }
 0x60f   :  { %2865 = vmatprep.subr.bf16.mxu0 %v2328_v39  ;;  %3037 = vmatprep.subr.bf16.mxu1 %v2330_v24  ;;  %v2377_v39 = vld [vmem:[#allocation5 + $0x290] sm:$0xff]  ;;  %v2384_v24 = vld [vmem:[#allocation5 + $0x2c8] sm:$0xff]  ;;  %v2439_v54 = vld [vmem:[#allocation5 + $0x480] sm:$0xff] }
 0x610   :  { %v2559_v23 = vld [vmem:[#allocation5 + $0x840] sm:$0xff]  ;;  %v2568_v50 = vld [vmem:[#allocation5 + $0x888] sm:$0xff] }
 0x611   :  { %v2567_v43 = vld [vmem:[#allocation5 + $0x880] sm:$0xff]  ;;  %v2576_v62 = vld [vmem:[#allocation5 + $0x8c8] sm:$0xff] }
 0x612   :  { %2866 = vmatpush1.bf16.msra.mxu0 %v2327_v21  ;;  %3038 = vmatpush1.bf16.msra.mxu1 %v2329_v9  ;;  %v2386_v21 = vld [vmem:[#allocation5 + $0x2d8] sm:$0xff]  ;;  %v2383_v9 = vld [vmem:[#allocation5 + $0x2c0] sm:$0xff]  ;;  %v2696_v37 = vld [vmem:[#allocation5 + $0xc88] sm:$0xff] }
 0x613   :  { %2867 = vmatprep.subr.bf16.mxu0 %v2336_v30  ;;  %3039 = vmatprep.subr.bf16.mxu1 %v2338_v20  ;;  %v2385_v30 = vld [vmem:[#allocation5 + $0x2d0] sm:$0xff]  ;;  %v2392_v20 = vld [vmem:[#allocation5 + $0x308] sm:$0xff]  ;;  %v2687_v16 = vld [vmem:[#allocation5 + $0xc40] sm:$0xff] }
 0x614   :  { %v2695_v27 = vld [vmem:[#allocation5 + $0xc80] sm:$0xff]  ;;  %v2704_v29 = vld [vmem:[#allocation5 + $0xcc8] sm:$0xff] }
 0x615   :  { %v2307_v63 = vld [vmem:[#allocation5 + $0x60] sm:$0xff] }
 0x616   :  { %2868 = vmatpush1.bf16.msra.mxu0 %v2335_v41  ;;  %3040 = vmatpush1.bf16.msra.mxu1 %v2337_v28  ;;  %v2394_v41 = vld [vmem:[#allocation5 + $0x318] sm:$0xff]  ;;  %v2391_v28 = vld [vmem:[#allocation5 + $0x300] sm:$0xff] }
 0x617   :  { %2869 = vmatprep.subr.bf16.mxu0 %v2344_v34  ;;  %3041 = vmatprep.subr.bf16.mxu1 %v2346_v6  ;;  %v2393_v34 = vld [vmem:[#allocation5 + $0x310] sm:$0xff]  ;;  %v2400_v6 = vld [vmem:[#allocation5 + $0x348] sm:$0xff] }
 0x61a   :  { %2870 = vmatpush1.bf16.msra.mxu0 %v2343_v49  ;;  %3042 = vmatpush1.bf16.msra.mxu1 %v2345_v47  ;;  %v2402_v49 = vld [vmem:[#allocation5 + $0x358] sm:$0xff]  ;;  %v2399_v47 = vld [vmem:[#allocation5 + $0x340] sm:$0xff] }
 0x61b   :  { %2871 = vmatprep.subr.bf16.mxu0 %v2352_v55  ;;  %3043 = vmatprep.subr.bf16.mxu1 %v2354_v26  ;;  %v2401_v55 = vld [vmem:[#allocation5 + $0x350] sm:$0xff]  ;;  %v2408_v26 = vld [vmem:[#allocation5 + $0x388] sm:$0xff] }
 0x61e   :  { %2872 = vmatpush1.bf16.msra.mxu0 %v2351_v32  ;;  %3044 = vmatpush1.bf16.msra.mxu1 %v2353_v40  ;;  %v2410_v32 = vld [vmem:[#allocation5 + $0x398] sm:$0xff]  ;;  %v2407_v40 = vld [vmem:[#allocation5 + $0x380] sm:$0xff] }
 0x61f   :  { %2873 = vmatprep.subr.bf16.mxu0 %v2360_v0  ;;  %3045 = vmatprep.subr.bf16.mxu1 %v2362_v46  ;;  %v2409_v0 = vld [vmem:[#allocation5 + $0x390] sm:$0xff]  ;;  %v2416_v46 = vld [vmem:[#allocation5 + $0x3c8] sm:$0xff] }
 0x622   :  { %2874 = vmatpush1.bf16.msra.mxu0 %v2359_v15  ;;  %3046 = vmatpush1.bf16.msra.mxu1 %v2361_v1  ;;  %v2418_v15 = vld [vmem:[#allocation5 + $0x3d8] sm:$0xff]  ;;  %v2415_v1 = vld [vmem:[#allocation5 + $0x3c0] sm:$0xff] }
 0x623   :  { %2875 = vmatprep.subr.bf16.mxu0 %v2368_v48  ;;  %3047 = vmatprep.subr.bf16.mxu1 %v2370_v44  ;;  %v2417_v48 = vld [vmem:[#allocation5 + $0x3d0] sm:$0xff]  ;;  %v2424_v44 = vld [vmem:[#allocation5 + $0x408] sm:$0xff] }
 0x626   :  { %2876 = vmatpush1.bf16.msra.mxu0 %v2367_v5  ;;  %3048 = vmatpush1.bf16.msra.mxu1 %v2369_v51  ;;  %v2426_v5 = vld [vmem:[#allocation5 + $0x418] sm:$0xff]  ;;  %v5244_v51 = vpack.c.bf16 %v2285_v42, %v2277_v53  ;;  %v2433_v53 = vld [vmem:[#allocation5 + $0x450] sm:$0xff] }
 0x627   :  { %2877 = vmatprep.subr.bf16.mxu0 %v2376_v3  ;;  %3049 = vmatprep.subr.bf16.mxu1 %v2378_v4  ;;  %v2423_v3 = vld [vmem:[#allocation5 + $0x400] sm:$0xff]  ;;  %v2425_v4 = vld [vmem:[#allocation5 + $0x410] sm:$0xff]  ;;  %v2442_v42 = vld [vmem:[#allocation5 + $0x498] sm:$0xff] }
 0x62a   :  { %2878 = vmatpush1.bf16.msra.mxu0 %v2375_v31  ;;  %3050 = vmatpush1.bf16.msra.mxu1 %v2377_v39  ;;  %v2432_v31 = vld [vmem:[#allocation5 + $0x448] sm:$0xff]  ;;  %v2434_v39 = vld [vmem:[#allocation5 + $0x458] sm:$0xff] }
 0x62b   :  { %2879 = vmatprep.subr.bf16.mxu0 %v2384_v24  ;;  %3051 = vmatprep.subr.bf16.mxu1 %v2386_v21  ;;  %v5250_v24 = vpack.c.bf16 %v2288_v17, %v2280_v38  ;;  %v2441_v38 = vld [vmem:[#allocation5 + $0x490] sm:$0xff]  ;;  %v2450_v17 = vld [vmem:[#allocation5 + $0x4d8] sm:$0xff]  ;;  %v2447_v21 = vld [vmem:[#allocation5 + $0x4c0] sm:$0xff] }
 0x62e   :  { %2880 = vmatpush1.bf16.msra.mxu0 %v2383_v9  ;;  %3052 = vmatpush1.bf16.msra.mxu1 %v2385_v30  ;;  %v2449_v9 = vld [vmem:[#allocation5 + $0x4d0] sm:$0xff]  ;;  %v2456_v30 = vld [vmem:[#allocation5 + $0x508] sm:$0xff] }
 0x62f   :  { %2881 = vmatprep.subr.bf16.mxu0 %v2392_v20  ;;  %3053 = vmatprep.subr.bf16.mxu1 %v2394_v41  ;;  %v2458_v20 = vld [vmem:[#allocation5 + $0x518] sm:$0xff]  ;;  %v2455_v41 = vld [vmem:[#allocation5 + $0x500] sm:$0xff] }
 0x632   :  { %2882 = vmatpush1.bf16.msra.mxu0 %v2391_v28  ;;  %3054 = vmatpush1.bf16.msra.mxu1 %v2393_v34  ;;  %v2457_v28 = vld [vmem:[#allocation5 + $0x510] sm:$0xff]  ;;  %v2464_v34 = vld [vmem:[#allocation5 + $0x548] sm:$0xff] }
 0x633   :  { %2883 = vmatprep.subr.bf16.mxu0 %v2400_v6  ;;  %3055 = vmatprep.subr.bf16.mxu1 %v2402_v49  ;;  %v2466_v6 = vld [vmem:[#allocation5 + $0x558] sm:$0xff]  ;;  %v2463_v49 = vld [vmem:[#allocation5 + $0x540] sm:$0xff] }
 0x636   :  { %2884 = vmatpush1.bf16.msra.mxu0 %v2399_v47  ;;  %3056 = vmatpush1.bf16.msra.mxu1 %v2401_v55  ;;  %v2465_v47 = vld [vmem:[#allocation5 + $0x550] sm:$0xff]  ;;  %v2472_v55 = vld [vmem:[#allocation5 + $0x588] sm:$0xff] }
 0x637   :  { %2885 = vmatprep.subr.bf16.mxu0 %v2408_v26  ;;  %3057 = vmatprep.subr.bf16.mxu1 %v2410_v32  ;;  %v2474_v26 = vld [vmem:[#allocation5 + $0x598] sm:$0xff]  ;;  %v2471_v32 = vld [vmem:[#allocation5 + $0x580] sm:$0xff] }
 0x63a   :  { %2886 = vmatpush1.bf16.msra.mxu0 %v2407_v40  ;;  %3058 = vmatpush1.bf16.msra.mxu1 %v2409_v0  ;;  %v2473_v40 = vld [vmem:[#allocation5 + $0x590] sm:$0xff]  ;;  %v2480_v0 = vld [vmem:[#allocation5 + $0x5c8] sm:$0xff] }
 0x63b   :  { %2887 = vmatprep.subr.bf16.mxu0 %v2416_v46  ;;  %3059 = vmatprep.subr.bf16.mxu1 %v2418_v15  ;;  %v2482_v46 = vld [vmem:[#allocation5 + $0x5d8] sm:$0xff]  ;;  %v2479_v15 = vld [vmem:[#allocation5 + $0x5c0] sm:$0xff] }
 0x63e   :  { %2888 = vmatpush1.bf16.msra.mxu0 %v2415_v1  ;;  %3060 = vmatpush1.bf16.msra.mxu1 %v2417_v48  ;;  %v2481_v1 = vld [vmem:[#allocation5 + $0x5d0] sm:$0xff]  ;;  %v2488_v48 = vld [vmem:[#allocation5 + $0x608] sm:$0xff] }
 0x63f   :  { %2900 = vmatprep.subr.bf16.mxu0 %v2424_v44  ;;  %3072 = vmatprep.subr.bf16.mxu1 %v2426_v5  ;;  %v2490_v44 = vld [vmem:[#allocation5 + $0x618] sm:$0xff]  ;;  %v2487_v5 = vld [vmem:[#allocation5 + $0x600] sm:$0xff] }
 0x641   :  { %2890 = vmatmul.mubr.bf16.vlgmr.msra.gmra.mrb[20].mxu0 %v5244_v51  ;;  %3062 = vmatmul.mubr.bf16.vlgmr.msra.gmra.mrb[20].mxu1 %v5244_v51 }
 0x642   :  { %2901 = vmatpush1.bf16.msra.mxu0 %v2423_v3  ;;  %3073 = vmatpush1.bf16.msra.mxu1 %v2425_v4  ;;  %v2489_v3 = vld [vmem:[#allocation5 + $0x610] sm:$0xff]  ;;  %v2496_v4 = vld [vmem:[#allocation5 + $0x648] sm:$0xff] }
 0x643   :  { %2902 = vmatprep.subr.bf16.mxu0 %v2432_v31  ;;  %3074 = vmatprep.subr.bf16.mxu1 %v2434_v39  ;;  %v2498_v31 = vld [vmem:[#allocation5 + $0x658] sm:$0xff]  ;;  %v2495_v39 = vld [vmem:[#allocation5 + $0x640] sm:$0xff] }
 0x644   :  { %2932 = vmatprep.mubr.bf16.mxu0 %v5250_v24  ;;  %3104 = vmatprep.mubr.bf16.mxu1 %v5250_v24 }
 0x646   :  { %2903 = vmatpush1.bf16.msra.mxu0 %v2431_v19  ;;  %3075 = vmatpush1.bf16.msra.mxu1 %v2433_v53  ;;  %v2497_v19 = vld [vmem:[#allocation5 + $0x650] sm:$0xff]  ;;  %v2504_v53 = vld [vmem:[#allocation5 + $0x688] sm:$0xff] }
 0x647   :  { %2904 = vmatprep.subr.bf16.mxu0 %v2440_v2  ;;  %3076 = vmatprep.subr.bf16.mxu1 %v2442_v42  ;;  %v2506_v2 = vld [vmem:[#allocation5 + $0x698] sm:$0xff]  ;;  %v2503_v42 = vld [vmem:[#allocation5 + $0x680] sm:$0xff] }
 0x64a   :  { %2905 = vmatpush1.bf16.msra.mxu0 %v2439_v54  ;;  %3077 = vmatpush1.bf16.msra.mxu1 %v2441_v38  ;;  %v2505_v54 = vld [vmem:[#allocation5 + $0x690] sm:$0xff]  ;;  %v2512_v38 = vld [vmem:[#allocation5 + $0x6c8] sm:$0xff] }
 0x64b   :  { %2906 = vmatprep.subr.bf16.mxu0 %v2448_v22  ;;  %3078 = vmatprep.subr.bf16.mxu1 %v2450_v17  ;;  %v2514_v22 = vld [vmem:[#allocation5 + $0x6d8] sm:$0xff]  ;;  %v2511_v17 = vld [vmem:[#allocation5 + $0x6c0] sm:$0xff] }
 0x64e   :  { %2907 = vmatpush1.bf16.msra.mxu0 %v2447_v21  ;;  %3079 = vmatpush1.bf16.msra.mxu1 %v2449_v9  ;;  %v2513_v21 = vld [vmem:[#allocation5 + $0x6d0] sm:$0xff]  ;;  %v2520_v9 = vld [vmem:[#allocation5 + $0x708] sm:$0xff] }
 0x64f   :  { %2908 = vmatprep.subr.bf16.mxu0 %v2456_v30  ;;  %3080 = vmatprep.subr.bf16.mxu1 %v2458_v20  ;;  %v2522_v30 = vld [vmem:[#allocation5 + $0x718] sm:$0xff]  ;;  %v2519_v20 = vld [vmem:[#allocation5 + $0x700] sm:$0xff] }
 0x652   :  { %2909 = vmatpush1.bf16.msra.mxu0 %v2455_v41  ;;  %3081 = vmatpush1.bf16.msra.mxu1 %v2457_v28  ;;  %v2521_v41 = vld [vmem:[#allocation5 + $0x710] sm:$0xff]  ;;  %v2528_v28 = vld [vmem:[#allocation5 + $0x748] sm:$0xff] }
 0x653   :  { %2910 = vmatprep.subr.bf16.mxu0 %v2464_v34  ;;  %3082 = vmatprep.subr.bf16.mxu1 %v2466_v6  ;;  %v2530_v34 = vld [vmem:[#allocation5 + $0x758] sm:$0xff]  ;;  %v2527_v6 = vld [vmem:[#allocation5 + $0x740] sm:$0xff] }
 0x656   :  { %2911 = vmatpush1.bf16.msra.mxu0 %v2463_v49  ;;  %3083 = vmatpush1.bf16.msra.mxu1 %v2465_v47  ;;  %v2529_v49 = vld [vmem:[#allocation5 + $0x750] sm:$0xff]  ;;  %v2536_v47 = vld [vmem:[#allocation5 + $0x788] sm:$0xff] }
 0x657   :  { %2912 = vmatprep.subr.bf16.mxu0 %v2472_v55  ;;  %3084 = vmatprep.subr.bf16.mxu1 %v2474_v26  ;;  %v2538_v55 = vld [vmem:[#allocation5 + $0x798] sm:$0xff]  ;;  %v2535_v26 = vld [vmem:[#allocation5 + $0x780] sm:$0xff] }
 0x65a   :  { %2913 = vmatpush1.bf16.msra.mxu0 %v2471_v32  ;;  %3085 = vmatpush1.bf16.msra.mxu1 %v2473_v40  ;;  %v2537_v32 = vld [vmem:[#allocation5 + $0x790] sm:$0xff]  ;;  %v2544_v40 = vld [vmem:[#allocation5 + $0x7c8] sm:$0xff] }
 0x65b   :  { %2914 = vmatprep.subr.bf16.mxu0 %v2480_v0  ;;  %3086 = vmatprep.subr.bf16.mxu1 %v2482_v46  ;;  %v2546_v0 = vld [vmem:[#allocation5 + $0x7d8] sm:$0xff]  ;;  %v2543_v46 = vld [vmem:[#allocation5 + $0x7c0] sm:$0xff] }
 0x65e   :  { %2915 = vmatpush1.bf16.msra.mxu0 %v2479_v15  ;;  %3087 = vmatpush1.bf16.msra.mxu1 %v2481_v1  ;;  %v2545_v15 = vld [vmem:[#allocation5 + $0x7d0] sm:$0xff]  ;;  %v2552_v1 = vld [vmem:[#allocation5 + $0x808] sm:$0xff] }
 0x65f   :  { %2916 = vmatprep.subr.bf16.mxu0 %v2488_v48  ;;  %3088 = vmatprep.subr.bf16.mxu1 %v2490_v44  ;;  %v2554_v48 = vld [vmem:[#allocation5 + $0x818] sm:$0xff]  ;;  %v5260_v44 = vpack.c.bf16 %v2287_v8, %v2279_v57  ;;  %v2561_v57 = vld [vmem:[#allocation5 + $0x850] sm:$0xff] }
 0x660   :  { %v2570_v8 = vld [vmem:[#allocation5 + $0x898] sm:$0xff] }
 0x662   :  { %2917 = vmatpush1.bf16.msra.mxu0 %v2487_v5  ;;  %3089 = vmatpush1.bf16.msra.mxu1 %v2489_v3  ;;  %v2551_v5 = vld [vmem:[#allocation5 + $0x800] sm:$0xff]  ;;  %v2553_v3 = vld [vmem:[#allocation5 + $0x810] sm:$0xff] }
 0x663   :  { %2918 = vmatprep.subr.bf16.mxu0 %v2496_v4  ;;  %3090 = vmatprep.subr.bf16.mxu1 %v2498_v31  ;;  %v2560_v4 = vld [vmem:[#allocation5 + $0x848] sm:$0xff]  ;;  %v2562_v31 = vld [vmem:[#allocation5 + $0x858] sm:$0xff] }
 0x666   :  { %2919 = vmatpush1.bf16.msra.mxu0 %v2495_v39  ;;  %3091 = vmatpush1.bf16.msra.mxu1 %v2497_v19  ;;  %v5266_v39 = vpack.c.bf16 %v2290_v18, %v2282_v25  ;;  %v2569_v25 = vld [vmem:[#allocation5 + $0x890] sm:$0xff]  ;;  %v2578_v18 = vld [vmem:[#allocation5 + $0x8d8] sm:$0xff]  ;;  %v2575_v19 = vld [vmem:[#allocation5 + $0x8c0] sm:$0xff] }
 0x667   :  { %2920 = vmatprep.subr.bf16.mxu0 %v2504_v53  ;;  %3092 = vmatprep.subr.bf16.mxu1 %v2506_v2  ;;  %v2577_v53 = vld [vmem:[#allocation5 + $0x8d0] sm:$0xff]  ;;  %v2584_v2 = vld [vmem:[#allocation5 + $0x908] sm:$0xff] }
 0x66a   :  { %2921 = vmatpush1.bf16.msra.mxu0 %v2503_v42  ;;  %3093 = vmatpush1.bf16.msra.mxu1 %v2505_v54  ;;  %v2586_v42 = vld [vmem:[#allocation5 + $0x918] sm:$0xff]  ;;  %v2583_v54 = vld [vmem:[#allocation5 + $0x900] sm:$0xff] }
 0x66b   :  { %2922 = vmatprep.subr.bf16.mxu0 %v2512_v38  ;;  %3094 = vmatprep.subr.bf16.mxu1 %v2514_v22  ;;  %v2585_v38 = vld [vmem:[#allocation5 + $0x910] sm:$0xff]  ;;  %v2592_v22 = vld [vmem:[#allocation5 + $0x948] sm:$0xff] }
 0x66e   :  { %2923 = vmatpush1.bf16.msra.mxu0 %v2511_v17  ;;  %3095 = vmatpush1.bf16.msra.mxu1 %v2513_v21  ;;  %v2594_v17 = vld [vmem:[#allocation5 + $0x958] sm:$0xff]  ;;  %v2591_v21 = vld [vmem:[#allocation5 + $0x940] sm:$0xff] }
 0x66f   :  { %2924 = vmatprep.subr.bf16.mxu0 %v2520_v9  ;;  %3096 = vmatprep.subr.bf16.mxu1 %v2522_v30  ;;  %v2593_v9 = vld [vmem:[#allocation5 + $0x950] sm:$0xff]  ;;  %v2600_v30 = vld [vmem:[#allocation5 + $0x988] sm:$0xff] }
 0x672   :  { %2925 = vmatpush1.bf16.msra.mxu0 %v2519_v20  ;;  %3097 = vmatpush1.bf16.msra.mxu1 %v2521_v41  ;;  %v2602_v20 = vld [vmem:[#allocation5 + $0x998] sm:$0xff]  ;;  %v2599_v41 = vld [vmem:[#allocation5 + $0x980] sm:$0xff] }
 0x673   :  { %2926 = vmatprep.subr.bf16.mxu0 %v2528_v28  ;;  %3098 = vmatprep.subr.bf16.mxu1 %v2530_v34  ;;  %v2601_v28 = vld [vmem:[#allocation5 + $0x990] sm:$0xff]  ;;  %v2608_v34 = vld [vmem:[#allocation5 + $0x9c8] sm:$0xff] }
 0x676   :  { %2927 = vmatpush1.bf16.msra.mxu0 %v2527_v6  ;;  %3099 = vmatpush1.bf16.msra.mxu1 %v2529_v49  ;;  %v2610_v6 = vld [vmem:[#allocation5 + $0x9d8] sm:$0xff]  ;;  %v2607_v49 = vld [vmem:[#allocation5 + $0x9c0] sm:$0xff] }
 0x677   :  { %2928 = vmatprep.subr.bf16.mxu0 %v2536_v47  ;;  %3100 = vmatprep.subr.bf16.mxu1 %v2538_v55  ;;  %v2609_v47 = vld [vmem:[#allocation5 + $0x9d0] sm:$0xff]  ;;  %v2616_v55 = vld [vmem:[#allocation5 + $0xa08] sm:$0xff] }
 0x67a   :  { %2929 = vmatpush1.bf16.msra.mxu0 %v2535_v26  ;;  %3101 = vmatpush1.bf16.msra.mxu1 %v2537_v32  ;;  %v2618_v26 = vld [vmem:[#allocation5 + $0xa18] sm:$0xff]  ;;  %v2615_v32 = vld [vmem:[#allocation5 + $0xa00] sm:$0xff] }
 0x67b   :  { %2930 = vmatprep.subr.bf16.mxu0 %v2544_v40  ;;  %3102 = vmatprep.subr.bf16.mxu1 %v2546_v0  ;;  %v2617_v40 = vld [vmem:[#allocation5 + $0xa10] sm:$0xff]  ;;  %v2624_v0 = vld [vmem:[#allocation5 + $0xa48] sm:$0xff] }
 0x67e   :  { %2931 = vmatpush1.bf16.msra.mxu0 %v2543_v46  ;;  %3103 = vmatpush1.bf16.msra.mxu1 %v2545_v15  ;;  %v2626_v46 = vld [vmem:[#allocation5 + $0xa58] sm:$0xff]  ;;  %v2623_v15 = vld [vmem:[#allocation5 + $0xa40] sm:$0xff] }
 0x67f   :  { %2943 = vmatprep.subr.bf16.mxu0 %v2552_v1  ;;  %3115 = vmatprep.subr.bf16.mxu1 %v2554_v48  ;;  %v2625_v1 = vld [vmem:[#allocation5 + $0xa50] sm:$0xff]  ;;  %v2632_v48 = vld [vmem:[#allocation5 + $0xa88] sm:$0xff] }
 0x681   :  { %2933 = vmatmul.mubr.bf16.vlgmr.msra.gmra.mrb[20].mxu0 %v5260_v44  ;;  %3105 = vmatmul.mubr.bf16.vlgmr.msra.gmra.mrb[20].mxu1 %v5260_v44 }
 0x682   :  { %2944 = vmatpush1.bf16.msra.mxu0 %v2551_v5  ;;  %3116 = vmatpush1.bf16.msra.mxu1 %v2553_v3  ;;  %v2634_v5 = vld [vmem:[#allocation5 + $0xa98] sm:$0xff]  ;;  %v2631_v3 = vld [vmem:[#allocation5 + $0xa80] sm:$0xff] }
 0x683   :  { %2945 = vmatprep.subr.bf16.mxu0 %v2560_v4  ;;  %3117 = vmatprep.subr.bf16.mxu1 %v2562_v31  ;;  %v2633_v4 = vld [vmem:[#allocation5 + $0xa90] sm:$0xff]  ;;  %v2640_v31 = vld [vmem:[#allocation5 + $0xac8] sm:$0xff] }
 0x684   :  { %2975 = vmatprep.mubr.bf16.mxu0 %v5266_v39  ;;  %3147 = vmatprep.mubr.bf16.mxu1 %v5266_v39 }
 0x686   :  { %2946 = vmatpush1.bf16.msra.mxu0 %v2559_v23  ;;  %3118 = vmatpush1.bf16.msra.mxu1 %v2561_v57  ;;  %v2642_v23 = vld [vmem:[#allocation5 + $0xad8] sm:$0xff]  ;;  %v2639_v57 = vld [vmem:[#allocation5 + $0xac0] sm:$0xff] }
 0x687   :  { %2947 = vmatprep.subr.bf16.mxu0 %v2568_v50  ;;  %3119 = vmatprep.subr.bf16.mxu1 %v2570_v8  ;;  %v2641_v50 = vld [vmem:[#allocation5 + $0xad0] sm:$0xff]  ;;  %v2648_v8 = vld [vmem:[#allocation5 + $0xb08] sm:$0xff] }
 0x68a   :  { %2948 = vmatpush1.bf16.msra.mxu0 %v2567_v43  ;;  %3120 = vmatpush1.bf16.msra.mxu1 %v2569_v25  ;;  %v2650_v43 = vld [vmem:[#allocation5 + $0xb18] sm:$0xff]  ;;  %v2647_v25 = vld [vmem:[#allocation5 + $0xb00] sm:$0xff] }
 0x68b   :  { %2949 = vmatprep.subr.bf16.mxu0 %v2576_v62  ;;  %3121 = vmatprep.subr.bf16.mxu1 %v2578_v18  ;;  %v2649_v62 = vld [vmem:[#allocation5 + $0xb10] sm:$0xff]  ;;  %v2656_v18 = vld [vmem:[#allocation5 + $0xb48] sm:$0xff] }
 0x68e   :  { %2950 = vmatpush1.bf16.msra.mxu0 %v2575_v19  ;;  %3122 = vmatpush1.bf16.msra.mxu1 %v2577_v53  ;;  %v2658_v19 = vld [vmem:[#allocation5 + $0xb58] sm:$0xff]  ;;  %v2655_v53 = vld [vmem:[#allocation5 + $0xb40] sm:$0xff] }
 0x68f   :  { %2951 = vmatprep.subr.bf16.mxu0 %v2584_v2  ;;  %3123 = vmatprep.subr.bf16.mxu1 %v2586_v42  ;;  %v2657_v2 = vld [vmem:[#allocation5 + $0xb50] sm:$0xff]  ;;  %v2664_v42 = vld [vmem:[#allocation5 + $0xb88] sm:$0xff] }
 0x692   :  { %2952 = vmatpush1.bf16.msra.mxu0 %v2583_v54  ;;  %3124 = vmatpush1.bf16.msra.mxu1 %v2585_v38  ;;  %v2666_v54 = vld [vmem:[#allocation5 + $0xb98] sm:$0xff]  ;;  %v2663_v38 = vld [vmem:[#allocation5 + $0xb80] sm:$0xff] }
 0x693   :  { %2953 = vmatprep.subr.bf16.mxu0 %v2592_v22  ;;  %3125 = vmatprep.subr.bf16.mxu1 %v2594_v17  ;;  %v2665_v22 = vld [vmem:[#allocation5 + $0xb90] sm:$0xff]  ;;  %v2672_v17 = vld [vmem:[#allocation5 + $0xbc8] sm:$0xff] }
 0x696   :  { %2954 = vmatpush1.bf16.msra.mxu0 %v2591_v21  ;;  %3126 = vmatpush1.bf16.msra.mxu1 %v2593_v9  ;;  %v2674_v21 = vld [vmem:[#allocation5 + $0xbd8] sm:$0xff]  ;;  %v2671_v9 = vld [vmem:[#allocation5 + $0xbc0] sm:$0xff] }
 0x697   :  { %2955 = vmatprep.subr.bf16.mxu0 %v2600_v30  ;;  %3127 = vmatprep.subr.bf16.mxu1 %v2602_v20  ;;  %v2673_v30 = vld [vmem:[#allocation5 + $0xbd0] sm:$0xff]  ;;  %v2680_v20 = vld [vmem:[#allocation5 + $0xc08] sm:$0xff] }
 0x69a   :  { %2956 = vmatpush1.bf16.msra.mxu0 %v2599_v41  ;;  %3128 = vmatpush1.bf16.msra.mxu1 %v2601_v28  ;;  %v2682_v41 = vld [vmem:[#allocation5 + $0xc18] sm:$0xff]  ;;  %v5276_v28 = vpack.c.bf16 %v2289_v12, %v2281_v36  ;;  %v2689_v36 = vld [vmem:[#allocation5 + $0xc50] sm:$0xff] }
 0x69b   :  { %2957 = vmatprep.subr.bf16.mxu0 %v2608_v34  ;;  %3129 = vmatprep.subr.bf16.mxu1 %v2610_v6  ;;  %v2679_v34 = vld [vmem:[#allocation5 + $0xc00] sm:$0xff]  ;;  %v2681_v6 = vld [vmem:[#allocation5 + $0xc10] sm:$0xff]  ;;  %v2698_v12 = vld [vmem:[#allocation5 + $0xc98] sm:$0xff] }
 0x69e   :  { %2958 = vmatpush1.bf16.msra.mxu0 %v2607_v49  ;;  %3130 = vmatpush1.bf16.msra.mxu1 %v2609_v47  ;;  %v2688_v49 = vld [vmem:[#allocation5 + $0xc48] sm:$0xff]  ;;  %v2690_v47 = vld [vmem:[#allocation5 + $0xc58] sm:$0xff] }
 0x69f   :  { %2959 = vmatprep.subr.bf16.mxu0 %v2616_v55  ;;  %3131 = vmatprep.subr.bf16.mxu1 %v2618_v26  ;;  %v5282_v55 = vpack.c.bf16 %v2292_v33, %v2284_v56  ;;  %v2697_v56 = vld [vmem:[#allocation5 + $0xc90] sm:$0xff]  ;;  %v2706_v33 = vld [vmem:[#allocation5 + $0xcd8] sm:$0xff]  ;;  %v2703_v26 = vld [vmem:[#allocation5 + $0xcc0] sm:$0xff] }
 0x6a2   :  { %2960 = vmatpush1.bf16.msra.mxu0 %v2615_v32  ;;  %3132 = vmatpush1.bf16.msra.mxu1 %v2617_v40  ;;  %v2705_v32 = vld [vmem:[#allocation5 + $0xcd0] sm:$0xff]  ;;  %v2712_v40 = vld [vmem:[#allocation5 + $0xd08] sm:$0xff] }
 0x6a3   :  { %2961 = vmatprep.subr.bf16.mxu0 %v2624_v0  ;;  %3133 = vmatprep.subr.bf16.mxu1 %v2626_v46  ;;  %v2714_v0 = vld [vmem:[#allocation5 + $0xd18] sm:$0xff]  ;;  %v2711_v46 = vld [vmem:[#allocation5 + $0xd00] sm:$0xff] }
 0x6a6   :  { %2962 = vmatpush1.bf16.msra.mxu0 %v2623_v15  ;;  %3134 = vmatpush1.bf16.msra.mxu1 %v2625_v1  ;;  %v2713_v15 = vld [vmem:[#allocation5 + $0xd10] sm:$0xff]  ;;  %v2720_v1 = vld [vmem:[#allocation5 + $0xd48] sm:$0xff] }
 0x6a7   :  { %2963 = vmatprep.subr.bf16.mxu0 %v2632_v48  ;;  %3135 = vmatprep.subr.bf16.mxu1 %v2634_v5  ;;  %v2722_v48 = vld [vmem:[#allocation5 + $0xd58] sm:$0xff]  ;;  %v2719_v5 = vld [vmem:[#allocation5 + $0xd40] sm:$0xff] }
 0x6aa   :  { %2964 = vmatpush1.bf16.msra.mxu0 %v2631_v3  ;;  %3136 = vmatpush1.bf16.msra.mxu1 %v2633_v4  ;;  %v2721_v3 = vld [vmem:[#allocation5 + $0xd50] sm:$0xff]  ;;  %v2728_v4 = vld [vmem:[#allocation5 + $0xd88] sm:$0xff] }
 0x6ab   :  { %2965 = vmatprep.subr.bf16.mxu0 %v2640_v31  ;;  %3137 = vmatprep.subr.bf16.mxu1 %v2642_v23  ;;  %v2730_v31 = vld [vmem:[#allocation5 + $0xd98] sm:$0xff]  ;;  %v2727_v23 = vld [vmem:[#allocation5 + $0xd80] sm:$0xff] }
 0x6ae   :  { %2966 = vmatpush1.bf16.msra.mxu0 %v2639_v57  ;;  %3138 = vmatpush1.bf16.msra.mxu1 %v2641_v50  ;;  %v2729_v57 = vld [vmem:[#allocation5 + $0xd90] sm:$0xff]  ;;  %v2736_v50 = vld [vmem:[#allocation5 + $0xdc8] sm:$0xff] }
 0x6af   :  { %2967 = vmatprep.subr.bf16.mxu0 %v2648_v8  ;;  %3139 = vmatprep.subr.bf16.mxu1 %v2650_v43  ;;  %v2738_v8 = vld [vmem:[#allocation5 + $0xdd8] sm:$0xff]  ;;  %v2735_v43 = vld [vmem:[#allocation5 + $0xdc0] sm:$0xff] }
 0x6b2   :  { %2968 = vmatpush1.bf16.msra.mxu0 %v2647_v25  ;;  %3140 = vmatpush1.bf16.msra.mxu1 %v2649_v62  ;;  %v2737_v25 = vld [vmem:[#allocation5 + $0xdd0] sm:$0xff]  ;;  %v2744_v62 = vld [vmem:[#allocation5 + $0xe08] sm:$0xff] }
 0x6b3   :  { %2969 = vmatprep.subr.bf16.mxu0 %v2656_v18  ;;  %3141 = vmatprep.subr.bf16.mxu1 %v2658_v19  ;;  %v2746_v18 = vld [vmem:[#allocation5 + $0xe18] sm:$0xff]  ;;  %v2743_v19 = vld [vmem:[#allocation5 + $0xe00] sm:$0xff] }
 0x6b6   :  { %2970 = vmatpush1.bf16.msra.mxu0 %v2655_v53  ;;  %3142 = vmatpush1.bf16.msra.mxu1 %v2657_v2  ;;  %v2745_v53 = vld [vmem:[#allocation5 + $0xe10] sm:$0xff]  ;;  %v2752_v2 = vld [vmem:[#allocation5 + $0xe48] sm:$0xff] }
 0x6b7   :  { %2971 = vmatprep.subr.bf16.mxu0 %v2664_v42  ;;  %3143 = vmatprep.subr.bf16.mxu1 %v2666_v54  ;;  %v2754_v42 = vld [vmem:[#allocation5 + $0xe58] sm:$0xff]  ;;  %v2751_v54 = vld [vmem:[#allocation5 + $0xe40] sm:$0xff] }
 0x6ba   :  { %2972 = vmatpush1.bf16.msra.mxu0 %v2663_v38  ;;  %3144 = vmatpush1.bf16.msra.mxu1 %v2665_v22  ;;  %v2753_v38 = vld [vmem:[#allocation5 + $0xe50] sm:$0xff]  ;;  %v2760_v22 = vld [vmem:[#allocation5 + $0xe88] sm:$0xff] }
 0x6bb   :  { %2973 = vmatprep.subr.bf16.mxu0 %v2672_v17  ;;  %3145 = vmatprep.subr.bf16.mxu1 %v2674_v21  ;;  %v2762_v17 = vld [vmem:[#allocation5 + $0xe98] sm:$0xff]  ;;  %v2759_v21 = vld [vmem:[#allocation5 + $0xe80] sm:$0xff] }
 0x6be   :  { %2974 = vmatpush1.bf16.msra.mxu0 %v2671_v9  ;;  %3146 = vmatpush1.bf16.msra.mxu1 %v2673_v30  ;;  %v2761_v9 = vld [vmem:[#allocation5 + $0xe90] sm:$0xff]  ;;  %v2768_v30 = vld [vmem:[#allocation5 + $0xec8] sm:$0xff] }
 0x6bf   :  { %2986 = vmatprep.subr.bf16.mxu0 %v2680_v20  ;;  %3158 = vmatprep.subr.bf16.mxu1 %v2682_v41  ;;  %v2770_v20 = vld [vmem:[#allocation5 + $0xed8] sm:$0xff]  ;;  %v2767_v41 = vld [vmem:[#allocation5 + $0xec0] sm:$0xff] }
 0x6c1   :  { %2976 = vmatmul.mubr.bf16.vlgmr.msra.gmra.mrb[20].mxu0 %v5276_v28  ;;  %3148 = vmatmul.mubr.bf16.vlgmr.msra.gmra.mrb[20].mxu1 %v5276_v28 }
 0x6c2   :  { %2987 = vmatpush1.bf16.msra.mxu0 %v2679_v34  ;;  %3159 = vmatpush1.bf16.msra.mxu1 %v2681_v6  ;;  %v2769_v34 = vld [vmem:[#allocation5 + $0xed0] sm:$0xff]  ;;  %v2776_v6 = vld [vmem:[#allocation5 + $0xf08] sm:$0xff] }
 0x6c3   :  { %2988 = vmatprep.subr.bf16.mxu0 %v2688_v49  ;;  %3160 = vmatprep.subr.bf16.mxu1 %v2690_v47  ;;  %v2778_v49 = vld [vmem:[#allocation5 + $0xf18] sm:$0xff]  ;;  %v2775_v47 = vld [vmem:[#allocation5 + $0xf00] sm:$0xff] }
 0x6c4   :  { %3018 = vmatprep.mubr.bf16.mxu0 %v5282_v55  ;;  %3190 = vmatprep.mubr.bf16.mxu1 %v5282_v55 }
 0x6c6   :  { %2989 = vmatpush1.bf16.msra.mxu0 %v2687_v16  ;;  %3161 = vmatpush1.bf16.msra.mxu1 %v2689_v36  ;;  %v2777_v16 = vld [vmem:[#allocation5 + $0xf10] sm:$0xff]  ;;  %v2784_v36 = vld [vmem:[#allocation5 + $0xf48] sm:$0xff] }
 0x6c7   :  { %2990 = vmatprep.subr.bf16.mxu0 %v2696_v37  ;;  %3162 = vmatprep.subr.bf16.mxu1 %v2698_v12  ;;  %v2786_v37 = vld [vmem:[#allocation5 + $0xf58] sm:$0xff]  ;;  %v2783_v12 = vld [vmem:[#allocation5 + $0xf40] sm:$0xff] }
 0x6ca   :  { %2991 = vmatpush1.bf16.msra.mxu0 %v2695_v27  ;;  %3163 = vmatpush1.bf16.msra.mxu1 %v2697_v56  ;;  %v2785_v27 = vld [vmem:[#allocation5 + $0xf50] sm:$0xff]  ;;  %v2792_v56 = vld [vmem:[#allocation5 + $0xf88] sm:$0xff] }
 0x6cb   :  { %2992 = vmatprep.subr.bf16.mxu0 %v2704_v29  ;;  %3164 = vmatprep.subr.bf16.mxu1 %v2706_v33  ;;  %v2794_v29 = vld [vmem:[#allocation5 + $0xf98] sm:$0xff]  ;;  %v2791_v33 = vld [vmem:[#allocation5 + $0xf80] sm:$0xff] }
 0x6ce   :  { %2993 = vmatpush1.bf16.msra.mxu0 %v2703_v26  ;;  %3165 = vmatpush1.bf16.msra.mxu1 %v2705_v32  ;;  %v2793_v26 = vld [vmem:[#allocation5 + $0xf90] sm:$0xff]  ;;  %v2800_v32 = vld [vmem:[#allocation5 + $0xfc8] sm:$0xff] }
 0x6cf   :  { %2994 = vmatprep.subr.bf16.mxu0 %v2712_v40  ;;  %3166 = vmatprep.subr.bf16.mxu1 %v2714_v0  ;;  %v2802_v40 = vld [vmem:[#allocation5 + $0xfd8] sm:$0xff]  ;;  %v2799_v0 = vld [vmem:[#allocation5 + $0xfc0] sm:$0xff] }
 0x6d2   :  { %2995 = vmatpush1.bf16.msra.mxu0 %v2711_v46  ;;  %3167 = vmatpush1.bf16.msra.mxu1 %v2713_v15  ;;  %v2801_v46 = vld [vmem:[#allocation5 + $0xfd0] sm:$0xff]  ;;  %v2300_v15 = vld [vmem:[#allocation5 + $0x28] sm:$0xff] }
 0x6d3   :  { %2996 = vmatprep.subr.bf16.mxu0 %v2720_v1  ;;  %3168 = vmatprep.subr.bf16.mxu1 %v2722_v48  ;;  %v2302_v1 = vld [vmem:[#allocation5 + $0x38] sm:$0xff]  ;;  %v5292_v48 = vpack.c.bf16 %v2291_v7, %v2283_v35  ;;  %v2316_v35 = vld [vmem:[#allocation5 + $0xa8] sm:$0xff] }
 0x6d4   :  { %v2318_v7 = vld [vmem:[#allocation5 + $0xb8] sm:$0xff] }
 0x6d6   :  { %2997 = vmatpush1.bf16.msra.mxu0 %v2719_v5  ;;  %3169 = vmatpush1.bf16.msra.mxu1 %v2721_v3  ;;  %v2299_v5 = vld [vmem:[#allocation5 + $0x20] sm:$0xff]  ;;  %v2301_v3 = vld [vmem:[#allocation5 + $0x30] sm:$0xff] }
 0x6d7   :  { %2998 = vmatprep.subr.bf16.mxu0 %v2728_v4  ;;  %3170 = vmatprep.subr.bf16.mxu1 %v2730_v31  ;;  %v2308_v4 = vld [vmem:[#allocation5 + $0x68] sm:$0xff]  ;;  %v2310_v31 = vld [vmem:[#allocation5 + $0x78] sm:$0xff] }
 0x6da   :  { %2999 = vmatpush1.bf16.msra.mxu0 %v2727_v23  ;;  %3171 = vmatpush1.bf16.msra.mxu1 %v2729_v57  ;;  %v2315_v23 = vld [vmem:[#allocation5 + $0xa0] sm:$0xff]  ;;  %v2317_v57 = vld [vmem:[#allocation5 + $0xb0] sm:$0xff] }
 0x6db   :  { %3000 = vmatprep.subr.bf16.mxu0 %v2736_v50  ;;  %3172 = vmatprep.subr.bf16.mxu1 %v2738_v8  ;;  %v2324_v50 = vld [vmem:[#allocation5 + $0xe8] sm:$0xff]  ;;  %v2326_v8 = vld [vmem:[#allocation5 + $0xf8] sm:$0xff] }
 0x6de   :  { %3001 = vmatpush1.bf16.msra.mxu0 %v2735_v43  ;;  %3173 = vmatpush1.bf16.msra.mxu1 %v2737_v25  ;;  %v2323_v43 = vld [vmem:[#allocation5 + $0xe0] sm:$0xff]  ;;  %v2325_v25 = vld [vmem:[#allocation5 + $0xf0] sm:$0xff] }
 0x6df   :  { %3002 = vmatprep.subr.bf16.mxu0 %v2744_v62  ;;  %3174 = vmatprep.subr.bf16.mxu1 %v2746_v18  ;;  %v2332_v62 = vld [vmem:[#allocation5 + $0x128] sm:$0xff]  ;;  %v2334_v18 = vld [vmem:[#allocation5 + $0x138] sm:$0xff] }
 0x6e2   :  { %3003 = vmatpush1.bf16.msra.mxu0 %v2743_v19  ;;  %3175 = vmatpush1.bf16.msra.mxu1 %v2745_v53  ;;  %v2333_v19 = vld [vmem:[#allocation5 + $0x130] sm:$0xff]  ;;  %v2340_v53 = vld [vmem:[#allocation5 + $0x168] sm:$0xff] }
 0x6e3   :  { %3004 = vmatprep.subr.bf16.mxu0 %v2752_v2  ;;  %3176 = vmatprep.subr.bf16.mxu1 %v2754_v42  ;;  %v2342_v2 = vld [vmem:[#allocation5 + $0x178] sm:$0xff]  ;;  %v2339_v42 = vld [vmem:[#allocation5 + $0x160] sm:$0xff] }
 0x6e6   :  { %3005 = vmatpush1.bf16.msra.mxu0 %v2751_v54  ;;  %3177 = vmatpush1.bf16.msra.mxu1 %v2753_v38  ;;  %v2341_v54 = vld [vmem:[#allocation5 + $0x170] sm:$0xff]  ;;  %v2348_v38 = vld [vmem:[#allocation5 + $0x1a8] sm:$0xff] }
 0x6e7   :  { %3006 = vmatprep.subr.bf16.mxu0 %v2760_v22  ;;  %3178 = vmatprep.subr.bf16.mxu1 %v2762_v17  ;;  %v2350_v22 = vld [vmem:[#allocation5 + $0x1b8] sm:$0xff]  ;;  %v2347_v17 = vld [vmem:[#allocation5 + $0x1a0] sm:$0xff] }
 0x6ea   :  { %3007 = vmatpush1.bf16.msra.mxu0 %v2759_v21  ;;  %3179 = vmatpush1.bf16.msra.mxu1 %v2761_v9  ;;  %v2349_v21 = vld [vmem:[#allocation5 + $0x1b0] sm:$0xff]  ;;  %v2356_v9 = vld [vmem:[#allocation5 + $0x1e8] sm:$0xff] }
 0x6eb   :  { %3008 = vmatprep.subr.bf16.mxu0 %v2768_v30  ;;  %3180 = vmatprep.subr.bf16.mxu1 %v2770_v20  ;;  %v2358_v30 = vld [vmem:[#allocation5 + $0x1f8] sm:$0xff]  ;;  %v2355_v20 = vld [vmem:[#allocation5 + $0x1e0] sm:$0xff] }
 0x6ee   :  { %3009 = vmatpush1.bf16.msra.mxu0 %v2767_v41  ;;  %3181 = vmatpush1.bf16.msra.mxu1 %v2769_v34  ;;  %v2357_v41 = vld [vmem:[#allocation5 + $0x1f0] sm:$0xff]  ;;  %v2364_v34 = vld [vmem:[#allocation5 + $0x228] sm:$0xff] }
 0x6ef   :  { %3010 = vmatprep.subr.bf16.mxu0 %v2776_v6  ;;  %3182 = vmatprep.subr.bf16.mxu1 %v2778_v49  ;;  %v2366_v6 = vld [vmem:[#allocation5 + $0x238] sm:$0xff]  ;;  %v2363_v49 = vld [vmem:[#allocation5 + $0x220] sm:$0xff] }
 0x6f2   :  { %3011 = vmatpush1.bf16.msra.mxu0 %v2775_v47  ;;  %3183 = vmatpush1.bf16.msra.mxu1 %v2777_v16  ;;  %v2365_v47 = vld [vmem:[#allocation5 + $0x230] sm:$0xff]  ;;  %v2372_v16 = vld [vmem:[#allocation5 + $0x268] sm:$0xff] }
 0x6f3   :  { %3012 = vmatprep.subr.bf16.mxu0 %v2784_v36  ;;  %3184 = vmatprep.subr.bf16.mxu1 %v2786_v37  ;;  %v2374_v36 = vld [vmem:[#allocation5 + $0x278] sm:$0xff]  ;;  %v2371_v37 = vld [vmem:[#allocation5 + $0x260] sm:$0xff] }
 0x6f6   :  { %3013 = vmatpush1.bf16.msra.mxu0 %v2783_v12  ;;  %3185 = vmatpush1.bf16.msra.mxu1 %v2785_v27  ;;  %v2373_v12 = vld [vmem:[#allocation5 + $0x270] sm:$0xff]  ;;  %v2380_v27 = vld [vmem:[#allocation5 + $0x2a8] sm:$0xff] }
 0x6f7   :  { %3014 = vmatprep.subr.bf16.mxu0 %v2792_v56  ;;  %3186 = vmatprep.subr.bf16.mxu1 %v2794_v29  ;;  %v2382_v56 = vld [vmem:[#allocation5 + $0x2b8] sm:$0xff]  ;;  %v2379_v29 = vld [vmem:[#allocation5 + $0x2a0] sm:$0xff] }
 0x6fa   :  { %3015 = vmatpush1.bf16.msra.mxu0 %v2791_v33  ;;  %3187 = vmatpush1.bf16.msra.mxu1 %v2793_v26  ;;  %v2381_v33 = vld [vmem:[#allocation5 + $0x2b0] sm:$0xff]  ;;  %v2388_v26 = vld [vmem:[#allocation5 + $0x2e8] sm:$0xff] }
 0x6fb   :  { %3016 = vmatprep.subr.bf16.mxu0 %v2800_v32  ;;  %3188 = vmatprep.subr.bf16.mxu1 %v2802_v40  ;;  %v2390_v32 = vld [vmem:[#allocation5 + $0x2f8] sm:$0xff]  ;;  %v2387_v40 = vld [vmem:[#allocation5 + $0x2e0] sm:$0xff] }
 0x6fe   :  { %3017 = vmatpush1.bf16.msra.mxu0 %v2799_v0  ;;  %3189 = vmatpush1.bf16.msra.mxu1 %v2801_v46  ;;  %v2389_v0 = vld [vmem:[#allocation5 + $0x2f0] sm:$0xff]  ;;  %v2396_v46 = vld [vmem:[#allocation5 + $0x328] sm:$0xff] }
 0x6ff   :  { %3201 = vmatprep.subr.bf16.mxu0 %v2300_v15  ;;  %3373 = vmatprep.subr.bf16.mxu1 %v2302_v1  ;;  %v2398_v15 = vld [vmem:[#allocation5 + $0x338] sm:$0xff]  ;;  %v2395_v1 = vld [vmem:[#allocation5 + $0x320] sm:$0xff] }
 0x701   :  { %3019 = vmatmul.mubr.bf16.vlgmr.msra.gmra.mrb[20].mxu0 %v5292_v48  ;;  %3191 = vmatmul.mubr.bf16.vlgmr.msra.gmra.mrb[20].mxu1 %v5292_v48 }
 0x702   :  { %3202 = vmatpush1.bf16.msra.mxu0 %v2299_v5  ;;  %3374 = vmatpush1.bf16.msra.mxu1 %v2301_v3  ;;  %v2397_v5 = vld [vmem:[#allocation5 + $0x330] sm:$0xff]  ;;  %v2404_v3 = vld [vmem:[#allocation5 + $0x368] sm:$0xff] }
 0x703   :  { %3203 = vmatprep.subr.bf16.mxu0 %v2308_v4  ;;  %3375 = vmatprep.subr.bf16.mxu1 %v2310_v31  ;;  %v2406_v4 = vld [vmem:[#allocation5 + $0x378] sm:$0xff]  ;;  %v2403_v31 = vld [vmem:[#allocation5 + $0x360] sm:$0xff] }
 0x704   :  { %3233 = vmatprep.mubr.bf16.mxu0 %v5236_v45  ;;  %3405 = vmatprep.mubr.bf16.mxu1 %v5236_v45  ;;  %v2331_v45 = vld [vmem:[#allocation5 + $0x120] sm:$0xff] }
 0x706   :  { %3204 = vmatpush1.bf16.msra.mxu0 %v2307_v63  ;;  %3376 = vmatpush1.bf16.msra.mxu1 %v2309_v52  ;;  %v2405_v63 = vld [vmem:[#allocation5 + $0x370] sm:$0xff]  ;;  %v2412_v52 = vld [vmem:[#allocation5 + $0x3a8] sm:$0xff] }
 0x707   :  { %3205 = vmatprep.subr.bf16.mxu0 %v2316_v35  ;;  %3377 = vmatprep.subr.bf16.mxu1 %v2318_v7  ;;  %v2414_v35 = vld [vmem:[#allocation5 + $0x3b8] sm:$0xff]  ;;  %v2411_v7 = vld [vmem:[#allocation5 + $0x3a0] sm:$0xff] }
 0x70a   :  { %3206 = vmatpush1.bf16.msra.mxu0 %v2315_v23  ;;  %3378 = vmatpush1.bf16.msra.mxu1 %v2317_v57  ;;  %v2413_v23 = vld [vmem:[#allocation5 + $0x3b0] sm:$0xff]  ;;  %v2420_v57 = vld [vmem:[#allocation5 + $0x3e8] sm:$0xff] }
 0x70b   :  { %3207 = vmatprep.subr.bf16.mxu0 %v2324_v50  ;;  %3379 = vmatprep.subr.bf16.mxu1 %v2326_v8  ;;  %v2422_v50 = vld [vmem:[#allocation5 + $0x3f8] sm:$0xff]  ;;  %v2419_v8 = vld [vmem:[#allocation5 + $0x3e0] sm:$0xff] }
 0x70e   :  { %3208 = vmatpush1.bf16.msra.mxu0 %v2323_v43  ;;  %3380 = vmatpush1.bf16.msra.mxu1 %v2325_v25  ;;  %v2421_v43 = vld [vmem:[#allocation5 + $0x3f0] sm:$0xff]  ;;  %v2428_v25 = vld [vmem:[#allocation5 + $0x428] sm:$0xff] }
 0x70f   :  { %3209 = vmatprep.subr.bf16.mxu0 %v2332_v62  ;;  %3381 = vmatprep.subr.bf16.mxu1 %v2334_v18  ;;  %v2430_v62 = vld [vmem:[#allocation5 + $0x438] sm:$0xff]  ;;  %v2427_v18 = vld [vmem:[#allocation5 + $0x420] sm:$0xff] }
 0x712   :  { %3210 = vmatpush1.bf16.msra.mxu0 %v2331_v45  ;;  %3382 = vmatpush1.bf16.msra.mxu1 %v2333_v19  ;;  %v2429_v45 = vld [vmem:[#allocation5 + $0x430] sm:$0xff]  ;;  %v2436_v19 = vld [vmem:[#allocation5 + $0x468] sm:$0xff] }
 0x713   :  { %3211 = vmatprep.subr.bf16.mxu0 %v2340_v53  ;;  %3383 = vmatprep.subr.bf16.mxu1 %v2342_v2  ;;  %v2438_v53 = vld [vmem:[#allocation5 + $0x478] sm:$0xff]  ;;  %v2435_v2 = vld [vmem:[#allocation5 + $0x460] sm:$0xff] }
 0x716   :  { %3212 = vmatpush1.bf16.msra.mxu0 %v2339_v42  ;;  %3384 = vmatpush1.bf16.msra.mxu1 %v2341_v54  ;;  %v2437_v42 = vld [vmem:[#allocation5 + $0x470] sm:$0xff]  ;;  %v2444_v54 = vld [vmem:[#allocation5 + $0x4a8] sm:$0xff] }
 0x717   :  { %3213 = vmatprep.subr.bf16.mxu0 %v2348_v38  ;;  %3385 = vmatprep.subr.bf16.mxu1 %v2350_v22  ;;  %v2446_v38 = vld [vmem:[#allocation5 + $0x4b8] sm:$0xff]  ;;  %v2443_v22 = vld [vmem:[#allocation5 + $0x4a0] sm:$0xff] }
 0x71a   :  { %3214 = vmatpush1.bf16.msra.mxu0 %v2347_v17  ;;  %3386 = vmatpush1.bf16.msra.mxu1 %v2349_v21  ;;  %v2445_v17 = vld [vmem:[#allocation5 + $0x4b0] sm:$0xff]  ;;  %v2452_v21 = vld [vmem:[#allocation5 + $0x4e8] sm:$0xff] }
 0x71b   :  { %3215 = vmatprep.subr.bf16.mxu0 %v2356_v9  ;;  %3387 = vmatprep.subr.bf16.mxu1 %v2358_v30  ;;  %v2451_v9 = vld [vmem:[#allocation5 + $0x4e0] sm:$0xff]  ;;  %v2453_v30 = vld [vmem:[#allocation5 + $0x4f0] sm:$0xff] }
 0x71e   :  { %3216 = vmatpush1.bf16.msra.mxu0 %v2355_v20  ;;  %3388 = vmatpush1.bf16.msra.mxu1 %v2357_v41  ;;  %v2460_v20 = vld [vmem:[#allocation5 + $0x528] sm:$0xff]  ;;  %v2462_v41 = vld [vmem:[#allocation5 + $0x538] sm:$0xff] }
 0x71f   :  { %3217 = vmatprep.subr.bf16.mxu0 %v2364_v34  ;;  %3389 = vmatprep.subr.bf16.mxu1 %v2366_v6  ;;  %v2461_v34 = vld [vmem:[#allocation5 + $0x530] sm:$0xff]  ;;  %v2468_v6 = vld [vmem:[#allocation5 + $0x568] sm:$0xff] }
 0x722   :  { %3218 = vmatpush1.bf16.msra.mxu0 %v2363_v49  ;;  %3390 = vmatpush1.bf16.msra.mxu1 %v2365_v47  ;;  %v2470_v49 = vld [vmem:[#allocation5 + $0x578] sm:$0xff]  ;;  %v2467_v47 = vld [vmem:[#allocation5 + $0x560] sm:$0xff] }
 0x723   :  { %3219 = vmatprep.subr.bf16.mxu0 %v2372_v16  ;;  %3391 = vmatprep.subr.bf16.mxu1 %v2374_v36  ;;  %v2469_v16 = vld [vmem:[#allocation5 + $0x570] sm:$0xff]  ;;  %v2476_v36 = vld [vmem:[#allocation5 + $0x5a8] sm:$0xff] }
 0x726   :  { %3220 = vmatpush1.bf16.msra.mxu0 %v2371_v37  ;;  %3392 = vmatpush1.bf16.msra.mxu1 %v2373_v12  ;;  %v2478_v37 = vld [vmem:[#allocation5 + $0x5b8] sm:$0xff]  ;;  %v2475_v12 = vld [vmem:[#allocation5 + $0x5a0] sm:$0xff] }
 0x727   :  { %3221 = vmatprep.subr.bf16.mxu0 %v2380_v27  ;;  %3393 = vmatprep.subr.bf16.mxu1 %v2382_v56  ;;  %v2477_v27 = vld [vmem:[#allocation5 + $0x5b0] sm:$0xff]  ;;  %v2484_v56 = vld [vmem:[#allocation5 + $0x5e8] sm:$0xff] }
 0x72a   :  { %3222 = vmatpush1.bf16.msra.mxu0 %v2379_v29  ;;  %3394 = vmatpush1.bf16.msra.mxu1 %v2381_v33  ;;  %v2486_v29 = vld [vmem:[#allocation5 + $0x5f8] sm:$0xff]  ;;  %v2483_v33 = vld [vmem:[#allocation5 + $0x5e0] sm:$0xff] }
 0x72b   :  { %3223 = vmatprep.subr.bf16.mxu0 %v2388_v26  ;;  %3395 = vmatprep.subr.bf16.mxu1 %v2390_v32  ;;  %v2485_v26 = vld [vmem:[#allocation5 + $0x5f0] sm:$0xff]  ;;  %v2492_v32 = vld [vmem:[#allocation5 + $0x628] sm:$0xff] }
 0x72e   :  { %3224 = vmatpush1.bf16.msra.mxu0 %v2387_v40  ;;  %3396 = vmatpush1.bf16.msra.mxu1 %v2389_v0  ;;  %v2494_v40 = vld [vmem:[#allocation5 + $0x638] sm:$0xff]  ;;  %v2491_v0 = vld [vmem:[#allocation5 + $0x620] sm:$0xff] }
 0x72f   :  { %3225 = vmatprep.subr.bf16.mxu0 %v2396_v46  ;;  %3397 = vmatprep.subr.bf16.mxu1 %v2398_v15  ;;  %v2493_v46 = vld [vmem:[#allocation5 + $0x630] sm:$0xff]  ;;  %v2500_v15 = vld [vmem:[#allocation5 + $0x668] sm:$0xff] }
 0x732   :  { %3226 = vmatpush1.bf16.msra.mxu0 %v2395_v1  ;;  %3398 = vmatpush1.bf16.msra.mxu1 %v2397_v5  ;;  %v2502_v1 = vld [vmem:[#allocation5 + $0x678] sm:$0xff]  ;;  %v2499_v5 = vld [vmem:[#allocation5 + $0x660] sm:$0xff] }
 0x733   :  { %3227 = vmatprep.subr.bf16.mxu0 %v2404_v3  ;;  %3399 = vmatprep.subr.bf16.mxu1 %v2406_v4  ;;  %v2501_v3 = vld [vmem:[#allocation5 + $0x670] sm:$0xff]  ;;  %v2508_v4 = vld [vmem:[#allocation5 + $0x6a8] sm:$0xff] }
 0x736   :  { %3228 = vmatpush1.bf16.msra.mxu0 %v2403_v31  ;;  %3400 = vmatpush1.bf16.msra.mxu1 %v2405_v63  ;;  %v2510_v31 = vld [vmem:[#allocation5 + $0x6b8] sm:$0xff]  ;;  %v2507_v63 = vld [vmem:[#allocation5 + $0x6a0] sm:$0xff] }
 0x737   :  { %3229 = vmatprep.subr.bf16.mxu0 %v2412_v52  ;;  %3401 = vmatprep.subr.bf16.mxu1 %v2414_v35  ;;  %v2509_v52 = vld [vmem:[#allocation5 + $0x6b0] sm:$0xff]  ;;  %v2516_v35 = vld [vmem:[#allocation5 + $0x6e8] sm:$0xff] }
 0x73a   :  { %3230 = vmatpush1.bf16.msra.mxu0 %v2411_v7  ;;  %3402 = vmatpush1.bf16.msra.mxu1 %v2413_v23  ;;  %v2518_v7 = vld [vmem:[#allocation5 + $0x6f8] sm:$0xff]  ;;  %v2515_v23 = vld [vmem:[#allocation5 + $0x6e0] sm:$0xff] }
 0x73b   :  { %3231 = vmatprep.subr.bf16.mxu0 %v2420_v57  ;;  %3403 = vmatprep.subr.bf16.mxu1 %v2422_v50  ;;  %v2517_v57 = vld [vmem:[#allocation5 + $0x6f0] sm:$0xff]  ;;  %v2524_v50 = vld [vmem:[#allocation5 + $0x728] sm:$0xff] }
 0x73e   :  { %3232 = vmatpush1.bf16.msra.mxu0 %v2419_v8  ;;  %3404 = vmatpush1.bf16.msra.mxu1 %v2421_v43  ;;  %v2526_v8 = vld [vmem:[#allocation5 + $0x738] sm:$0xff]  ;;  %v2523_v43 = vld [vmem:[#allocation5 + $0x720] sm:$0xff] }
 0x73f   :  { %3244 = vmatprep.subr.bf16.mxu0 %v2428_v25  ;;  %3416 = vmatprep.subr.bf16.mxu1 %v2430_v62  ;;  %v2525_v25 = vld [vmem:[#allocation5 + $0x730] sm:$0xff]  ;;  %v2532_v62 = vld [vmem:[#allocation5 + $0x768] sm:$0xff] }
 0x741   :  { %3234 = vmatmul.mubr.bf16.vlgmr.msra.gmra.mrb[24].mxu0 %v5244_v51  ;;  %3406 = vmatmul.mubr.bf16.vlgmr.msra.gmra.mrb[24].mxu1 %v5244_v51  ;;  %v2454_v51 = vld [vmem:[#allocation5 + $0x4f8] sm:$0xff] }
 0x742   :  { %3245 = vmatpush1.bf16.msra.mxu0 %v2427_v18  ;;  %3417 = vmatpush1.bf16.msra.mxu1 %v2429_v45  ;;  %v2534_v18 = vld [vmem:[#allocation5 + $0x778] sm:$0xff]  ;;  %v2531_v45 = vld [vmem:[#allocation5 + $0x760] sm:$0xff] }
 0x743   :  { %3246 = vmatprep.subr.bf16.mxu0 %v2436_v19  ;;  %3418 = vmatprep.subr.bf16.mxu1 %v2438_v53  ;;  %v2533_v19 = vld [vmem:[#allocation5 + $0x770] sm:$0xff]  ;;  %v2540_v53 = vld [vmem:[#allocation5 + $0x7a8] sm:$0xff] }
 0x744   :  { %3276 = vmatprep.mubr.bf16.mxu0 %v5250_v24  ;;  %3448 = vmatprep.mubr.bf16.mxu1 %v5250_v24  ;;  %v2459_v24 = vld [vmem:[#allocation5 + $0x520] sm:$0xff] }
 0x746   :  { %3247 = vmatpush1.bf16.msra.mxu0 %v2435_v2  ;;  %3419 = vmatpush1.bf16.msra.mxu1 %v2437_v42  ;;  %v2542_v2 = vld [vmem:[#allocation5 + $0x7b8] sm:$0xff]  ;;  %v2539_v42 = vld [vmem:[#allocation5 + $0x7a0] sm:$0xff] }
 0x747   :  { %3248 = vmatprep.subr.bf16.mxu0 %v2444_v54  ;;  %3420 = vmatprep.subr.bf16.mxu1 %v2446_v38  ;;  %v2541_v54 = vld [vmem:[#allocation5 + $0x7b0] sm:$0xff]  ;;  %v2548_v38 = vld [vmem:[#allocation5 + $0x7e8] sm:$0xff] }
 0x74a   :  { %3249 = vmatpush1.bf16.msra.mxu0 %v2443_v22  ;;  %3421 = vmatpush1.bf16.msra.mxu1 %v2445_v17  ;;  %v2550_v22 = vld [vmem:[#allocation5 + $0x7f8] sm:$0xff]  ;;  %v2547_v17 = vld [vmem:[#allocation5 + $0x7e0] sm:$0xff] }
 0x74b   :  { %3250 = vmatprep.subr.bf16.mxu0 %v2452_v21  ;;  %3422 = vmatprep.subr.bf16.mxu1 %v2454_v51  ;;  %v2549_v21 = vld [vmem:[#allocation5 + $0x7f0] sm:$0xff]  ;;  %v2556_v51 = vld [vmem:[#allocation5 + $0x828] sm:$0xff] }
 0x74e   :  { %3251 = vmatpush1.bf16.msra.mxu0 %v2451_v9  ;;  %3423 = vmatpush1.bf16.msra.mxu1 %v2453_v30  ;;  %v2558_v9 = vld [vmem:[#allocation5 + $0x838] sm:$0xff]  ;;  %v2555_v30 = vld [vmem:[#allocation5 + $0x820] sm:$0xff] }
 0x74f   :  { %3252 = vmatprep.subr.bf16.mxu0 %v2460_v20  ;;  %3424 = vmatprep.subr.bf16.mxu1 %v2462_v41  ;;  %v2557_v20 = vld [vmem:[#allocation5 + $0x830] sm:$0xff]  ;;  %v2564_v41 = vld [vmem:[#allocation5 + $0x868] sm:$0xff] }
 0x752   :  { %3253 = vmatpush1.bf16.msra.mxu0 %v2459_v24  ;;  %3425 = vmatpush1.bf16.msra.mxu1 %v2461_v34  ;;  %v2566_v24 = vld [vmem:[#allocation5 + $0x878] sm:$0xff]  ;;  %v2563_v34 = vld [vmem:[#allocation5 + $0x860] sm:$0xff] }
 0x753   :  { %3254 = vmatprep.subr.bf16.mxu0 %v2468_v6  ;;  %3426 = vmatprep.subr.bf16.mxu1 %v2470_v49  ;;  %v2565_v6 = vld [vmem:[#allocation5 + $0x870] sm:$0xff]  ;;  %v2572_v49 = vld [vmem:[#allocation5 + $0x8a8] sm:$0xff] }
 0x756   :  { %3255 = vmatpush1.bf16.msra.mxu0 %v2467_v47  ;;  %3427 = vmatpush1.bf16.msra.mxu1 %v2469_v16  ;;  %v2574_v47 = vld [vmem:[#allocation5 + $0x8b8] sm:$0xff]  ;;  %v2571_v16 = vld [vmem:[#allocation5 + $0x8a0] sm:$0xff] }
 0x757   :  { %3256 = vmatprep.subr.bf16.mxu0 %v2476_v36  ;;  %3428 = vmatprep.subr.bf16.mxu1 %v2478_v37  ;;  %v2573_v36 = vld [vmem:[#allocation5 + $0x8b0] sm:$0xff]  ;;  %v2580_v37 = vld [vmem:[#allocation5 + $0x8e8] sm:$0xff] }
 0x75a   :  { %3257 = vmatpush1.bf16.msra.mxu0 %v2475_v12  ;;  %3429 = vmatpush1.bf16.msra.mxu1 %v2477_v27  ;;  %v2579_v12 = vld [vmem:[#allocation5 + $0x8e0] sm:$0xff]  ;;  %v2581_v27 = vld [vmem:[#allocation5 + $0x8f0] sm:$0xff] }
 0x75b   :  { %3258 = vmatprep.subr.bf16.mxu0 %v2484_v56  ;;  %3430 = vmatprep.subr.bf16.mxu1 %v2486_v29  ;;  %v2588_v56 = vld [vmem:[#allocation5 + $0x928] sm:$0xff]  ;;  %v2590_v29 = vld [vmem:[#allocation5 + $0x938] sm:$0xff] }
 0x75e   :  { %3259 = vmatpush1.bf16.msra.mxu0 %v2483_v33  ;;  %3431 = vmatpush1.bf16.msra.mxu1 %v2485_v26  ;;  %v2589_v33 = vld [vmem:[#allocation5 + $0x930] sm:$0xff]  ;;  %v2596_v26 = vld [vmem:[#allocation5 + $0x968] sm:$0xff] }
 0x75f   :  { %3260 = vmatprep.subr.bf16.mxu0 %v2492_v32  ;;  %3432 = vmatprep.subr.bf16.mxu1 %v2494_v40  ;;  %v2598_v32 = vld [vmem:[#allocation5 + $0x978] sm:$0xff]  ;;  %v2595_v40 = vld [vmem:[#allocation5 + $0x960] sm:$0xff] }
 0x762   :  { %3261 = vmatpush1.bf16.msra.mxu0 %v2491_v0  ;;  %3433 = vmatpush1.bf16.msra.mxu1 %v2493_v46  ;;  %v2597_v0 = vld [vmem:[#allocation5 + $0x970] sm:$0xff]  ;;  %v2604_v46 = vld [vmem:[#allocation5 + $0x9a8] sm:$0xff] }
 0x763   :  { %3262 = vmatprep.subr.bf16.mxu0 %v2500_v15  ;;  %3434 = vmatprep.subr.bf16.mxu1 %v2502_v1  ;;  %v2606_v15 = vld [vmem:[#allocation5 + $0x9b8] sm:$0xff]  ;;  %v2603_v1 = vld [vmem:[#allocation5 + $0x9a0] sm:$0xff] }
 0x766   :  { %3263 = vmatpush1.bf16.msra.mxu0 %v2499_v5  ;;  %3435 = vmatpush1.bf16.msra.mxu1 %v2501_v3  ;;  %v2605_v5 = vld [vmem:[#allocation5 + $0x9b0] sm:$0xff]  ;;  %v2612_v3 = vld [vmem:[#allocation5 + $0x9e8] sm:$0xff] }
 0x767   :  { %3264 = vmatprep.subr.bf16.mxu0 %v2508_v4  ;;  %3436 = vmatprep.subr.bf16.mxu1 %v2510_v31  ;;  %v2614_v4 = vld [vmem:[#allocation5 + $0x9f8] sm:$0xff]  ;;  %v2611_v31 = vld [vmem:[#allocation5 + $0x9e0] sm:$0xff] }
 0x76a   :  { %3265 = vmatpush1.bf16.msra.mxu0 %v2507_v63  ;;  %3437 = vmatpush1.bf16.msra.mxu1 %v2509_v52  ;;  %v2613_v63 = vld [vmem:[#allocation5 + $0x9f0] sm:$0xff]  ;;  %v2620_v52 = vld [vmem:[#allocation5 + $0xa28] sm:$0xff] }
 0x76b   :  { %3266 = vmatprep.subr.bf16.mxu0 %v2516_v35  ;;  %3438 = vmatprep.subr.bf16.mxu1 %v2518_v7  ;;  %v2622_v35 = vld [vmem:[#allocation5 + $0xa38] sm:$0xff]  ;;  %v2619_v7 = vld [vmem:[#allocation5 + $0xa20] sm:$0xff] }
 0x76e   :  { %3267 = vmatpush1.bf16.msra.mxu0 %v2515_v23  ;;  %3439 = vmatpush1.bf16.msra.mxu1 %v2517_v57  ;;  %v2621_v23 = vld [vmem:[#allocation5 + $0xa30] sm:$0xff]  ;;  %v2628_v57 = vld [vmem:[#allocation5 + $0xa68] sm:$0xff] }
 0x76f   :  { %3268 = vmatprep.subr.bf16.mxu0 %v2524_v50  ;;  %3440 = vmatprep.subr.bf16.mxu1 %v2526_v8  ;;  %v2630_v50 = vld [vmem:[#allocation5 + $0xa78] sm:$0xff]  ;;  %v2627_v8 = vld [vmem:[#allocation5 + $0xa60] sm:$0xff] }
 0x772   :  { %3269 = vmatpush1.bf16.msra.mxu0 %v2523_v43  ;;  %3441 = vmatpush1.bf16.msra.mxu1 %v2525_v25  ;;  %v2629_v43 = vld [vmem:[#allocation5 + $0xa70] sm:$0xff]  ;;  %v2636_v25 = vld [vmem:[#allocation5 + $0xaa8] sm:$0xff] }
 0x773   :  { %3270 = vmatprep.subr.bf16.mxu0 %v2532_v62  ;;  %3442 = vmatprep.subr.bf16.mxu1 %v2534_v18  ;;  %v2638_v62 = vld [vmem:[#allocation5 + $0xab8] sm:$0xff]  ;;  %v2635_v18 = vld [vmem:[#allocation5 + $0xaa0] sm:$0xff] }
 0x776   :  { %3271 = vmatpush1.bf16.msra.mxu0 %v2531_v45  ;;  %3443 = vmatpush1.bf16.msra.mxu1 %v2533_v19  ;;  %v2637_v45 = vld [vmem:[#allocation5 + $0xab0] sm:$0xff]  ;;  %v2644_v19 = vld [vmem:[#allocation5 + $0xae8] sm:$0xff] }
 0x777   :  { %3272 = vmatprep.subr.bf16.mxu0 %v2540_v53  ;;  %3444 = vmatprep.subr.bf16.mxu1 %v2542_v2  ;;  %v2646_v53 = vld [vmem:[#allocation5 + $0xaf8] sm:$0xff]  ;;  %v2643_v2 = vld [vmem:[#allocation5 + $0xae0] sm:$0xff] }
 0x77a   :  { %3273 = vmatpush1.bf16.msra.mxu0 %v2539_v42  ;;  %3445 = vmatpush1.bf16.msra.mxu1 %v2541_v54  ;;  %v2645_v42 = vld [vmem:[#allocation5 + $0xaf0] sm:$0xff]  ;;  %v2652_v54 = vld [vmem:[#allocation5 + $0xb28] sm:$0xff] }
 0x77b   :  { %3274 = vmatprep.subr.bf16.mxu0 %v2548_v38  ;;  %3446 = vmatprep.subr.bf16.mxu1 %v2550_v22  ;;  %v2654_v38 = vld [vmem:[#allocation5 + $0xb38] sm:$0xff]  ;;  %v2651_v22 = vld [vmem:[#allocation5 + $0xb20] sm:$0xff] }
 0x77e   :  { %3275 = vmatpush1.bf16.msra.mxu0 %v2547_v17  ;;  %3447 = vmatpush1.bf16.msra.mxu1 %v2549_v21  ;;  %v2653_v17 = vld [vmem:[#allocation5 + $0xb30] sm:$0xff]  ;;  %v2660_v21 = vld [vmem:[#allocation5 + $0xb68] sm:$0xff] }
 0x77f   :  { %3287 = vmatprep.subr.bf16.mxu0 %v2556_v51  ;;  %3459 = vmatprep.subr.bf16.mxu1 %v2558_v9  ;;  %v2662_v51 = vld [vmem:[#allocation5 + $0xb78] sm:$0xff]  ;;  %v2659_v9 = vld [vmem:[#allocation5 + $0xb60] sm:$0xff] }
 0x781   :  { %3277 = vmatmul.mubr.bf16.vlgmr.msra.gmra.mrb[24].mxu0 %v5260_v44  ;;  %3449 = vmatmul.mubr.bf16.vlgmr.msra.gmra.mrb[24].mxu1 %v5260_v44  ;;  %v2582_v44 = vld [vmem:[#allocation5 + $0x8f8] sm:$0xff] }
 0x782   :  { %3288 = vmatpush1.bf16.msra.mxu0 %v2555_v30  ;;  %3460 = vmatpush1.bf16.msra.mxu1 %v2557_v20  ;;  %v2661_v30 = vld [vmem:[#allocation5 + $0xb70] sm:$0xff]  ;;  %v2668_v20 = vld [vmem:[#allocation5 + $0xba8] sm:$0xff] }
 0x783   :  { %3289 = vmatprep.subr.bf16.mxu0 %v2564_v41  ;;  %3461 = vmatprep.subr.bf16.mxu1 %v2566_v24  ;;  %v2670_v41 = vld [vmem:[#allocation5 + $0xbb8] sm:$0xff]  ;;  %v2667_v24 = vld [vmem:[#allocation5 + $0xba0] sm:$0xff] }
 0x784   :  { %3319 = vmatprep.mubr.bf16.mxu0 %v5266_v39  ;;  %3491 = vmatprep.mubr.bf16.mxu1 %v5266_v39  ;;  %v2587_v39 = vld [vmem:[#allocation5 + $0x920] sm:$0xff] }
 0x786   :  { %3290 = vmatpush1.bf16.msra.mxu0 %v2563_v34  ;;  %3462 = vmatpush1.bf16.msra.mxu1 %v2565_v6  ;;  %v2669_v34 = vld [vmem:[#allocation5 + $0xbb0] sm:$0xff]  ;;  %v2676_v6 = vld [vmem:[#allocation5 + $0xbe8] sm:$0xff] }
 0x787   :  { %3291 = vmatprep.subr.bf16.mxu0 %v2572_v49  ;;  %3463 = vmatprep.subr.bf16.mxu1 %v2574_v47  ;;  %v2678_v49 = vld [vmem:[#allocation5 + $0xbf8] sm:$0xff]  ;;  %v2675_v47 = vld [vmem:[#allocation5 + $0xbe0] sm:$0xff] }
 0x78a   :  { %3292 = vmatpush1.bf16.msra.mxu0 %v2571_v16  ;;  %3464 = vmatpush1.bf16.msra.mxu1 %v2573_v36  ;;  %v2677_v16 = vld [vmem:[#allocation5 + $0xbf0] sm:$0xff]  ;;  %v2684_v36 = vld [vmem:[#allocation5 + $0xc28] sm:$0xff] }
 0x78b   :  { %3293 = vmatprep.subr.bf16.mxu0 %v2580_v37  ;;  %3465 = vmatprep.subr.bf16.mxu1 %v2582_v44  ;;  %v2686_v37 = vld [vmem:[#allocation5 + $0xc38] sm:$0xff]  ;;  %v2683_v44 = vld [vmem:[#allocation5 + $0xc20] sm:$0xff] }
 0x78e   :  { %3294 = vmatpush1.bf16.msra.mxu0 %v2579_v12  ;;  %3466 = vmatpush1.bf16.msra.mxu1 %v2581_v27  ;;  %v2685_v12 = vld [vmem:[#allocation5 + $0xc30] sm:$0xff]  ;;  %v2692_v27 = vld [vmem:[#allocation5 + $0xc68] sm:$0xff] }
 0x78f   :  { %3295 = vmatprep.subr.bf16.mxu0 %v2588_v56  ;;  %3467 = vmatprep.subr.bf16.mxu1 %v2590_v29  ;;  %v2694_v56 = vld [vmem:[#allocation5 + $0xc78] sm:$0xff]  ;;  %v2691_v29 = vld [vmem:[#allocation5 + $0xc60] sm:$0xff] }
 0x792   :  { %3296 = vmatpush1.bf16.msra.mxu0 %v2587_v39  ;;  %3468 = vmatpush1.bf16.msra.mxu1 %v2589_v33  ;;  %v2693_v39 = vld [vmem:[#allocation5 + $0xc70] sm:$0xff]  ;;  %v2700_v33 = vld [vmem:[#allocation5 + $0xca8] sm:$0xff] }
 0x793   :  { %3297 = vmatprep.subr.bf16.mxu0 %v2596_v26  ;;  %3469 = vmatprep.subr.bf16.mxu1 %v2598_v32  ;;  %v2702_v26 = vld [vmem:[#allocation5 + $0xcb8] sm:$0xff]  ;;  %v2699_v32 = vld [vmem:[#allocation5 + $0xca0] sm:$0xff] }
 0x796   :  { %3298 = vmatpush1.bf16.msra.mxu0 %v2595_v40  ;;  %3470 = vmatpush1.bf16.msra.mxu1 %v2597_v0  ;;  %v2701_v40 = vld [vmem:[#allocation5 + $0xcb0] sm:$0xff]  ;;  %v2708_v0 = vld [vmem:[#allocation5 + $0xce8] sm:$0xff] }
 0x797   :  { %3299 = vmatprep.subr.bf16.mxu0 %v2604_v46  ;;  %3471 = vmatprep.subr.bf16.mxu1 %v2606_v15  ;;  %v2707_v46 = vld [vmem:[#allocation5 + $0xce0] sm:$0xff]  ;;  %v2709_v15 = vld [vmem:[#allocation5 + $0xcf0] sm:$0xff] }
 0x79a   :  { %3300 = vmatpush1.bf16.msra.mxu0 %v2603_v1  ;;  %3472 = vmatpush1.bf16.msra.mxu1 %v2605_v5  ;;  %v2716_v1 = vld [vmem:[#allocation5 + $0xd28] sm:$0xff]  ;;  %v2718_v5 = vld [vmem:[#allocation5 + $0xd38] sm:$0xff] }
 0x79b   :  { %3301 = vmatprep.subr.bf16.mxu0 %v2612_v3  ;;  %3473 = vmatprep.subr.bf16.mxu1 %v2614_v4  ;;  %v5310_v3 = vld [vmem:[#allocation12 + $0x14] sm:$0xff]  ;;  %v2717_v4 = vld [vmem:[#allocation5 + $0xd30] sm:$0xff] }
 0x79e   :  { %3302 = vmatpush1.bf16.msra.mxu0 %v2611_v31  ;;  %3474 = vmatpush1.bf16.msra.mxu1 %v2613_v63  ;;  %v2724_v31 = vld [vmem:[#allocation5 + $0xd68] sm:$0xff]  ;;  %v2726_v63 = vld [vmem:[#allocation5 + $0xd78] sm:$0xff] }
 0x79f   :  { %3303 = vmatprep.subr.bf16.mxu0 %v2620_v52  ;;  %3475 = vmatprep.subr.bf16.mxu1 %v2622_v35  ;;  %v2820_v52 = vrot.slane %v5310_v3, %v4959_v10  ;;  %v2828_v35 = vrot.slane %v5310_v3, %v4962_v11 }
 0x7a2   :  { %3304 = vmatpush1.bf16.msra.mxu0 %v2619_v7  ;;  %3476 = vmatpush1.bf16.msra.mxu1 %v2621_v23  ;;  %v2824_v7 = vrot.slane %v5310_v3, %v4965_v13  ;;  %v2832_v23 = vrot.slane %v5310_v3, %v4968_v14 }
 0x7a3   :  { %3305 = vmatprep.subr.bf16.mxu0 %v2628_v57  ;;  %3477 = vmatprep.subr.bf16.mxu1 %v2630_v50  ;;  %v2723_v57 = vld [vmem:[#allocation5 + $0xd60] sm:$0xff]  ;;  %v2725_v50 = vld [vmem:[#allocation5 + $0xd70] sm:$0xff] }
 0x7a6   :  { %3306 = vmatpush1.bf16.msra.mxu0 %v2627_v8  ;;  %3478 = vmatpush1.bf16.msra.mxu1 %v2629_v43 }
 0x7a7   :  { %3307 = vmatprep.subr.bf16.mxu0 %v2636_v25  ;;  %3479 = vmatprep.subr.bf16.mxu1 %v2638_v62  ;;  %v2732_v25 = vld [vmem:[#allocation5 + $0xda8] sm:$0xff]  ;;  %v2734_v62 = vld [vmem:[#allocation5 + $0xdb8] sm:$0xff] }
 0x7aa   :  { %3308 = vmatpush1.bf16.msra.mxu0 %v2635_v18  ;;  %3480 = vmatpush1.bf16.msra.mxu1 %v2637_v45 }
 0x7ab   :  { %3309 = vmatprep.subr.bf16.mxu0 %v2644_v19  ;;  %3481 = vmatprep.subr.bf16.mxu1 %v2646_v53 }
 0x7ae   :  { %3310 = vmatpush1.bf16.msra.mxu0 %v2643_v2  ;;  %3482 = vmatpush1.bf16.msra.mxu1 %v2645_v42 }
 0x7af   :  { %3311 = vmatprep.subr.bf16.mxu0 %v2652_v54  ;;  %3483 = vmatprep.subr.bf16.mxu1 %v2654_v38 }
 0x7b2   :  { %3312 = vmatpush1.bf16.msra.mxu0 %v2651_v22  ;;  %3484 = vmatpush1.bf16.msra.mxu1 %v2653_v17 }
 0x7b3   :  { %3313 = vmatprep.subr.bf16.mxu0 %v2660_v21  ;;  %3485 = vmatprep.subr.bf16.mxu1 %v2662_v51 }
 0x7b6   :  { %3314 = vmatpush1.bf16.msra.mxu0 %v2659_v9  ;;  %3486 = vmatpush1.bf16.msra.mxu1 %v2661_v30 }
 0x7b7   :  { %3315 = vmatprep.subr.bf16.mxu0 %v2668_v20  ;;  %3487 = vmatprep.subr.bf16.mxu1 %v2670_v41  ;;  %v2731_v20 = vld [vmem:[#allocation5 + $0xda0] sm:$0xff]  ;;  %v2733_v41 = vld [vmem:[#allocation5 + $0xdb0] sm:$0xff] }
 0x7ba   :  { %3316 = vmatpush1.bf16.msra.mxu0 %v2667_v24  ;;  %3488 = vmatpush1.bf16.msra.mxu1 %v2669_v34 }
 0x7bb   :  { %3317 = vmatprep.subr.bf16.mxu0 %v2676_v6  ;;  %3489 = vmatprep.subr.bf16.mxu1 %v2678_v49 }
 0x7be   :  { %3318 = vmatpush1.bf16.msra.mxu0 %v2675_v47  ;;  %3490 = vmatpush1.bf16.msra.mxu1 %v2677_v16  ;;  %v2740_v47 = vld [vmem:[#allocation5 + $0xde8] sm:$0xff]  ;;  %v2742_v16 = vld [vmem:[#allocation5 + $0xdf8] sm:$0xff] }
 0x7bf   :  { %3330 = vmatprep.subr.bf16.mxu0 %v2684_v36  ;;  %3502 = vmatprep.subr.bf16.mxu1 %v2686_v37 }
 0x7c1   :  { %3320 = vmatmul.mubr.bf16.vlgmr.msra.gmra.mrb[24].mxu0 %v5276_v28  ;;  %3492 = vmatmul.mubr.bf16.vlgmr.msra.gmra.mrb[24].mxu1 %v5276_v28  ;;  %v2710_v28 = vld [vmem:[#allocation5 + $0xcf8] sm:$0xff] }
 0x7c2   :  { %3331 = vmatpush1.bf16.msra.mxu0 %v2683_v44  ;;  %3503 = vmatpush1.bf16.msra.mxu1 %v2685_v12 }
 0x7c3   :  { %3332 = vmatprep.subr.bf16.mxu0 %v2692_v27  ;;  %3504 = vmatprep.subr.bf16.mxu1 %v2694_v56  ;;  %v2739_v27 = vld [vmem:[#allocation5 + $0xde0] sm:$0xff]  ;;  %v2741_v56 = vld [vmem:[#allocation5 + $0xdf0] sm:$0xff] }
 0x7c4   :  { %3362 = vmatprep.mubr.bf16.mxu0 %v5282_v55  ;;  %3534 = vmatprep.mubr.bf16.mxu1 %v5282_v55  ;;  %v2715_v55 = vld [vmem:[#allocation5 + $0xd20] sm:$0xff] }
 0x7c6   :  { %3333 = vmatpush1.bf16.msra.mxu0 %v2691_v29  ;;  %3505 = vmatpush1.bf16.msra.mxu1 %v2693_v39  ;;  %v2748_v29 = vld [vmem:[#allocation5 + $0xe28] sm:$0xff]  ;;  %v2750_v39 = vld [vmem:[#allocation5 + $0xe38] sm:$0xff] }
 0x7c7   :  { %3334 = vmatprep.subr.bf16.mxu0 %v2700_v33  ;;  %3506 = vmatprep.subr.bf16.mxu1 %v2702_v26  ;;  %v2747_v33 = vld [vmem:[#allocation5 + $0xe20] sm:$0xff]  ;;  %v2749_v26 = vld [vmem:[#allocation5 + $0xe30] sm:$0xff] }
 0x7ca   :  { %3335 = vmatpush1.bf16.msra.mxu0 %v2699_v32  ;;  %3507 = vmatpush1.bf16.msra.mxu1 %v2701_v40  ;;  %v2756_v32 = vld [vmem:[#allocation5 + $0xe68] sm:$0xff]  ;;  %v2758_v40 = vld [vmem:[#allocation5 + $0xe78] sm:$0xff] }
 0x7cb   :  { %3336 = vmatprep.subr.bf16.mxu0 %v2708_v0  ;;  %3508 = vmatprep.subr.bf16.mxu1 %v2710_v28  ;;  %v2755_v0 = vld [vmem:[#allocation5 + $0xe60] sm:$0xff]  ;;  %v2757_v28 = vld [vmem:[#allocation5 + $0xe70] sm:$0xff] }
 0x7ce   :  { %3337 = vmatpush1.bf16.msra.mxu0 %v2707_v46  ;;  %3509 = vmatpush1.bf16.msra.mxu1 %v2709_v15  ;;  %v2764_v46 = vld [vmem:[#allocation5 + $0xea8] sm:$0xff]  ;;  %v2766_v15 = vld [vmem:[#allocation5 + $0xeb8] sm:$0xff] }
 0x7cf   :  { %3338 = vmatprep.subr.bf16.mxu0 %v2716_v1  ;;  %3510 = vmatprep.subr.bf16.mxu1 %v2718_v5  ;;  %v2763_v1 = vld [vmem:[#allocation5 + $0xea0] sm:$0xff]  ;;  %v2765_v5 = vld [vmem:[#allocation5 + $0xeb0] sm:$0xff] }
 0x7d2   :  { %3339 = vmatpush1.bf16.msra.mxu0 %v2715_v55  ;;  %3511 = vmatpush1.bf16.msra.mxu1 %v2717_v4  ;;  %v2772_v55 = vld [vmem:[#allocation5 + $0xee8] sm:$0xff]  ;;  %v2774_v4 = vld [vmem:[#allocation5 + $0xef8] sm:$0xff] }
 0x7d3   :  { %3340 = vmatprep.subr.bf16.mxu0 %v2724_v31  ;;  %3512 = vmatprep.subr.bf16.mxu1 %v2726_v63  ;;  %v2771_v31 = vld [vmem:[#allocation5 + $0xee0] sm:$0xff]  ;;  %v2773_v63 = vld [vmem:[#allocation5 + $0xef0] sm:$0xff] }
 0x7d4   :  { %v3020_v8 = vpop.f32.mrb[20].mxu0  ;;  %v3192_v43 = vpop.f32.mrb[20].mxu1 }
 0x7d5   :  { %v5320_v18 = vadd.f32 %v3020_v8, %v2820_v52  ;;  %v5322_v45 = vadd.f32 %v3192_v43, %v2828_v35  ;;  %v3022_v19 = vpop.f32.mrb[21].mxu0  ;;  %v3194_v53 = vpop.f32.mrb[21].mxu1  ;;  %v2787_v8 = vld [vmem:[#allocation5 + $0xf60] sm:$0xff]  ;;  %v2789_v43 = vld [vmem:[#allocation5 + $0xf70] sm:$0xff] }
 0x7d6   :  { %v5324_v2 = vadd.f32 %v3022_v19, %v2824_v7  ;;  %v5326_v42 = vadd.f32 %v3194_v53, %v2832_v23  ;;  %v3024_v54 = vpop.f32.mrb[22].mxu0  ;;  %v3196_v38 = vpop.f32.mrb[22].mxu1  ;;  %3341 = vmatpush1.bf16.msra.mxu0 %v2723_v57  ;;  %3513 = vmatpush1.bf16.msra.mxu1 %v2725_v50  ;;  %v2788_v57 = vld [vmem:[#allocation5 + $0xf68] sm:$0xff]  ;;  %v2790_v50 = vld [vmem:[#allocation5 + $0xf78] sm:$0xff]  ;;  %v2795_v19 = vld [vmem:[#allocation5 + $0xfa0] sm:$0xff] }
 0x7d7   :  { %v3545_v22 = vmax.f32 %v5320_v18, 0.0  ;;  %v3547_v17 = vmax.f32 %v5322_v45, 0.0  ;;  %v5330_v21 = vadd.f32 %v3024_v54, %v2820_v52  ;;  %v5332_v51 = vadd.f32 %v3196_v38, %v2828_v35  ;;  %v3026_v9 = vpop.f32.mrb[23].mxu0  ;;  %v3198_v30 = vpop.f32.mrb[23].mxu1  ;;  %3342 = vmatprep.subr.bf16.mxu0 %v2732_v25  ;;  %3514 = vmatprep.subr.bf16.mxu1 %v2734_v62  ;;  %v2780_v52 = vld [vmem:[#allocation5 + $0xf28] sm:$0xff]  ;;  %v2782_v35 = vld [vmem:[#allocation5 + $0xf38] sm:$0xff] }
 0x7d8   :  { %v3546_v24 = vmax.f32 %v5324_v2, 0.0  ;;  %v3548_v34 = vmax.f32 %v5326_v42, 0.0  ;;  %v5336_v6 = vadd.f32 %v3026_v9, %v2824_v7  ;;  %v5338_v49 = vadd.f32 %v3198_v30, %v2832_v23  ;;  %v2779_v7 = vld [vmem:[#allocation5 + $0xf20] sm:$0xff]  ;;  %v2781_v23 = vld [vmem:[#allocation5 + $0xf30] sm:$0xff]  ;;  %v2796_v25 = vld [vmem:[#allocation5 + $0xfa8] sm:$0xff] }
 0x7d9   :  { %v3553_v36 = vmax.f32 %v5330_v21, 0.0  ;;  %v3555_v37 = vmax.f32 %v5332_v51, 0.0  ;;  %v2798_v62 = vld [vmem:[#allocation5 + $0xfb8] sm:$0xff]  ;;  %v2797_v53 = vld [vmem:[#allocation5 + $0xfb0] sm:$0xff]  ;;  %v2804_v54 = vld [vmem:[#allocation5 + $0xfe8] sm:$0xff] }
 0x7da   :  { %v3554_v44 = vmax.f32 %v5336_v6, 0.0  ;;  %v3556_v12 = vmax.f32 %v5338_v49, 0.0  ;;  %3343 = vmatpush1.bf16.msra.mxu0 %v2731_v20  ;;  %3515 = vmatpush1.bf16.msra.mxu1 %v2733_v41  ;;  %v2806_v38 = vld [vmem:[#allocation5 + $0xff8] sm:$0xff]  ;;  %v2803_v9 = vld [vmem:[#allocation5 + $0xfe0] sm:$0xff]  ;;  %v2805_v30 = vld [vmem:[#allocation5 + $0xff0] sm:$0xff]  ;;  %v2836_v20 = vrot.slane %v5310_v3, %v5051_v58  ;;  %v2844_v41 = vrot.slane %v5310_v3, %v5054_v59 }
 0x7db   :  { %3344 = vmatprep.subr.bf16.mxu0 %v2740_v47  ;;  %3516 = vmatprep.subr.bf16.mxu1 %v2742_v16  ;;  %v2840_v47 = vrot.slane %v5310_v3, %v5057_v60  ;;  %v2848_v16 = vrot.slane %v5310_v3, %v5060_v61 }
 0x7de   :  { %3345 = vmatpush1.bf16.msra.mxu0 %v2739_v27  ;;  %3517 = vmatpush1.bf16.msra.mxu1 %v2741_v56 }
 0x7df   :  { %3346 = vmatprep.subr.bf16.mxu0 %v2748_v29  ;;  %3518 = vmatprep.subr.bf16.mxu1 %v2750_v39 }
 0x7e2   :  { %3347 = vmatpush1.bf16.msra.mxu0 %v2747_v33  ;;  %3519 = vmatpush1.bf16.msra.mxu1 %v2749_v26 }
 0x7e3   :  { %3348 = vmatprep.subr.bf16.mxu0 %v2756_v32  ;;  %3520 = vmatprep.subr.bf16.mxu1 %v2758_v40 }
 0x7e6   :  { %3349 = vmatpush1.bf16.msra.mxu0 %v2755_v0  ;;  %3521 = vmatpush1.bf16.msra.mxu1 %v2757_v28 }
 0x7e7   :  { %3350 = vmatprep.subr.bf16.mxu0 %v2764_v46  ;;  %3522 = vmatprep.subr.bf16.mxu1 %v2766_v15 }
 0x7ea   :  { %3351 = vmatpush1.bf16.msra.mxu0 %v2763_v1  ;;  %3523 = vmatpush1.bf16.msra.mxu1 %v2765_v5 }
 0x7eb   :  { %3352 = vmatprep.subr.bf16.mxu0 %v2772_v55  ;;  %3524 = vmatprep.subr.bf16.mxu1 %v2774_v4 }
 0x7ee   :  { %3353 = vmatpush1.bf16.msra.mxu0 %v2771_v31  ;;  %3525 = vmatpush1.bf16.msra.mxu1 %v2773_v63 }
 0x7ef   :  { %3354 = vmatprep.subr.bf16.mxu0 %v2780_v52  ;;  %3526 = vmatprep.subr.bf16.mxu1 %v2782_v35 }
 0x7f2   :  { %3355 = vmatpush1.bf16.msra.mxu0 %v2779_v7  ;;  %3527 = vmatpush1.bf16.msra.mxu1 %v2781_v23 }
 0x7f3   :  { %3356 = vmatprep.subr.bf16.mxu0 %v2788_v57  ;;  %3528 = vmatprep.subr.bf16.mxu1 %v2790_v50 }
 0x7f6   :  { %3357 = vmatpush1.bf16.msra.mxu0 %v2787_v8  ;;  %3529 = vmatpush1.bf16.msra.mxu1 %v2789_v43 }
 0x7f7   :  { %3358 = vmatprep.subr.bf16.mxu0 %v2796_v25  ;;  %3530 = vmatprep.subr.bf16.mxu1 %v2798_v62 }
 0x7fa   :  { %3359 = vmatpush1.bf16.msra.mxu0 %v2795_v19  ;;  %3531 = vmatpush1.bf16.msra.mxu1 %v2797_v53 }
 0x7fb   :  { %3360 = vmatprep.subr.bf16.mxu0 %v2804_v54  ;;  %3532 = vmatprep.subr.bf16.mxu1 %v2806_v38 }
 0x7fe   :  { %3361 = vmatpush1.bf16.msra.mxu0 %v2803_v9  ;;  %3533 = vmatpush1.bf16.msra.mxu1 %v2805_v30 }
 0x801   :  { %3363 = vmatmul.mubr.bf16.vlgmr.msra.gmra.mrb[24].mxu0 %v5292_v48  ;;  %3535 = vmatmul.mubr.bf16.vlgmr.msra.gmra.mrb[24].mxu1 %v5292_v48 }
 0x8d4   :  { %v3364_v27 = vpop.f32.mrb[24].mxu0  ;;  %v3536_v56 = vpop.f32.mrb[24].mxu1 }
 0x8d5   :  { %v5354_v29 = vadd.f32 %v3364_v27, %v2836_v20  ;;  %v5356_v39 = vadd.f32 %v3536_v56, %v2844_v41  ;;  %v3366_v33 = vpop.f32.mrb[25].mxu0  ;;  %v3538_v48 = vpop.f32.mrb[25].mxu1 }
 0x8d6   :  { %v5358_v26 = vadd.f32 %v3366_v33, %v2840_v47  ;;  %v5360_v58 = vadd.f32 %v3538_v48, %v2848_v16  ;;  %v3368_v32 = vpop.f32.mrb[26].mxu0  ;;  %v3540_v59 = vpop.f32.mrb[26].mxu1 }
 0x8d7   :  { %v3549_v40 = vmax.f32 %v5354_v29, 0.0  ;;  %v3551_v60 = vmax.f32 %v5356_v39, 0.0  ;;  %v5364_v0 = vadd.f32 %v3368_v32, %v2836_v20  ;;  %v5366_v61 = vadd.f32 %v3540_v59, %v2844_v41  ;;  %v3370_v3 = vpop.f32.mrb[27].mxu0  ;;  %v3542_v28 = vpop.f32.mrb[27].mxu1 }
 0x8d8   :  { %v3550_v46 = vmax.f32 %v5358_v26, 0.0  ;;  %v3552_v15 = vmax.f32 %v5360_v58, 0.0  ;;  %v5370_v1 = vadd.f32 %v3370_v3, %v2840_v47  ;;  %v5372_v5 = vadd.f32 %v3542_v28, %v2848_v16 }
 0x8d9   :  { %v3557_v55 = vmax.f32 %v5364_v0, 0.0  ;;  %v3559_v4 = vmax.f32 %v5366_v61, 0.0 }
 0x8da   :  { %v3558_v31 = vmax.f32 %v5370_v1, 0.0  ;;  %v3560_v63 = vmax.f32 %v5372_v5, 0.0 }
 0x8db   :  { %4774 = dma.done.wait [#allocation8 + $0x4], 32768 }
 0x8dc   :  { %4775 = vsyncadd [#allocation8 + $0x4], 4294934528  ;;  %v3822_v52 = vpack.c.bf16 %v3554_v44, %v3546_v24  ;;  %v3565_v35 = vld [vmem:[#allocation6 + $0x8] sm:$0xff]  ;;  %v3567_v7 = vld [vmem:[#allocation6 + $0x18] sm:$0xff] }
 0x8dd   :  { %v3564_v23 = vld [vmem:[#allocation6] sm:$0xff]  ;;  %3850 = vmatprep.subr.bf16.mxu0 %v3565_v35  ;;  %4022 = vmatprep.subr.bf16.mxu1 %v3567_v7  ;;  %v3566_v57 = vld [vmem:[#allocation6 + $0x10] sm:$0xff]  ;;  %v3569_v50 = vld [vmem:[#allocation6 + $0x28] sm:$0xff] }
 0x8de   :  { %3882 = vmatprep.mubr.bf16.mxu0 %v3822_v52  ;;  %4054 = vmatprep.mubr.bf16.mxu1 %v3822_v52  ;;  %v3571_v8 = vld [vmem:[#allocation6 + $0x38] sm:$0xff]  ;;  %v3568_v43 = vld [vmem:[#allocation6 + $0x20] sm:$0xff]  ;;  %v3570_v25 = vld [vmem:[#allocation6 + $0x30] sm:$0xff] }
 0x8df   :  { %3851 = vmatpush1.bf16.msra.mxu0 %v3564_v23  ;;  %4023 = vmatpush1.bf16.msra.mxu1 %v3566_v57  ;;  %v3573_v2 = vld [vmem:[#allocation6 + $0x48] sm:$0xff]  ;;  %v3575_v62 = vld [vmem:[#allocation6 + $0x58] sm:$0xff]  ;;  %v3572_v24 = vld [vmem:[#allocation6 + $0x40] sm:$0xff] }
 0x8e0   :  { %3852 = vmatprep.subr.bf16.mxu0 %v3569_v50  ;;  %4024 = vmatprep.subr.bf16.mxu1 %v3571_v8  ;;  %v3574_v6 = vld [vmem:[#allocation6 + $0x50] sm:$0xff]  ;;  %v3577_v44 = vld [vmem:[#allocation6 + $0x68] sm:$0xff]  ;;  %v3579_v19 = vld [vmem:[#allocation6 + $0x78] sm:$0xff] }
 0x8e1   :  { %v3576_v53 = vld [vmem:[#allocation6 + $0x60] sm:$0xff]  ;;  %v3578_v54 = vld [vmem:[#allocation6 + $0x70] sm:$0xff]  ;;  %v3581_v38 = vld [vmem:[#allocation6 + $0x88] sm:$0xff] }
 0x8e2   :  { %v3583_v9 = vld [vmem:[#allocation6 + $0x98] sm:$0xff]  ;;  %v3580_v30 = vld [vmem:[#allocation6 + $0x80] sm:$0xff]  ;;  %v3582_v20 = vld [vmem:[#allocation6 + $0x90] sm:$0xff] }
 0x8e3   :  { %3853 = vmatpush1.bf16.msra.mxu0 %v3568_v43  ;;  %4025 = vmatpush1.bf16.msra.mxu1 %v3570_v25  ;;  %v3585_v41 = vld [vmem:[#allocation6 + $0xa8] sm:$0xff]  ;;  %v3587_v47 = vld [vmem:[#allocation6 + $0xb8] sm:$0xff]  ;;  %v3584_v16 = vld [vmem:[#allocation6 + $0xa0] sm:$0xff] }
 0x8e4   :  { %3854 = vmatprep.subr.bf16.mxu0 %v3573_v2  ;;  %4026 = vmatprep.subr.bf16.mxu1 %v3575_v62  ;;  %v3586_v27 = vld [vmem:[#allocation6 + $0xb0] sm:$0xff]  ;;  %v3589_v56 = vld [vmem:[#allocation6 + $0xc8] sm:$0xff]  ;;  %v3591_v33 = vld [vmem:[#allocation6 + $0xd8] sm:$0xff] }
 0x8e5   :  { %v3588_v48 = vld [vmem:[#allocation6 + $0xc0] sm:$0xff]  ;;  %v3590_v32 = vld [vmem:[#allocation6 + $0xd0] sm:$0xff]  ;;  %v3593_v59 = vld [vmem:[#allocation6 + $0xe8] sm:$0xff] }
 0x8e6   :  { %v3595_v3 = vld [vmem:[#allocation6 + $0xf8] sm:$0xff]  ;;  %v3592_v28 = vld [vmem:[#allocation6 + $0xe0] sm:$0xff]  ;;  %v3594_v52 = vld [vmem:[#allocation6 + $0xf0] sm:$0xff] }
 0x8e7   :  { %3855 = vmatpush1.bf16.msra.mxu0 %v3572_v24  ;;  %4027 = vmatpush1.bf16.msra.mxu1 %v3574_v6  ;;  %v3597_v35 = vld [vmem:[#allocation6 + $0x108] sm:$0xff]  ;;  %v3599_v7 = vld [vmem:[#allocation6 + $0x118] sm:$0xff]  ;;  %v3596_v23 = vld [vmem:[#allocation6 + $0x100] sm:$0xff] }
 0x8e8   :  { %3856 = vmatprep.subr.bf16.mxu0 %v3577_v44  ;;  %4028 = vmatprep.subr.bf16.mxu1 %v3579_v19  ;;  %v3598_v57 = vld [vmem:[#allocation6 + $0x110] sm:$0xff]  ;;  %v3601_v50 = vld [vmem:[#allocation6 + $0x128] sm:$0xff]  ;;  %v3603_v8 = vld [vmem:[#allocation6 + $0x138] sm:$0xff] }
 0x8e9   :  { %v3600_v43 = vld [vmem:[#allocation6 + $0x120] sm:$0xff]  ;;  %v3602_v25 = vld [vmem:[#allocation6 + $0x130] sm:$0xff]  ;;  %v3605_v2 = vld [vmem:[#allocation6 + $0x148] sm:$0xff] }
 0x8ea   :  { %v3607_v62 = vld [vmem:[#allocation6 + $0x158] sm:$0xff]  ;;  %v3604_v24 = vld [vmem:[#allocation6 + $0x140] sm:$0xff]  ;;  %v3606_v6 = vld [vmem:[#allocation6 + $0x150] sm:$0xff] }
 0x8eb   :  { %3857 = vmatpush1.bf16.msra.mxu0 %v3576_v53  ;;  %4029 = vmatpush1.bf16.msra.mxu1 %v3578_v54  ;;  %v3609_v44 = vld [vmem:[#allocation6 + $0x168] sm:$0xff]  ;;  %v3611_v19 = vld [vmem:[#allocation6 + $0x178] sm:$0xff]  ;;  %v3608_v53 = vld [vmem:[#allocation6 + $0x160] sm:$0xff] }
 0x8ec   :  { %3858 = vmatprep.subr.bf16.mxu0 %v3581_v38  ;;  %4030 = vmatprep.subr.bf16.mxu1 %v3583_v9  ;;  %v3610_v54 = vld [vmem:[#allocation6 + $0x170] sm:$0xff]  ;;  %v3613_v38 = vld [vmem:[#allocation6 + $0x188] sm:$0xff]  ;;  %v3615_v9 = vld [vmem:[#allocation6 + $0x198] sm:$0xff] }
 0x8ed   :  { %v3632_v18 = vld [vmem:[#allocation6 + $0x220] sm:$0xff]  ;;  %v3637_v21 = vld [vmem:[#allocation6 + $0x248] sm:$0xff] }
 0x8ee   :  { %v3636_v42 = vld [vmem:[#allocation6 + $0x240] sm:$0xff]  ;;  %v3641_v49 = vld [vmem:[#allocation6 + $0x268] sm:$0xff] }
 0x8ef   :  { %3859 = vmatpush1.bf16.msra.mxu0 %v3580_v30  ;;  %4031 = vmatpush1.bf16.msra.mxu1 %v3582_v20  ;;  %v3612_v30 = vld [vmem:[#allocation6 + $0x180] sm:$0xff]  ;;  %v3614_v20 = vld [vmem:[#allocation6 + $0x190] sm:$0xff]  ;;  %v3701_v51 = vld [vmem:[#allocation6 + $0x448] sm:$0xff] }
 0x8f0   :  { %3860 = vmatprep.subr.bf16.mxu0 %v3585_v41  ;;  %4032 = vmatprep.subr.bf16.mxu1 %v3587_v47  ;;  %v3617_v41 = vld [vmem:[#allocation6 + $0x1a8] sm:$0xff]  ;;  %v3619_v47 = vld [vmem:[#allocation6 + $0x1b8] sm:$0xff]  ;;  %v3696_v45 = vld [vmem:[#allocation6 + $0x420] sm:$0xff] }
 0x8f1   :  { %v3700_v26 = vld [vmem:[#allocation6 + $0x440] sm:$0xff]  ;;  %v3705_v1 = vld [vmem:[#allocation6 + $0x468] sm:$0xff] }
 0x8f2   :  { %v3760_v29 = vld [vmem:[#allocation6 + $0x620] sm:$0xff]  ;;  %v3765_v0 = vld [vmem:[#allocation6 + $0x648] sm:$0xff] }
 0x8f3   :  { %3861 = vmatpush1.bf16.msra.mxu0 %v3584_v16  ;;  %4033 = vmatpush1.bf16.msra.mxu1 %v3586_v27  ;;  %v3616_v16 = vld [vmem:[#allocation6 + $0x1a0] sm:$0xff]  ;;  %v3618_v27 = vld [vmem:[#allocation6 + $0x1b0] sm:$0xff]  ;;  %v3769_v5 = vld [vmem:[#allocation6 + $0x668] sm:$0xff] }
 0x8f4   :  { %3862 = vmatprep.subr.bf16.mxu0 %v3589_v56  ;;  %4034 = vmatprep.subr.bf16.mxu1 %v3591_v33  ;;  %v3621_v56 = vld [vmem:[#allocation6 + $0x1c8] sm:$0xff]  ;;  %v3623_v33 = vld [vmem:[#allocation6 + $0x1d8] sm:$0xff]  ;;  %v3764_v58 = vld [vmem:[#allocation6 + $0x640] sm:$0xff] }
 0x8f7   :  { %3863 = vmatpush1.bf16.msra.mxu0 %v3588_v48  ;;  %4035 = vmatpush1.bf16.msra.mxu1 %v3590_v32  ;;  %v3620_v48 = vld [vmem:[#allocation6 + $0x1c0] sm:$0xff]  ;;  %v3622_v32 = vld [vmem:[#allocation6 + $0x1d0] sm:$0xff] }
 0x8f8   :  { %3864 = vmatprep.subr.bf16.mxu0 %v3593_v59  ;;  %4036 = vmatprep.subr.bf16.mxu1 %v3595_v3  ;;  %v3625_v59 = vld [vmem:[#allocation6 + $0x1e8] sm:$0xff]  ;;  %v3627_v3 = vld [vmem:[#allocation6 + $0x1f8] sm:$0xff] }
 0x8fb   :  { %3865 = vmatpush1.bf16.msra.mxu0 %v3592_v28  ;;  %4037 = vmatpush1.bf16.msra.mxu1 %v3594_v52  ;;  %v3624_v28 = vld [vmem:[#allocation6 + $0x1e0] sm:$0xff]  ;;  %v3626_v52 = vld [vmem:[#allocation6 + $0x1f0] sm:$0xff] }
 0x8fc   :  { %3866 = vmatprep.subr.bf16.mxu0 %v3597_v35  ;;  %4038 = vmatprep.subr.bf16.mxu1 %v3599_v7  ;;  %v3629_v35 = vld [vmem:[#allocation6 + $0x208] sm:$0xff]  ;;  %v3631_v7 = vld [vmem:[#allocation6 + $0x218] sm:$0xff] }
 0x8ff   :  { %3867 = vmatpush1.bf16.msra.mxu0 %v3596_v23  ;;  %4039 = vmatpush1.bf16.msra.mxu1 %v3598_v57  ;;  %v3821_v23 = vpack.c.bf16 %v3553_v36, %v3545_v22  ;;  %v3628_v57 = vld [vmem:[#allocation6 + $0x200] sm:$0xff]  ;;  %v3634_v22 = vld [vmem:[#allocation6 + $0x230] sm:$0xff]  ;;  %v3639_v36 = vld [vmem:[#allocation6 + $0x258] sm:$0xff] }
 0x900   :  { %3868 = vmatprep.subr.bf16.mxu0 %v3601_v50  ;;  %4040 = vmatprep.subr.bf16.mxu1 %v3603_v8  ;;  %v3630_v50 = vld [vmem:[#allocation6 + $0x210] sm:$0xff]  ;;  %v3633_v8 = vld [vmem:[#allocation6 + $0x228] sm:$0xff] }
 0x903   :  { %3869 = vmatpush1.bf16.msra.mxu0 %v3600_v43  ;;  %4041 = vmatpush1.bf16.msra.mxu1 %v3602_v25  ;;  %v3635_v43 = vld [vmem:[#allocation6 + $0x238] sm:$0xff]  ;;  %v3824_v25 = vpack.c.bf16 %v3556_v12, %v3548_v34  ;;  %v3640_v12 = vld [vmem:[#allocation6 + $0x260] sm:$0xff] }
 0x904   :  { %3870 = vmatprep.subr.bf16.mxu0 %v3605_v2  ;;  %4042 = vmatprep.subr.bf16.mxu1 %v3607_v62  ;;  %v3638_v2 = vld [vmem:[#allocation6 + $0x250] sm:$0xff]  ;;  %v3643_v34 = vld [vmem:[#allocation6 + $0x278] sm:$0xff] }
 0x905   :  { %v3642_v62 = vld [vmem:[#allocation6 + $0x270] sm:$0xff] }
 0x907   :  { %3871 = vmatpush1.bf16.msra.mxu0 %v3604_v24  ;;  %4043 = vmatpush1.bf16.msra.mxu1 %v3606_v6  ;;  %v3645_v24 = vld [vmem:[#allocation6 + $0x288] sm:$0xff]  ;;  %v3647_v6 = vld [vmem:[#allocation6 + $0x298] sm:$0xff] }
 0x908   :  { %3872 = vmatprep.subr.bf16.mxu0 %v3609_v44  ;;  %4044 = vmatprep.subr.bf16.mxu1 %v3611_v19  ;;  %v3644_v44 = vld [vmem:[#allocation6 + $0x280] sm:$0xff]  ;;  %v3646_v19 = vld [vmem:[#allocation6 + $0x290] sm:$0xff] }
 0x90b   :  { %3873 = vmatpush1.bf16.msra.mxu0 %v3608_v53  ;;  %4045 = vmatpush1.bf16.msra.mxu1 %v3610_v54  ;;  %v3649_v53 = vld [vmem:[#allocation6 + $0x2a8] sm:$0xff]  ;;  %v3651_v54 = vld [vmem:[#allocation6 + $0x2b8] sm:$0xff] }
 0x90c   :  { %3874 = vmatprep.subr.bf16.mxu0 %v3613_v38  ;;  %4046 = vmatprep.subr.bf16.mxu1 %v3615_v9  ;;  %v3648_v38 = vld [vmem:[#allocation6 + $0x2a0] sm:$0xff]  ;;  %v3650_v9 = vld [vmem:[#allocation6 + $0x2b0] sm:$0xff] }
 0x90f   :  { %3875 = vmatpush1.bf16.msra.mxu0 %v3612_v30  ;;  %4047 = vmatpush1.bf16.msra.mxu1 %v3614_v20  ;;  %v3653_v30 = vld [vmem:[#allocation6 + $0x2c8] sm:$0xff]  ;;  %v3655_v20 = vld [vmem:[#allocation6 + $0x2d8] sm:$0xff] }
 0x910   :  { %3876 = vmatprep.subr.bf16.mxu0 %v3617_v41  ;;  %4048 = vmatprep.subr.bf16.mxu1 %v3619_v47  ;;  %v3652_v41 = vld [vmem:[#allocation6 + $0x2c0] sm:$0xff]  ;;  %v3654_v47 = vld [vmem:[#allocation6 + $0x2d0] sm:$0xff] }
 0x913   :  { %3877 = vmatpush1.bf16.msra.mxu0 %v3616_v16  ;;  %4049 = vmatpush1.bf16.msra.mxu1 %v3618_v27  ;;  %v3657_v16 = vld [vmem:[#allocation6 + $0x2e8] sm:$0xff]  ;;  %v3659_v27 = vld [vmem:[#allocation6 + $0x2f8] sm:$0xff] }
 0x914   :  { %3878 = vmatprep.subr.bf16.mxu0 %v3621_v56  ;;  %4050 = vmatprep.subr.bf16.mxu1 %v3623_v33  ;;  %v3656_v56 = vld [vmem:[#allocation6 + $0x2e0] sm:$0xff]  ;;  %v3658_v33 = vld [vmem:[#allocation6 + $0x2f0] sm:$0xff] }
 0x917   :  { %3879 = vmatpush1.bf16.msra.mxu0 %v3620_v48  ;;  %4051 = vmatpush1.bf16.msra.mxu1 %v3622_v32  ;;  %v3661_v48 = vld [vmem:[#allocation6 + $0x308] sm:$0xff]  ;;  %v3663_v32 = vld [vmem:[#allocation6 + $0x318] sm:$0xff] }
 0x918   :  { %3880 = vmatprep.subr.bf16.mxu0 %v3625_v59  ;;  %4052 = vmatprep.subr.bf16.mxu1 %v3627_v3  ;;  %v3660_v59 = vld [vmem:[#allocation6 + $0x300] sm:$0xff]  ;;  %v3662_v3 = vld [vmem:[#allocation6 + $0x310] sm:$0xff] }
 0x91b   :  { %3881 = vmatpush1.bf16.msra.mxu0 %v3624_v28  ;;  %4053 = vmatpush1.bf16.msra.mxu1 %v3626_v52  ;;  %v3665_v28 = vld [vmem:[#allocation6 + $0x328] sm:$0xff]  ;;  %v3667_v52 = vld [vmem:[#allocation6 + $0x338] sm:$0xff] }
 0x91c   :  { %3893 = vmatprep.subr.bf16.mxu0 %v3629_v35  ;;  %4065 = vmatprep.subr.bf16.mxu1 %v3631_v7  ;;  %v3664_v35 = vld [vmem:[#allocation6 + $0x320] sm:$0xff]  ;;  %v3666_v7 = vld [vmem:[#allocation6 + $0x330] sm:$0xff] }
 0x91e   :  { %3883 = vmatmul.mubr.bf16.vlgmr.msra.gmra.mrb[28].mxu0 %v3821_v23  ;;  %4055 = vmatmul.mubr.bf16.vlgmr.msra.gmra.mrb[28].mxu1 %v3821_v23  ;;  %v3669_v23 = vld [vmem:[#allocation6 + $0x348] sm:$0xff] }
 0x91f   :  { %3894 = vmatpush1.bf16.msra.mxu0 %v3628_v57  ;;  %4066 = vmatpush1.bf16.msra.mxu1 %v3630_v50  ;;  %v3671_v57 = vld [vmem:[#allocation6 + $0x358] sm:$0xff]  ;;  %v3668_v50 = vld [vmem:[#allocation6 + $0x340] sm:$0xff] }
 0x920   :  { %3895 = vmatprep.subr.bf16.mxu0 %v3633_v8  ;;  %4067 = vmatprep.subr.bf16.mxu1 %v3635_v43  ;;  %v3670_v8 = vld [vmem:[#allocation6 + $0x350] sm:$0xff]  ;;  %v3673_v43 = vld [vmem:[#allocation6 + $0x368] sm:$0xff] }
 0x921   :  { %3925 = vmatprep.mubr.bf16.mxu0 %v3824_v25  ;;  %4097 = vmatprep.mubr.bf16.mxu1 %v3824_v25  ;;  %v3675_v25 = vld [vmem:[#allocation6 + $0x378] sm:$0xff] }
 0x923   :  { %3896 = vmatpush1.bf16.msra.mxu0 %v3632_v18  ;;  %4068 = vmatpush1.bf16.msra.mxu1 %v3634_v22  ;;  %v3672_v18 = vld [vmem:[#allocation6 + $0x360] sm:$0xff]  ;;  %v3674_v22 = vld [vmem:[#allocation6 + $0x370] sm:$0xff] }
 0x924   :  { %3897 = vmatprep.subr.bf16.mxu0 %v3637_v21  ;;  %4069 = vmatprep.subr.bf16.mxu1 %v3639_v36  ;;  %v3677_v21 = vld [vmem:[#allocation6 + $0x388] sm:$0xff]  ;;  %v3679_v36 = vld [vmem:[#allocation6 + $0x398] sm:$0xff] }
 0x927   :  { %3898 = vmatpush1.bf16.msra.mxu0 %v3636_v42  ;;  %4070 = vmatpush1.bf16.msra.mxu1 %v3638_v2  ;;  %v3676_v42 = vld [vmem:[#allocation6 + $0x380] sm:$0xff]  ;;  %v3678_v2 = vld [vmem:[#allocation6 + $0x390] sm:$0xff] }
 0x928   :  { %3899 = vmatprep.subr.bf16.mxu0 %v3641_v49  ;;  %4071 = vmatprep.subr.bf16.mxu1 %v3643_v34  ;;  %v3681_v49 = vld [vmem:[#allocation6 + $0x3a8] sm:$0xff]  ;;  %v3683_v34 = vld [vmem:[#allocation6 + $0x3b8] sm:$0xff] }
 0x92b   :  { %3900 = vmatpush1.bf16.msra.mxu0 %v3640_v12  ;;  %4072 = vmatpush1.bf16.msra.mxu1 %v3642_v62  ;;  %v3680_v12 = vld [vmem:[#allocation6 + $0x3a0] sm:$0xff]  ;;  %v3682_v62 = vld [vmem:[#allocation6 + $0x3b0] sm:$0xff] }
 0x92c   :  { %3901 = vmatprep.subr.bf16.mxu0 %v3645_v24  ;;  %4073 = vmatprep.subr.bf16.mxu1 %v3647_v6  ;;  %v3685_v24 = vld [vmem:[#allocation6 + $0x3c8] sm:$0xff]  ;;  %v3687_v6 = vld [vmem:[#allocation6 + $0x3d8] sm:$0xff] }
 0x92f   :  { %3902 = vmatpush1.bf16.msra.mxu0 %v3644_v44  ;;  %4074 = vmatpush1.bf16.msra.mxu1 %v3646_v19  ;;  %v3684_v44 = vld [vmem:[#allocation6 + $0x3c0] sm:$0xff]  ;;  %v3686_v19 = vld [vmem:[#allocation6 + $0x3d0] sm:$0xff] }
 0x930   :  { %3903 = vmatprep.subr.bf16.mxu0 %v3649_v53  ;;  %4075 = vmatprep.subr.bf16.mxu1 %v3651_v54  ;;  %v3689_v53 = vld [vmem:[#allocation6 + $0x3e8] sm:$0xff]  ;;  %v3691_v54 = vld [vmem:[#allocation6 + $0x3f8] sm:$0xff] }
 0x933   :  { %3904 = vmatpush1.bf16.msra.mxu0 %v3648_v38  ;;  %4076 = vmatpush1.bf16.msra.mxu1 %v3650_v9  ;;  %v3688_v38 = vld [vmem:[#allocation6 + $0x3e0] sm:$0xff]  ;;  %v3690_v9 = vld [vmem:[#allocation6 + $0x3f0] sm:$0xff] }
 0x934   :  { %3905 = vmatprep.subr.bf16.mxu0 %v3653_v30  ;;  %4077 = vmatprep.subr.bf16.mxu1 %v3655_v20  ;;  %v3693_v30 = vld [vmem:[#allocation6 + $0x408] sm:$0xff]  ;;  %v3695_v20 = vld [vmem:[#allocation6 + $0x418] sm:$0xff] }
 0x937   :  { %3906 = vmatpush1.bf16.msra.mxu0 %v3652_v41  ;;  %4078 = vmatpush1.bf16.msra.mxu1 %v3654_v47  ;;  %v3823_v41 = vpack.c.bf16 %v3555_v37, %v3547_v17  ;;  %v3692_v47 = vld [vmem:[#allocation6 + $0x400] sm:$0xff]  ;;  %v3698_v17 = vld [vmem:[#allocation6 + $0x430] sm:$0xff]  ;;  %v3703_v37 = vld [vmem:[#allocation6 + $0x458] sm:$0xff] }
 0x938   :  { %3907 = vmatprep.subr.bf16.mxu0 %v3657_v16  ;;  %4079 = vmatprep.subr.bf16.mxu1 %v3659_v27  ;;  %v3694_v16 = vld [vmem:[#allocation6 + $0x410] sm:$0xff]  ;;  %v3697_v27 = vld [vmem:[#allocation6 + $0x428] sm:$0xff] }
 0x93b   :  { %3908 = vmatpush1.bf16.msra.mxu0 %v3656_v56  ;;  %4080 = vmatpush1.bf16.msra.mxu1 %v3658_v33  ;;  %v3699_v56 = vld [vmem:[#allocation6 + $0x438] sm:$0xff]  ;;  %v3826_v33 = vpack.c.bf16 %v3558_v31, %v3550_v46  ;;  %v3704_v31 = vld [vmem:[#allocation6 + $0x460] sm:$0xff] }
 0x93c   :  { %3909 = vmatprep.subr.bf16.mxu0 %v3661_v48  ;;  %4081 = vmatprep.subr.bf16.mxu1 %v3663_v32  ;;  %v3702_v48 = vld [vmem:[#allocation6 + $0x450] sm:$0xff]  ;;  %v3707_v46 = vld [vmem:[#allocation6 + $0x478] sm:$0xff] }
 0x93d   :  { %v3706_v32 = vld [vmem:[#allocation6 + $0x470] sm:$0xff] }
 0x93f   :  { %3910 = vmatpush1.bf16.msra.mxu0 %v3660_v59  ;;  %4082 = vmatpush1.bf16.msra.mxu1 %v3662_v3  ;;  %v3709_v59 = vld [vmem:[#allocation6 + $0x488] sm:$0xff]  ;;  %v3711_v3 = vld [vmem:[#allocation6 + $0x498] sm:$0xff] }
 0x940   :  { %3911 = vmatprep.subr.bf16.mxu0 %v3665_v28  ;;  %4083 = vmatprep.subr.bf16.mxu1 %v3667_v52  ;;  %v3708_v28 = vld [vmem:[#allocation6 + $0x480] sm:$0xff]  ;;  %v3710_v52 = vld [vmem:[#allocation6 + $0x490] sm:$0xff] }
 0x943   :  { %3912 = vmatpush1.bf16.msra.mxu0 %v3664_v35  ;;  %4084 = vmatpush1.bf16.msra.mxu1 %v3666_v7  ;;  %v3713_v35 = vld [vmem:[#allocation6 + $0x4a8] sm:$0xff]  ;;  %v3715_v7 = vld [vmem:[#allocation6 + $0x4b8] sm:$0xff] }
 0x944   :  { %3913 = vmatprep.subr.bf16.mxu0 %v3669_v23  ;;  %4085 = vmatprep.subr.bf16.mxu1 %v3671_v57  ;;  %v3712_v23 = vld [vmem:[#allocation6 + $0x4a0] sm:$0xff]  ;;  %v3714_v57 = vld [vmem:[#allocation6 + $0x4b0] sm:$0xff] }
 0x947   :  { %3914 = vmatpush1.bf16.msra.mxu0 %v3668_v50  ;;  %4086 = vmatpush1.bf16.msra.mxu1 %v3670_v8  ;;  %v3717_v50 = vld [vmem:[#allocation6 + $0x4c8] sm:$0xff]  ;;  %v3719_v8 = vld [vmem:[#allocation6 + $0x4d8] sm:$0xff] }
 0x948   :  { %3915 = vmatprep.subr.bf16.mxu0 %v3673_v43  ;;  %4087 = vmatprep.subr.bf16.mxu1 %v3675_v25  ;;  %v3716_v43 = vld [vmem:[#allocation6 + $0x4c0] sm:$0xff]  ;;  %v3718_v25 = vld [vmem:[#allocation6 + $0x4d0] sm:$0xff] }
 0x94b   :  { %3916 = vmatpush1.bf16.msra.mxu0 %v3672_v18  ;;  %4088 = vmatpush1.bf16.msra.mxu1 %v3674_v22  ;;  %v3721_v18 = vld [vmem:[#allocation6 + $0x4e8] sm:$0xff]  ;;  %v3723_v22 = vld [vmem:[#allocation6 + $0x4f8] sm:$0xff] }
 0x94c   :  { %3917 = vmatprep.subr.bf16.mxu0 %v3677_v21  ;;  %4089 = vmatprep.subr.bf16.mxu1 %v3679_v36  ;;  %v3720_v21 = vld [vmem:[#allocation6 + $0x4e0] sm:$0xff]  ;;  %v3722_v36 = vld [vmem:[#allocation6 + $0x4f0] sm:$0xff] }
 0x94f   :  { %3918 = vmatpush1.bf16.msra.mxu0 %v3676_v42  ;;  %4090 = vmatpush1.bf16.msra.mxu1 %v3678_v2  ;;  %v3725_v42 = vld [vmem:[#allocation6 + $0x508] sm:$0xff]  ;;  %v3727_v2 = vld [vmem:[#allocation6 + $0x518] sm:$0xff] }
 0x950   :  { %3919 = vmatprep.subr.bf16.mxu0 %v3681_v49  ;;  %4091 = vmatprep.subr.bf16.mxu1 %v3683_v34  ;;  %v3724_v49 = vld [vmem:[#allocation6 + $0x500] sm:$0xff]  ;;  %v3726_v34 = vld [vmem:[#allocation6 + $0x510] sm:$0xff] }
 0x953   :  { %3920 = vmatpush1.bf16.msra.mxu0 %v3680_v12  ;;  %4092 = vmatpush1.bf16.msra.mxu1 %v3682_v62  ;;  %v3729_v12 = vld [vmem:[#allocation6 + $0x528] sm:$0xff]  ;;  %v3731_v62 = vld [vmem:[#allocation6 + $0x538] sm:$0xff] }
 0x954   :  { %3921 = vmatprep.subr.bf16.mxu0 %v3685_v24  ;;  %4093 = vmatprep.subr.bf16.mxu1 %v3687_v6  ;;  %v3728_v24 = vld [vmem:[#allocation6 + $0x520] sm:$0xff]  ;;  %v3730_v6 = vld [vmem:[#allocation6 + $0x530] sm:$0xff] }
 0x957   :  { %3922 = vmatpush1.bf16.msra.mxu0 %v3684_v44  ;;  %4094 = vmatpush1.bf16.msra.mxu1 %v3686_v19  ;;  %v3733_v44 = vld [vmem:[#allocation6 + $0x548] sm:$0xff]  ;;  %v3735_v19 = vld [vmem:[#allocation6 + $0x558] sm:$0xff] }
 0x958   :  { %3923 = vmatprep.subr.bf16.mxu0 %v3689_v53  ;;  %4095 = vmatprep.subr.bf16.mxu1 %v3691_v54  ;;  %v3732_v53 = vld [vmem:[#allocation6 + $0x540] sm:$0xff]  ;;  %v3734_v54 = vld [vmem:[#allocation6 + $0x550] sm:$0xff] }
 0x95b   :  { %3924 = vmatpush1.bf16.msra.mxu0 %v3688_v38  ;;  %4096 = vmatpush1.bf16.msra.mxu1 %v3690_v9  ;;  %v3737_v38 = vld [vmem:[#allocation6 + $0x568] sm:$0xff]  ;;  %v3739_v9 = vld [vmem:[#allocation6 + $0x578] sm:$0xff] }
 0x95c   :  { %3936 = vmatprep.subr.bf16.mxu0 %v3693_v30  ;;  %4108 = vmatprep.subr.bf16.mxu1 %v3695_v20  ;;  %v3736_v30 = vld [vmem:[#allocation6 + $0x560] sm:$0xff]  ;;  %v3738_v20 = vld [vmem:[#allocation6 + $0x570] sm:$0xff] }
 0x95e   :  { %3926 = vmatmul.mubr.bf16.vlgmr.msra.gmra.mrb[28].mxu0 %v3823_v41  ;;  %4098 = vmatmul.mubr.bf16.vlgmr.msra.gmra.mrb[28].mxu1 %v3823_v41  ;;  %v3741_v41 = vld [vmem:[#allocation6 + $0x588] sm:$0xff] }
 0x95f   :  { %3937 = vmatpush1.bf16.msra.mxu0 %v3692_v47  ;;  %4109 = vmatpush1.bf16.msra.mxu1 %v3694_v16  ;;  %v3743_v47 = vld [vmem:[#allocation6 + $0x598] sm:$0xff]  ;;  %v3740_v16 = vld [vmem:[#allocation6 + $0x580] sm:$0xff] }
 0x960   :  { %3938 = vmatprep.subr.bf16.mxu0 %v3697_v27  ;;  %4110 = vmatprep.subr.bf16.mxu1 %v3699_v56  ;;  %v3742_v27 = vld [vmem:[#allocation6 + $0x590] sm:$0xff]  ;;  %v3745_v56 = vld [vmem:[#allocation6 + $0x5a8] sm:$0xff] }
 0x961   :  { %3968 = vmatprep.mubr.bf16.mxu0 %v3826_v33  ;;  %4140 = vmatprep.mubr.bf16.mxu1 %v3826_v33  ;;  %v3747_v33 = vld [vmem:[#allocation6 + $0x5b8] sm:$0xff] }
 0x963   :  { %3939 = vmatpush1.bf16.msra.mxu0 %v3696_v45  ;;  %4111 = vmatpush1.bf16.msra.mxu1 %v3698_v17  ;;  %v3744_v45 = vld [vmem:[#allocation6 + $0x5a0] sm:$0xff]  ;;  %v3746_v17 = vld [vmem:[#allocation6 + $0x5b0] sm:$0xff] }
 0x964   :  { %3940 = vmatprep.subr.bf16.mxu0 %v3701_v51  ;;  %4112 = vmatprep.subr.bf16.mxu1 %v3703_v37  ;;  %v3749_v51 = vld [vmem:[#allocation6 + $0x5c8] sm:$0xff]  ;;  %v3751_v37 = vld [vmem:[#allocation6 + $0x5d8] sm:$0xff] }
 0x967   :  { %3941 = vmatpush1.bf16.msra.mxu0 %v3700_v26  ;;  %4113 = vmatpush1.bf16.msra.mxu1 %v3702_v48  ;;  %v3748_v26 = vld [vmem:[#allocation6 + $0x5c0] sm:$0xff]  ;;  %v3750_v48 = vld [vmem:[#allocation6 + $0x5d0] sm:$0xff] }
 0x968   :  { %3942 = vmatprep.subr.bf16.mxu0 %v3705_v1  ;;  %4114 = vmatprep.subr.bf16.mxu1 %v3707_v46  ;;  %v3753_v1 = vld [vmem:[#allocation6 + $0x5e8] sm:$0xff]  ;;  %v3755_v46 = vld [vmem:[#allocation6 + $0x5f8] sm:$0xff] }
 0x96b   :  { %3943 = vmatpush1.bf16.msra.mxu0 %v3704_v31  ;;  %4115 = vmatpush1.bf16.msra.mxu1 %v3706_v32  ;;  %v3752_v31 = vld [vmem:[#allocation6 + $0x5e0] sm:$0xff]  ;;  %v3754_v32 = vld [vmem:[#allocation6 + $0x5f0] sm:$0xff] }
 0x96c   :  { %3944 = vmatprep.subr.bf16.mxu0 %v3709_v59  ;;  %4116 = vmatprep.subr.bf16.mxu1 %v3711_v3  ;;  %v3757_v59 = vld [vmem:[#allocation6 + $0x608] sm:$0xff]  ;;  %v3759_v3 = vld [vmem:[#allocation6 + $0x618] sm:$0xff] }
 0x96f   :  { %3945 = vmatpush1.bf16.msra.mxu0 %v3708_v28  ;;  %4117 = vmatpush1.bf16.msra.mxu1 %v3710_v52  ;;  %v3825_v28 = vpack.c.bf16 %v3557_v55, %v3549_v40  ;;  %v3756_v52 = vld [vmem:[#allocation6 + $0x600] sm:$0xff]  ;;  %v3762_v40 = vld [vmem:[#allocation6 + $0x630] sm:$0xff]  ;;  %v3767_v55 = vld [vmem:[#allocation6 + $0x658] sm:$0xff] }
 0x970   :  { %3946 = vmatprep.subr.bf16.mxu0 %v3713_v35  ;;  %4118 = vmatprep.subr.bf16.mxu1 %v3715_v7  ;;  %v3758_v35 = vld [vmem:[#allocation6 + $0x610] sm:$0xff]  ;;  %v3761_v7 = vld [vmem:[#allocation6 + $0x628] sm:$0xff] }
 0x973   :  { %3947 = vmatpush1.bf16.msra.mxu0 %v3712_v23  ;;  %4119 = vmatpush1.bf16.msra.mxu1 %v3714_v57  ;;  %v3763_v23 = vld [vmem:[#allocation6 + $0x638] sm:$0xff]  ;;  %v3828_v57 = vpack.c.bf16 %v3560_v63, %v3552_v15  ;;  %v3768_v63 = vld [vmem:[#allocation6 + $0x660] sm:$0xff] }
 0x974   :  { %3948 = vmatprep.subr.bf16.mxu0 %v3717_v50  ;;  %4120 = vmatprep.subr.bf16.mxu1 %v3719_v8  ;;  %v3766_v50 = vld [vmem:[#allocation6 + $0x650] sm:$0xff]  ;;  %v3771_v15 = vld [vmem:[#allocation6 + $0x678] sm:$0xff] }
 0x975   :  { %v3770_v8 = vld [vmem:[#allocation6 + $0x670] sm:$0xff] }
 0x977   :  { %3949 = vmatpush1.bf16.msra.mxu0 %v3716_v43  ;;  %4121 = vmatpush1.bf16.msra.mxu1 %v3718_v25  ;;  %v3773_v43 = vld [vmem:[#allocation6 + $0x688] sm:$0xff]  ;;  %v3775_v25 = vld [vmem:[#allocation6 + $0x698] sm:$0xff] }
 0x978   :  { %3950 = vmatprep.subr.bf16.mxu0 %v3721_v18  ;;  %4122 = vmatprep.subr.bf16.mxu1 %v3723_v22  ;;  %v3772_v18 = vld [vmem:[#allocation6 + $0x680] sm:$0xff]  ;;  %v3774_v22 = vld [vmem:[#allocation6 + $0x690] sm:$0xff] }
 0x97b   :  { %3951 = vmatpush1.bf16.msra.mxu0 %v3720_v21  ;;  %4123 = vmatpush1.bf16.msra.mxu1 %v3722_v36  ;;  %v3777_v21 = vld [vmem:[#allocation6 + $0x6a8] sm:$0xff]  ;;  %v3779_v36 = vld [vmem:[#allocation6 + $0x6b8] sm:$0xff] }
 0x97c   :  { %3952 = vmatprep.subr.bf16.mxu0 %v3725_v42  ;;  %4124 = vmatprep.subr.bf16.mxu1 %v3727_v2  ;;  %v3776_v42 = vld [vmem:[#allocation6 + $0x6a0] sm:$0xff]  ;;  %v3778_v2 = vld [vmem:[#allocation6 + $0x6b0] sm:$0xff] }
 0x97f   :  { %3953 = vmatpush1.bf16.msra.mxu0 %v3724_v49  ;;  %4125 = vmatpush1.bf16.msra.mxu1 %v3726_v34  ;;  %v3781_v49 = vld [vmem:[#allocation6 + $0x6c8] sm:$0xff]  ;;  %v3783_v34 = vld [vmem:[#allocation6 + $0x6d8] sm:$0xff] }
 0x980   :  { %3954 = vmatprep.subr.bf16.mxu0 %v3729_v12  ;;  %4126 = vmatprep.subr.bf16.mxu1 %v3731_v62  ;;  %v3780_v12 = vld [vmem:[#allocation6 + $0x6c0] sm:$0xff]  ;;  %v3782_v62 = vld [vmem:[#allocation6 + $0x6d0] sm:$0xff] }
 0x983   :  { %3955 = vmatpush1.bf16.msra.mxu0 %v3728_v24  ;;  %4127 = vmatpush1.bf16.msra.mxu1 %v3730_v6  ;;  %v3785_v24 = vld [vmem:[#allocation6 + $0x6e8] sm:$0xff]  ;;  %v3787_v6 = vld [vmem:[#allocation6 + $0x6f8] sm:$0xff] }
 0x984   :  { %3956 = vmatprep.subr.bf16.mxu0 %v3733_v44  ;;  %4128 = vmatprep.subr.bf16.mxu1 %v3735_v19  ;;  %v3784_v44 = vld [vmem:[#allocation6 + $0x6e0] sm:$0xff]  ;;  %v3786_v19 = vld [vmem:[#allocation6 + $0x6f0] sm:$0xff] }
 0x987   :  { %3957 = vmatpush1.bf16.msra.mxu0 %v3732_v53  ;;  %4129 = vmatpush1.bf16.msra.mxu1 %v3734_v54  ;;  %v3789_v53 = vld [vmem:[#allocation6 + $0x708] sm:$0xff]  ;;  %v3791_v54 = vld [vmem:[#allocation6 + $0x718] sm:$0xff] }
 0x988   :  { %3958 = vmatprep.subr.bf16.mxu0 %v3737_v38  ;;  %4130 = vmatprep.subr.bf16.mxu1 %v3739_v9  ;;  %v3788_v38 = vld [vmem:[#allocation6 + $0x700] sm:$0xff]  ;;  %v3790_v9 = vld [vmem:[#allocation6 + $0x710] sm:$0xff] }
 0x98b   :  { %3959 = vmatpush1.bf16.msra.mxu0 %v3736_v30  ;;  %4131 = vmatpush1.bf16.msra.mxu1 %v3738_v20  ;;  %v3793_v30 = vld [vmem:[#allocation6 + $0x728] sm:$0xff]  ;;  %v3795_v20 = vld [vmem:[#allocation6 + $0x738] sm:$0xff] }
 0x98c   :  { %3960 = vmatprep.subr.bf16.mxu0 %v3741_v41  ;;  %4132 = vmatprep.subr.bf16.mxu1 %v3743_v47  ;;  %v3792_v41 = vld [vmem:[#allocation6 + $0x720] sm:$0xff]  ;;  %v3794_v47 = vld [vmem:[#allocation6 + $0x730] sm:$0xff] }
 0x98f   :  { %3961 = vmatpush1.bf16.msra.mxu0 %v3740_v16  ;;  %4133 = vmatpush1.bf16.msra.mxu1 %v3742_v27  ;;  %v3797_v16 = vld [vmem:[#allocation6 + $0x748] sm:$0xff]  ;;  %v3799_v27 = vld [vmem:[#allocation6 + $0x758] sm:$0xff] }
 0x990   :  { %3962 = vmatprep.subr.bf16.mxu0 %v3745_v56  ;;  %4134 = vmatprep.subr.bf16.mxu1 %v3747_v33  ;;  %v3796_v56 = vld [vmem:[#allocation6 + $0x740] sm:$0xff]  ;;  %v3798_v33 = vld [vmem:[#allocation6 + $0x750] sm:$0xff] }
 0x993   :  { %3963 = vmatpush1.bf16.msra.mxu0 %v3744_v45  ;;  %4135 = vmatpush1.bf16.msra.mxu1 %v3746_v17  ;;  %v3801_v45 = vld [vmem:[#allocation6 + $0x768] sm:$0xff]  ;;  %v3803_v17 = vld [vmem:[#allocation6 + $0x778] sm:$0xff] }
 0x994   :  { %3964 = vmatprep.subr.bf16.mxu0 %v3749_v51  ;;  %4136 = vmatprep.subr.bf16.mxu1 %v3751_v37  ;;  %v3800_v51 = vld [vmem:[#allocation6 + $0x760] sm:$0xff]  ;;  %v3802_v37 = vld [vmem:[#allocation6 + $0x770] sm:$0xff] }
 0x997   :  { %3965 = vmatpush1.bf16.msra.mxu0 %v3748_v26  ;;  %4137 = vmatpush1.bf16.msra.mxu1 %v3750_v48  ;;  %v3805_v26 = vld [vmem:[#allocation6 + $0x788] sm:$0xff]  ;;  %v3807_v48 = vld [vmem:[#allocation6 + $0x798] sm:$0xff] }
 0x998   :  { %3966 = vmatprep.subr.bf16.mxu0 %v3753_v1  ;;  %4138 = vmatprep.subr.bf16.mxu1 %v3755_v46  ;;  %v3804_v1 = vld [vmem:[#allocation6 + $0x780] sm:$0xff]  ;;  %v3806_v46 = vld [vmem:[#allocation6 + $0x790] sm:$0xff] }
 0x99b   :  { %3967 = vmatpush1.bf16.msra.mxu0 %v3752_v31  ;;  %4139 = vmatpush1.bf16.msra.mxu1 %v3754_v32  ;;  %v3809_v31 = vld [vmem:[#allocation6 + $0x7a8] sm:$0xff]  ;;  %v3811_v32 = vld [vmem:[#allocation6 + $0x7b8] sm:$0xff] }
 0x99c   :  { %3979 = vmatprep.subr.bf16.mxu0 %v3757_v59  ;;  %4151 = vmatprep.subr.bf16.mxu1 %v3759_v3  ;;  %v3808_v59 = vld [vmem:[#allocation6 + $0x7a0] sm:$0xff]  ;;  %v3810_v3 = vld [vmem:[#allocation6 + $0x7b0] sm:$0xff] }
 0x99e   :  { %3969 = vmatmul.mubr.bf16.vlgmr.msra.gmra.mrb[28].mxu0 %v3825_v28  ;;  %4141 = vmatmul.mubr.bf16.vlgmr.msra.gmra.mrb[28].mxu1 %v3825_v28  ;;  %v3813_v28 = vld [vmem:[#allocation6 + $0x7c8] sm:$0xff] }
 0x99f   :  { %3980 = vmatpush1.bf16.msra.mxu0 %v3756_v52  ;;  %4152 = vmatpush1.bf16.msra.mxu1 %v3758_v35  ;;  %v3815_v52 = vld [vmem:[#allocation6 + $0x7d8] sm:$0xff]  ;;  %v3812_v35 = vld [vmem:[#allocation6 + $0x7c0] sm:$0xff] }
 0x9a0   :  { %3981 = vmatprep.subr.bf16.mxu0 %v3761_v7  ;;  %4153 = vmatprep.subr.bf16.mxu1 %v3763_v23  ;;  %v3814_v7 = vld [vmem:[#allocation6 + $0x7d0] sm:$0xff]  ;;  %v3817_v23 = vld [vmem:[#allocation6 + $0x7e8] sm:$0xff] }
 0x9a1   :  { %4011 = vmatprep.mubr.bf16.mxu0 %v3828_v57  ;;  %4183 = vmatprep.mubr.bf16.mxu1 %v3828_v57  ;;  %v3819_v57 = vld [vmem:[#allocation6 + $0x7f8] sm:$0xff] }
 0x9a3   :  { %3982 = vmatpush1.bf16.msra.mxu0 %v3760_v29  ;;  %4154 = vmatpush1.bf16.msra.mxu1 %v3762_v40  ;;  %v3816_v29 = vld [vmem:[#allocation6 + $0x7e0] sm:$0xff]  ;;  %v3818_v40 = vld [vmem:[#allocation6 + $0x7f0] sm:$0xff] }
 0x9a4   :  { %3983 = vmatprep.subr.bf16.mxu0 %v3765_v0  ;;  %4155 = vmatprep.subr.bf16.mxu1 %v3767_v55  ;;  %v3827_v0 = vpack.c.bf16 %v3559_v4, %v3551_v60  ;;  %v3820_v55 = vld [vmem:[#allocation12 + $0x1c] sm:$0xf] }
 0x9a7   :  { %3984 = vmatpush1.bf16.msra.mxu0 %v3764_v58  ;;  %4156 = vmatpush1.bf16.msra.mxu1 %v3766_v50  ;;  %v3833_v58 = vrot.slane %v3820_v55, %v4959_v10  ;;  %v3841_v50 = vrot.slane %v3820_v55, %v4962_v11 }
 0x9a8   :  { %3985 = vmatprep.subr.bf16.mxu0 %v3769_v5  ;;  %4157 = vmatprep.subr.bf16.mxu1 %v3771_v15  ;;  %v3837_v5 = vrot.slane %v3820_v55, %v4965_v13  ;;  %v3845_v15 = vrot.slane %v3820_v55, %v4968_v14 }
 0x9ab   :  { %3986 = vmatpush1.bf16.msra.mxu0 %v3768_v63  ;;  %4158 = vmatpush1.bf16.msra.mxu1 %v3770_v8 }
 0x9ac   :  { %3987 = vmatprep.subr.bf16.mxu0 %v3773_v43  ;;  %4159 = vmatprep.subr.bf16.mxu1 %v3775_v25 }
 0x9af   :  { %3988 = vmatpush1.bf16.msra.mxu0 %v3772_v18  ;;  %4160 = vmatpush1.bf16.msra.mxu1 %v3774_v22 }
 0x9b0   :  { %3989 = vmatprep.subr.bf16.mxu0 %v3777_v21  ;;  %4161 = vmatprep.subr.bf16.mxu1 %v3779_v36 }
 0x9b3   :  { %3990 = vmatpush1.bf16.msra.mxu0 %v3776_v42  ;;  %4162 = vmatpush1.bf16.msra.mxu1 %v3778_v2 }
 0x9b4   :  { %3991 = vmatprep.subr.bf16.mxu0 %v3781_v49  ;;  %4163 = vmatprep.subr.bf16.mxu1 %v3783_v34 }
 0x9b7   :  { %3992 = vmatpush1.bf16.msra.mxu0 %v3780_v12  ;;  %4164 = vmatpush1.bf16.msra.mxu1 %v3782_v62 }
 0x9b8   :  { %3993 = vmatprep.subr.bf16.mxu0 %v3785_v24  ;;  %4165 = vmatprep.subr.bf16.mxu1 %v3787_v6 }
 0x9bb   :  { %3994 = vmatpush1.bf16.msra.mxu0 %v3784_v44  ;;  %4166 = vmatpush1.bf16.msra.mxu1 %v3786_v19 }
 0x9bc   :  { %3995 = vmatprep.subr.bf16.mxu0 %v3789_v53  ;;  %4167 = vmatprep.subr.bf16.mxu1 %v3791_v54 }
 0x9bf   :  { %3996 = vmatpush1.bf16.msra.mxu0 %v3788_v38  ;;  %4168 = vmatpush1.bf16.msra.mxu1 %v3790_v9 }
 0x9c0   :  { %3997 = vmatprep.subr.bf16.mxu0 %v3793_v30  ;;  %4169 = vmatprep.subr.bf16.mxu1 %v3795_v20 }
 0x9c3   :  { %3998 = vmatpush1.bf16.msra.mxu0 %v3792_v41  ;;  %4170 = vmatpush1.bf16.msra.mxu1 %v3794_v47 }
 0x9c4   :  { %3999 = vmatprep.subr.bf16.mxu0 %v3797_v16  ;;  %4171 = vmatprep.subr.bf16.mxu1 %v3799_v27 }
 0x9c7   :  { %4000 = vmatpush1.bf16.msra.mxu0 %v3796_v56  ;;  %4172 = vmatpush1.bf16.msra.mxu1 %v3798_v33 }
 0x9c8   :  { %4001 = vmatprep.subr.bf16.mxu0 %v3801_v45  ;;  %4173 = vmatprep.subr.bf16.mxu1 %v3803_v17 }
 0x9cb   :  { %4002 = vmatpush1.bf16.msra.mxu0 %v3800_v51  ;;  %4174 = vmatpush1.bf16.msra.mxu1 %v3802_v37 }
 0x9cc   :  { %4003 = vmatprep.subr.bf16.mxu0 %v3805_v26  ;;  %4175 = vmatprep.subr.bf16.mxu1 %v3807_v48 }
 0x9cf   :  { %4004 = vmatpush1.bf16.msra.mxu0 %v3804_v1  ;;  %4176 = vmatpush1.bf16.msra.mxu1 %v3806_v46 }
 0x9d0   :  { %4005 = vmatprep.subr.bf16.mxu0 %v3809_v31  ;;  %4177 = vmatprep.subr.bf16.mxu1 %v3811_v32 }
 0x9d3   :  { %4006 = vmatpush1.bf16.msra.mxu0 %v3808_v59  ;;  %4178 = vmatpush1.bf16.msra.mxu1 %v3810_v3 }
 0x9d4   :  { %4007 = vmatprep.subr.bf16.mxu0 %v3813_v28  ;;  %4179 = vmatprep.subr.bf16.mxu1 %v3815_v52 }
 0x9d7   :  { %4008 = vmatpush1.bf16.msra.mxu0 %v3812_v35  ;;  %4180 = vmatpush1.bf16.msra.mxu1 %v3814_v7 }
 0x9d8   :  { %4009 = vmatprep.subr.bf16.mxu0 %v3817_v23  ;;  %4181 = vmatprep.subr.bf16.mxu1 %v3819_v57 }
 0x9db   :  { %4010 = vmatpush1.bf16.msra.mxu0 %v3816_v29  ;;  %4182 = vmatpush1.bf16.msra.mxu1 %v3818_v40 }
 0x9de   :  { %4012 = vmatmul.mubr.bf16.vlgmr.msra.gmra.mrb[28].mxu0 %v3827_v0  ;;  %4184 = vmatmul.mubr.bf16.vlgmr.msra.gmra.mrb[28].mxu1 %v3827_v0 }
 0xab1   :  { %v4013_v63 = vpop.f32.mrb[28].mxu0  ;;  %v4185_v8 = vpop.f32.mrb[28].mxu1 }
 0xab2   :  { %v5414_v43 = vadd.f32 %v4013_v63, %v3833_v58  ;;  %v5416_v39 = vadd.f32 %v4185_v8, %v3841_v50  ;;  %v4015_v60 = vpop.f32.mrb[29].mxu0  ;;  %v4187_v61 = vpop.f32.mrb[29].mxu1 }
 0xab3   :  { %v4503_v4 = vadd.f32 %v4015_v60, %v3837_v5  ;;  %v4507_v25 = vadd.f32 %v4187_v61, %v3845_v15  ;;  %v4017_v18 = vpop.f32.mrb[30].mxu0  ;;  %v4189_v22 = vpop.f32.mrb[30].mxu1 }
 0xab4   :  { %v4194_v10 = vmax.f32 %v5414_v43, 0.0  ;;  %v4196_v11 = vmax.f32 %v5416_v39, 0.0  ;;  %v5420_v21 = vadd.f32 %v4017_v18, %v3833_v58  ;;  %v5422_v13 = vadd.f32 %v4189_v22, %v3841_v50  ;;  %v4019_v14 = vpop.f32.mrb[31].mxu0  ;;  %v4191_v36 = vpop.f32.mrb[31].mxu1 }
 0xab5   :  { %v4195_v42 = vmax.f32 %v4503_v4, 0.0  ;;  %v4197_v2 = vmax.f32 %v4507_v25, 0.0  ;;  %v4505_v49 = vadd.f32 %v4019_v14, %v3837_v5  ;;  %v4509_v34 = vadd.f32 %v4191_v36, %v3845_v15 }
 0xab6   :  { %v4198_v12 = vmax.f32 %v5420_v21, 0.0  ;;  %v4200_v62 = vmax.f32 %v5422_v13, 0.0 }
 0xab7   :  { %v4199_v24 = vmax.f32 %v4505_v49, 0.0  ;;  %v4201_v6 = vmax.f32 %v4509_v34, 0.0 }
 0xab8   :  { %4776 = dma.done.wait [#allocation8 + $0x5], 4096 }
 0xab9   :  { %4777 = vsyncadd [#allocation8 + $0x5], 4294963200  ;;  %v4239_v44 = vpack.c.bf16 %v4199_v24, %v4195_v42  ;;  %v4241_v19 = vpack.c.bf16 %v4201_v6, %v4197_v2  ;;  %v4213_v53 = vld [vmem:[#allocation7 + $0x40] sm:$0xff]  ;;  %v4214_v30 = vld [vmem:[#allocation7 + $0x48] sm:$0xff]  ;;  %v4238_v0 = vpack.c.bf16 %v4198_v12, %v4194_v10  ;;  %v4240_v55 = vpack.c.bf16 %v4200_v62, %v4196_v11  ;;  %s4807_s7 = smov [#allocation14]  }
 0xaba   :  { %v4229_v54 = vld [vmem:[#allocation7 + $0xc0] sm:$0xff]  ;;  %4410 = vmatprep.subr.bf16.mxu0 %v4213_v53  ;;  %v4230_v20 = vld [vmem:[#allocation7 + $0xc8] sm:$0xff]  ;;  %v4215_v16 = vld [vmem:[#allocation7 + $0x50] sm:$0xff]  ;;  %s4337_s18 = sshll.u32 %s4807_s7, 4  ;;  %s4338_s18 = int_to_ptr.vmem [resolvable:$true] %s4337_s18 }
 0xabb   :  { %4280 = vmatprep.mubr.bf16.mxu0 %v4239_v44  ;;  %4321 = vmatprep.mubr.bf16.mxu1 %v4241_v19  ;;  %v4205_v38 = vld [vmem:[#allocation7] sm:$0xff]  ;;  %v4206_v41 = vld [vmem:[#allocation7 + $0x8] sm:$0xff]  ;;  %v4231_v27 = vld [vmem:[#allocation7 + $0xd0] sm:$0xff]  ;;  %s4740_s13 = scalar_lea.vmem %s4338_s18, 256  ;;  %p4745_p11 = scmp.lt.s32.totalorder %s4338_s18, %s4338_s18 }
 0xabc   :  { %4432 = vmatprep.subr.bf16.mxu1 %v4229_v54  ;;  %v4221_v9 = vld [vmem:[#allocation7 + $0x80] sm:$0xff]  ;;  %4411 = vmatpush3.bf16.msra.mxu0 %v4205_v38  ;;  %v4222_v47 = vld [vmem:[#allocation7 + $0x88] sm:$0xff]  ;;  %v4207_v56 = vld [vmem:[#allocation7 + $0x10] sm:$0xff]  ;;  %p4741_p10 = scmp.ne.s32.totalorder %s4338_s18, %s4740_s13  ;;  %p4746_p12 = scmp.lt.s32.totalorder %s4740_s13, %s4740_s13 }
 0xabd   :  { %4433 = vmatpush3.bf16.msra.mxu1 %v4221_v9  ;;  %4412 = vmatprep.subr.bf16.mxu0 %v4214_v30  ;;  %v4223_v33 = vld [vmem:[#allocation7 + $0x90] sm:$0xff]  ;;  %v4216_v45 = vld [vmem:[#allocation7 + $0x58] sm:$0xff]  ;;  %v4217_v26 = vld [vmem:[#allocation7 + $0x60] sm:$0xff] }
 0xabe   :  { %4434 = vmatprep.subr.bf16.mxu1 %v4230_v20  ;;  %v4232_v17 = vld [vmem:[#allocation7 + $0xd8] sm:$0xff]  ;;  %v4233_v48 = vld [vmem:[#allocation7 + $0xe0] sm:$0xff]  ;;  %v4218_v31 = vld [vmem:[#allocation7 + $0x68] sm:$0xff]  ;;  %p4747_p13 = por %p4746_p12, %p4745_p11 }
 0xabf   :  { %v4208_v51 = vld [vmem:[#allocation7 + $0x18] sm:$0xff]  ;;  %v4209_v1 = vld [vmem:[#allocation7 + $0x20] sm:$0xff]  ;;  %v4234_v32 = vld [vmem:[#allocation7 + $0xe8] sm:$0xff] }
 0xac0   :  { %4413 = vmatpush3.bf16.msra.mxu0 %v4206_v41  ;;  %v4224_v37 = vld [vmem:[#allocation7 + $0x98] sm:$0xff]  ;;  %v4225_v46 = vld [vmem:[#allocation7 + $0xa0] sm:$0xff]  ;;  %v4210_v59 = vld [vmem:[#allocation7 + $0x28] sm:$0xff]  ;;  %p4748_p0 = pnand %p4747_p13, %p4741_p10 }
 0xac1   :  { %4435 = vmatpush3.bf16.msra.mxu1 %v4222_v47  ;;  %4414 = vmatprep.subr.bf16.mxu0 %v4215_v16  ;;  %v4226_v3 = vld [vmem:[#allocation7 + $0xa8] sm:$0xff]  ;;  %v4219_v28 = vld [vmem:[#allocation7 + $0x70] sm:$0xff]  ;;  %v4220_v23 = vld [vmem:[#allocation7 + $0x78] sm:$0xff] }
 0xac2   :  { %4436 = vmatprep.subr.bf16.mxu1 %v4231_v27  ;;  %v4235_v52 = vld [vmem:[#allocation7 + $0xf0] sm:$0xff]  ;;  %v4236_v57 = vld [vmem:[#allocation7 + $0xf8] sm:$0xff] }
 0xac3   :  { %v4211_v35 = vld [vmem:[#allocation7 + $0x30] sm:$0xff]  ;;  %v4212_v29 = vld [vmem:[#allocation7 + $0x38] sm:$0xff] }
 0xac4   :  { %4415 = vmatpush3.bf16.msra.mxu0 %v4207_v56  ;;  %v4227_v7 = vld [vmem:[#allocation7 + $0xb0] sm:$0xff]  ;;  %v4228_v40 = vld [vmem:[#allocation7 + $0xb8] sm:$0xff] }
 0xac5   :  { %4437 = vmatpush3.bf16.msra.mxu1 %v4223_v33  ;;  %4416 = vmatprep.subr.bf16.mxu0 %v4216_v45  ;;  %v4403_v5 = vld [vmem:[#allocation12 + $0x20] ss:$0 sm:$0xff] }
 0xac6   :  { %4438 = vmatprep.subr.bf16.mxu1 %v4232_v17 }
 0xac8   :  { %4417 = vmatpush3.bf16.msra.mxu0 %v4208_v51 }
 0xac9   :  { %4439 = vmatpush3.bf16.msra.mxu1 %v4224_v37  ;;  %4418 = vmatprep.subr.bf16.mxu0 %v4217_v26 }
 0xaca   :  { %4440 = vmatprep.subr.bf16.mxu1 %v4233_v48 }
 0xacc   :  { %4419 = vmatpush3.bf16.msra.mxu0 %v4209_v1 }
 0xacd   :  { %4441 = vmatpush3.bf16.msra.mxu1 %v4225_v46  ;;  %4420 = vmatprep.subr.bf16.mxu0 %v4218_v31 }
 0xace   :  { %4442 = vmatprep.subr.bf16.mxu1 %v4234_v32 }
 0xad0   :  { %4421 = vmatpush3.bf16.msra.mxu0 %v4210_v59 }
 0xad1   :  { %4443 = vmatpush3.bf16.msra.mxu1 %v4226_v3  ;;  %4422 = vmatprep.subr.bf16.mxu0 %v4219_v28 }
 0xad2   :  { %4444 = vmatprep.subr.bf16.mxu1 %v4235_v52 }
 0xad4   :  { %4423 = vmatpush3.bf16.msra.mxu0 %v4211_v35 }
 0xad5   :  { %4445 = vmatpush3.bf16.msra.mxu1 %v4227_v7  ;;  %4424 = vmatprep.subr.bf16.mxu0 %v4220_v23 }
 0xad6   :  { %4446 = vmatprep.subr.bf16.mxu1 %v4236_v57 }
 0xad8   :  { %4425 = vmatpush3.bf16.msra.mxu0 %v4212_v29 }
 0xad9   :  { %4447 = vmatpush3.bf16.msra.mxu1 %v4228_v40 }
 0xadb   :  { %4281 = vmatmul.mubr.bf16.vlgmr.msra.gmra.mrb[32].mxu0 %v4238_v0 }
 0xadc   :  { %4322 = vmatmul.mubr.bf16.vlgmr.msra.gmra.mrb[32].mxu1 %v4240_v55 }
 0xbae   :  { %v4426_v58 = vpop.f32.mrb[32].mxu0 }
 0xbaf   :  { %v4448_v50 = vpop.f32.mrb[32].mxu1  ;;  %v4427_v15 = vpop.f32.mrb[33].mxu0 }
 0xbb0   :  { %v4449_v63 = vpop.f32.mrb[33].mxu1  ;;  %v4428_v8 = vadd.f32 %v4427_v15, %v4426_v58  ;;  %v4429_v43 = vpop.f32.mrb[34].mxu0 }
 0xbb1   :  { %v4450_v60 = vadd.f32 %v4449_v63, %v4448_v50  ;;  %v4451_v61 = vpop.f32.mrb[34].mxu1  ;;  %v4430_v4 = vpop.f32.mrb[35].mxu0 }
 0xbb2   :  { %v4452_v25 = vpop.f32.mrb[35].mxu1  ;;  %v4283_v18 = vadd.f32 %v4428_v8, %v4403_v5  ;;  %v4431_v39 = vadd.f32 %v4430_v4, %v4429_v43 }
 0xbb3   :  { %v4453_v22 = vadd.f32 %v4452_v25, %v4451_v61 }
 0xbb4   :  { %v4324_v10 = vadd.f32 %v4450_v60, %v4283_v18  ;;  %v4286_v11 = vadd.f32 %v4431_v39, %v4403_v5 }
 0xbb6   :  { %4330 = vst [vmem:[#allocation14] sm:$0xff] %v4324_v10  ;;  %v4327_v21 = vadd.f32 %v4453_v22, %v4286_v11 }
 0xbb8   :  { %4331 = vst [vmem:[#allocation14 + $0x8] sm:$0xff] %v4327_v21 }
 0xbb9   :  { %4751 = shalt.err (!%p4748_p0)
}
 0xbba   :  { %s4752_s19 = scalar_lea.hbm %s5457_s8, 256 }
 0xbbb   :  { %p4753_p1 = scmp.ne.s32.totalorder %s5457_s8, %s4752_s19  ;;  %p4756_p2 = scmp.lt.u32.totalorder %s4752_s19, %s5457_s8 }
 0xbbd   :  { %p4758_p3 = pnand %p4756_p2, %p4753_p1 }
 0xbbf   :  { %4761 = shalt.err (!%p4758_p3)
}
 0xbc0   :  { %4343 = dma.vmem_to_hbm [thread:$0]  %s4338_s18, 256, %s5457_s8, [#allocation11], %s4781_s15, %s4781_s15, %s4782_s16  }
 0xbc1   :  { %4778 = dma.done.wait [#allocation11], 256  }
 0xbc2   :  { %4779 = vsyncadd [#allocation11], 4294967040 }
 0xbc3   :  { %4347 = vsyncpa [#allocation10], 1 }
 0xbc4   :  { %4348 = vsyncpa [#allocation13], 1 }
 0xbc5   :  { %4349 = vsyncpa [#allocation11], 1 }
 0xbc6   :  { %4350 = vsyncmov [#allocation8] }
 0xbc9   :  { %s4351_s25 = vpop.sfrf %4350 }
 0xbca   :  { %p4404_p4 = scmp.ne.s32.totalorder %s4351_s25, 0 }
 0xbcc   :  { %4355 = shalt.err (%p4404_p4)  }
 0xbcd   :  { %4357 = vsyncmov [#allocation8 + $0x1] }
 0xbd0   :  { %s4358_s2 = vpop.sfrf %4357 }
 0xbd1   :  { %p4405_p5 = scmp.ne.s32.totalorder %s4358_s2, 0 }
 0xbd3   :  { %4362 = shalt.err (%p4405_p5)  }
 0xbd4   :  { %4364 = vsyncmov [#allocation8 + $0x2] }
 0xbd7   :  { %s4365_s5 = vpop.sfrf %4364 }
 0xbd8   :  { %p4406_p6 = scmp.ne.s32.totalorder %s4365_s5, 0 }
 0xbda   :  { %4369 = shalt.err (%p4406_p6)  }
 0xbdb   :  { %4371 = vsyncmov [#allocation8 + $0x3] }
 0xbde   :  { %s4372_s26 = vpop.sfrf %4371 }
 0xbdf   :  { %p4407_p7 = scmp.ne.s32.totalorder %s4372_s26, 0 }
 0xbe1   :  { %4376 = shalt.err (%p4407_p7)  }
 0xbe2   :  { %4378 = vsyncmov [#allocation8 + $0x4] }
 0xbe5   :  { %s4379_s8 = vpop.sfrf %4378 }
 0xbe6   :  { %p4408_p8 = scmp.ne.s32.totalorder %s4379_s8, 0 }
 0xbe8   :  { %4383 = shalt.err (%p4408_p8)  }
 0xbe9   :  { %4385 = vsyncmov [#allocation8 + $0x5] }
 0xbec   :  { %s4386_s15 = vpop.sfrf %4385 }
 0xbed   :  { %p4409_p9 = scmp.ne.s32.totalorder %s4386_s15, 0 }
 0xbef   :  { %4390 = shalt.err (%p4409_p9)  }

</bundles_post_ra>
